<compile_context>
chip_gen: v7x
topology: tpu7x:2x2x1
jax: 0.10.0
libtpu: 0.0.40
codegen_flags: <defaults>
</compile_context>

<pallas_src>
import functools
import math

import jax
import jax.numpy as jnp
import numpy as np
from jax import lax
from jax.experimental import pallas as pl
from jax.experimental.pallas import tpu as pltpu


# ---------------------------------------------------------------------------
# Fused kernel: ALL scales for a block of `bblk` batch elements per grid step.
# Refs: x, W_in (packed QKV), b_in, Wo (block-diag), bo, interp matrices...,
#       out (B-block, T, n_scales*D)  -- lane-dense.
# ---------------------------------------------------------------------------
def _msta_fused_kernel(x_ref, w_in_ref, b_in_ref, wo_ref, bo_ref, *rest,
                       num_heads, scales):
    interp_refs = rest[:-1]
    o_ref = rest[-1]

    nb, T, D = x_ref.shape
    H = num_heads
    n_scales = len(scales)
    q_base = 0
    k_base = n_scales * H * D
    v_base = k_base + n_scales * D

    # ---- single wide lane-dense QKV projection for every scale & head ------
    # 1/sqrt(head_dim) is folded into the (lane-masked) Q columns / bias.
    xf = x_ref[...].reshape(nb * T, D)
    proj = jnp.dot(xf, w_in_ref[...], preferred_element_type=jnp.float32) + b_in_ref[...]
    proj = proj.reshape(nb, T, proj.shape[-1])

    outs = []
    interp_idx = 0
    for i, w in enumerate(scales):
        k_i = proj[:, :, k_base + i * D:k_base + (i + 1) * D]          # (nb, T, D)

        if w >= T:
            # ------- full self-attention over the whole sequence ------------
            o_i = jnp.zeros((nb, T, D), jnp.float32)
            for h in range(H):
                off = (i * H + h) * D
                q_ih = proj[:, :, q_base + off:q_base + off + D]       # head-h lanes only
                v_ih = proj[:, :, v_base + off:v_base + off + D]
                s = jnp.einsum("bqd,bkd->bqk", q_ih, k_i,
                               preferred_element_type=jnp.float32)     # (nb, T, T)
                m = jnp.max(s, axis=-1, keepdims=True)
                e = jnp.exp(s - m)
                p = e * pl.reciprocal(jnp.sum(e, axis=-1, keepdims=True), approx=True)
                o_i = o_i + jnp.einsum("bqk,bkd->bqd", p, v_ih,
                                       preferred_element_type=jnp.float32)
            outs.append(o_i)                                           # (nb, T, D)
        else:
            # ------- all sliding windows: compute-once scores + band masks --
            L = T - w + 1
            win = lax.broadcasted_iota(jnp.int32, (L, T), 0)           # window start
            pos = lax.broadcasted_iota(jnp.int32, (L, T), 1)           # token position
            in_win = ((pos >= win) & (pos < win + w)).astype(jnp.float32)   # (L, T)
            key_bias = ((1.0 - in_win) * jnp.float32(-1e30))[None, :, None, :]  # (1,L,1,T)
            q_mask = in_win[None, :, :, None]                               # (1,L,T,1)

            o_i = jnp.zeros((nb, L, D), jnp.float32)
            for h in range(H):
                off = (i * H + h) * D
                q_ih = proj[:, :, q_base + off:q_base + off + D]
                v_ih = proj[:, :, v_base + off:v_base + off + D]
                s = jnp.einsum("bqd,bkd->bqk", q_ih, k_i,
                               preferred_element_type=jnp.float32)     # (nb, T, T)
                s4 = s[:, None, :, :] + key_bias                       # (nb, L, T, T)
                m = jnp.max(s4, axis=-1, keepdims=True)
                e4 = jnp.exp(s4 - m)
                p4 = e4 * pl.reciprocal(jnp.sum(e4, axis=-1, keepdims=True), approx=True)
                # sum softmax rows over the window's query positions -> per-key weights
                a = jnp.sum(p4 * q_mask, axis=2)                       # (nb, L, T)
                o_i = o_i + jnp.einsum("bsk,bkd->bsd", a, v_ih,
                                       preferred_element_type=jnp.float32)
            o_i = o_i * jnp.float32(1.0 / w)    # mean over window positions (pre-out-proj)

            # F.interpolate(mode='linear') folded in as a (T, L) matmul
            interp = interp_refs[interp_idx][...]                      # (T, L)
            interp_idx += 1
            interp_b = jnp.broadcast_to(interp[None, :, :], (nb, T, L))
            o_i = jnp.einsum("bts,bsd->btd", interp_b, o_i,
                             preferred_element_type=jnp.float32)       # (nb, T, D)
            outs.append(o_i)

    # ---- one block-diagonal output projection, lane-dense (128-wide) store --
    o_all = jnp.concatenate(outs, axis=-1).reshape(nb * T, n_scales * D)
    out = jnp.dot(o_all, wo_ref[...], preferred_element_type=jnp.float32) + bo_ref[...]
    o_ref[...] = out.reshape(nb, T, n_scales * D).astype(o_ref.dtype)


# ---------------------------------------------------------------------------
# Block-size / VMEM budgeting (footprint-based, v7x 64 MiB safe).
# ---------------------------------------------------------------------------
def _round_up(n, m):
    return ((n + m - 1) // m) * m


def _per_seq_vmem_bytes(T, D, n_scales, num_heads, scales):
    """Rough padded-f32 VMEM footprint of the in-kernel intermediates for ONE
    batch element (lane=128 / sublane=8 padding included)."""
    LANE, SUB = 128, 8
    P = (2 * num_heads + 1) * n_scales * D
    b = 0
    b += 2 * _round_up(T, SUB) * _round_up(D, LANE) * 4               # x block (dbl-buf)
    b += 2 * _round_up(T, SUB) * _round_up(n_scales * D, LANE) * 4    # out block (dbl-buf)
    b += _round_up(T, SUB) * _round_up(P, LANE) * 4                   # fused projection
    l_max = max([T - w + 1 for w in scales if w < T] or [1])
    b += 8 * l_max * _round_up(T, SUB) * _round_up(T, LANE) * 4       # windowed softmax temps
    b += (n_scales + 2) * _round_up(T, SUB) * _round_up(D, LANE) * 4  # per-scale outputs
    return b


def _choose_bblk(batch, per_seq_bytes, target_bytes=2 << 20, vmem_budget=24 << 20):
    """Batch elements per grid step: ~2 MiB of live block data (per-step
    overhead amortization), a conservative VMEM budget (v7x: 64 MiB physical),
    and grid length >= 2 so the 'parallel' axis shards over both v7x cores."""
    cap = max(1, min(target_bytes, vmem_budget) // max(per_seq_bytes, 1))
    bblk = max(1, min(batch, cap))
    if batch >= 2:
        bblk = max(1, min(bblk, batch // 2))
    while batch % bblk:
        bblk -= 1
    return bblk


# ---------------------------------------------------------------------------
# Wrapper: one pallas_call for all scales; scale-mean is a cheap XLA reduce.
# ---------------------------------------------------------------------------
@functools.partial(jax.jit, static_argnums=(2, 3))
def multi_scale_attention_pallas(x, packed, num_heads, scales):
    w_in, b_in, wo_bd, bo_cat, interps = packed
    B, T, D = x.shape
    n_scales = len(scales)
    bblk = _choose_bblk(B, _per_seq_vmem_bytes(T, D, n_scales, num_heads, scales))
    grid = (B // bblk,)

    kernel = functools.partial(_msta_fused_kernel,
                               num_heads=num_heads, scales=tuple(scales))
    in_specs = [
        pl.BlockSpec((bblk, T, D), lambda n: (n, 0, 0)),       # x batch block
        pl.BlockSpec(w_in.shape, lambda n: (0, 0)),            # fused QKV weights
        pl.BlockSpec(b_in.shape, lambda n: (0, 0)),            # fused QKV bias
        pl.BlockSpec(wo_bd.shape, lambda n: (0, 0)),           # block-diag Wo
        pl.BlockSpec(bo_cat.shape, lambda n: (0, 0)),          # concat bo
    ] + [pl.BlockSpec(m.shape, lambda n: (0, 0)) for m in interps]

    packed_out = pl.pallas_call(
        kernel,
        out_shape=jax.ShapeDtypeStruct((B, T, n_scales * D), jnp.float32),
        grid_spec=pltpu.PrefetchScalarGridSpec(
            num_scalar_prefetch=0,
            grid=grid,
            in_specs=in_specs,
            out_specs=pl.BlockSpec((bblk, T, n_scales * D), lambda n: (n, 0, 0)),
        ),
        compiler_params=pltpu.CompilerParams(
            dimension_semantics=("parallel",),
            vmem_limit_bytes=32 * 1024 * 1024,   # == default; safe under v7x's 64 MiB
        ),
    )(x, w_in, b_in, wo_bd, bo_cat, *interps)

    # mean over the packed per-scale lane groups (trivial wrapper reduce)
    return packed_out.reshape(B, T, n_scales, D).mean(axis=2)


# ---------------------------------------------------------------------------
# One-time parameter packing.
# ---------------------------------------------------------------------------
def _interp_matrix(L, T):
    """F.interpolate(mode='linear', align_corners=False) from length L to T as
    a (T, L) matrix (rows sum to 1)."""
    if L == T:
        return np.eye(T, dtype=np.float32)
    scale = L / T
    pos = (np.arange(T, dtype=np.float64) + 0.5) * scale - 0.5
    pos = np.maximum(pos, 0.0)
    i0 = np.clip(np.floor(pos).astype(np.int64), 0, L - 1)
    i1 = np.minimum(i0 + 1, L - 1)
    w1 = (pos - i0).astype(np.float32)
    m = np.zeros((T, L), dtype=np.float32)
    m[np.arange(T), i0] += (1.0 - w1)
    m[np.arange(T), i1] += w1
    return m


def prepare_packed_params(raw_params, num_heads, seq_len, scales):
    """Pack raw per-scale MHA params for the fused kernel:
      * per-(scale, head) lane-masked Wq (softmax scale folded) and Wv plus
        per-scale Wk concatenated into one wide projection weight;
      * block-diagonal Wo over the scale-concatenated lanes;
      * precomputed (T, L) linear-interp matrices for sliding-window scales."""
    D = raw_params[0][0].shape[0]
    dh = D // num_heads
    s_fold = 1.0 / math.sqrt(dh)
    n_scales = len(scales)
    lane = np.arange(D)

    wq_cols, bq_cols, wk_cols, bk_cols, wv_cols, bv_cols = [], [], [], [], [], []
    wo_blocks, bo_cols = [], []
    for (wq, wk, wv, wo, b) in raw_params:
        for h in range(num_heads):
            col = ((lane >= h * dh) & (lane < (h + 1) * dh)).astype(np.float32)
            colj = jnp.asarray(col)
            wq_cols.append(wq * s_fold * colj[None, :])
            bq_cols.append(b[0] * s_fold * colj)
            wv_cols.append(wv * colj[None, :])
            bv_cols.append(b[2] * colj)
        wk_cols.append(wk)
        bk_cols.append(b[1])
        wo_blocks.append(wo)
        bo_cols.append(b[3])

    w_in = jnp.concatenate(wq_cols + wk_cols + wv_cols, axis=1)   # (D, (2H+1)*n*D)
    b_in = jnp.concatenate(bq_cols + bk_cols + bv_cols)[None, :]

    n = n_scales * D
    wo_bd = jnp.zeros((n, n), jnp.float32)
    for i, wo in enumerate(wo_blocks):
        wo_bd = wo_bd.at[i * D:(i + 1) * D, i * D:(i + 1) * D].set(wo)
    bo_cat = jnp.concatenate(bo_cols)[None, :]

    interps = tuple(jnp.asarray(_interp_matrix(seq_len - w + 1, seq_len))
                    for w in scales if w < seq_len)
    return (w_in, b_in, wo_bd, bo_cat, interps)


# ---------------------------------------------------------------------------
# Pure-JAX reference (uses the raw, un-packed parameters).
# ---------------------------------------------------------------------------
def _full_mha_ref(x, wq, wk, wv, wo, b, num_heads):
    N, S, D = x.shape
    dh = D // num_heads
    q = x @ wq + b[0]
    k = x @ wk + b[1]
    v = x @ wv + b[2]
    q = q.reshape(N, S, num_heads, dh).transpose(0, 2, 1, 3)
    k = k.reshape(N, S, num_heads, dh).transpose(0, 2, 1, 3)
    v = v.reshape(N, S, num_heads, dh).transpose(0, 2, 1, 3)
    s = jnp.einsum("nhsd,nhtd->nhst", q, k) / math.sqrt(dh)
    p = jax.nn.softmax(s, axis=-1)
    o = jnp.einsum("nhst,nhtd->nhsd", p, v)
    o = o.transpose(0, 2, 1, 3).reshape(N, S, D)
    return o @ wo + b[3]


def _windowed_mean_ref(x, wq, wk, wv, wo, b, num_heads, window):
    B, T, D = x.shape
    L = T - window + 1
    idx = jnp.arange(L)[:, None] + jnp.arange(window)[None, :]
    seqs = x[:, idx, :].reshape(B * L, window, D)
    attn = _full_mha_ref(seqs, wq, wk, wv, wo, b, num_heads)
    return attn.reshape(B, L, window, D).mean(axis=2)


def _linear_interp(y, out_size):
    B, L, D = y.shape
    if L == out_size:
        return y
    scale = L / out_size
    pos = (np.arange(out_size, dtype=np.float32) + 0.5) * scale - 0.5
    pos = np.maximum(pos, 0.0)
    i0 = np.clip(np.floor(pos).astype(np.int32), 0, L - 1)
    i1 = np.minimum(i0 + 1, L - 1)
    w1 = jnp.asarray((pos - i0).astype(np.float32))[None, :, None]
    return y[:, i0, :] * (1.0 - w1) + y[:, i1, :] * w1


def multi_scale_attention_ref(x, raw_params, num_heads, scales):
    B, T, D = x.shape
    outs = []
    for (wq, wk, wv, wo, b), w in zip(raw_params, scales):
        if w >= T:
            outs.append(_full_mha_ref(x, wq, wk, wv, wo, b, num_heads))
        else:
            local = _windowed_mean_ref(x, wq, wk, wv, wo, b, num_heads, w)
            outs.append(_linear_interp(local, T))
    return jnp.stack(outs, axis=0).mean(axis=0)


# ---------------------------------------------------------------------------
# Parameters (shapes follow nn.MultiheadAttention; pre-transposed: x @ W).
# ---------------------------------------------------------------------------
def init_params(key, embed_dim, scales):
    params = []
    bound = 1.0 / math.sqrt(embed_dim)
    for _ in scales:
        key, k1, k2, k3 = jax.random.split(key, 4)
        in_proj = jax.random.uniform(k1, (3 * embed_dim, embed_dim),
                                     jnp.float32, -bound, bound)
        wq = in_proj[0 * embed_dim:1 * embed_dim].T
        wk = in_proj[1 * embed_dim:2 * embed_dim].T
        wv = in_proj[2 * embed_dim:3 * embed_dim].T
        wo = jax.random.uniform(k2, (embed_dim, embed_dim),
                                jnp.float32, -bound, bound).T
        b = jax.random.uniform(k3, (4, embed_dim), jnp.float32, -bound, bound)
        params.append((wq, wk, wv, wo, b))
    return params


if __name__ == "__main__":
    B, T, D, H = 2, 8, 32, 4
    scales = (2, 4, 8, 10)

    key = jax.random.PRNGKey(0)
    kx, kp = jax.random.split(key)
    x = jax.random.normal(kx, (B, T, D), dtype=jnp.float32)

    raw_params = init_params(kp, D, scales)
    packed_params = prepare_packed_params(raw_params, H, T, scales)

    out = multi_scale_attention_pallas(x, packed_params, H, scales)
    out = jax.block_until_ready(out)

    ref = multi_scale_attention_ref(x, raw_params, H, scales)
    np.testing.assert_allclose(np.asarray(out), np.asarray(ref),
                               atol=1e-2, rtol=1e-2)
    assert out.shape == (B, T, D)
    print("KERNEL_OK")
</pallas_src>

<mosaic_0001>
module attributes {stable_mosaic.version = 11 : i64} {
  func.func @_msta_fused_kernel(%arg0: i32, %arg1: memref<1x8x32xf32, #tpu.memory_space<vmem>>, %arg2: memref<32x1152xf32, #tpu.memory_space<vmem>>, %arg3: memref<1x1152xf32, #tpu.memory_space<vmem>>, %arg4: memref<128x128xf32, #tpu.memory_space<vmem>>, %arg5: memref<1x128xf32, #tpu.memory_space<vmem>>, %arg6: memref<8x7xf32, #tpu.memory_space<vmem>>, %arg7: memref<8x5xf32, #tpu.memory_space<vmem>>, %arg8: memref<1x8x128xf32, #tpu.memory_space<vmem>>) attributes {dimension_semantics = [#tpu.dimension_semantics<parallel>], iteration_bounds = array<i64: 2>, scalar_prefetch = 0 : i64, scratch_operands = 0 : i64, tpu.core_type = #tpu.core_type<tc>, window_params = [{transform_indices = @transform_0, window_bounds = array<i64: 1, 8, 32>}, {pipeline_mode = #tpu.pipeline_mode<synchronous>, transform_indices = @transform_1, window_bounds = array<i64: 32, 1152>}, {pipeline_mode = #tpu.pipeline_mode<synchronous>, transform_indices = @transform_2, window_bounds = array<i64: 1, 1152>}, {pipeline_mode = #tpu.pipeline_mode<synchronous>, transform_indices = @transform_3, window_bounds = array<i64: 128, 128>}, {pipeline_mode = #tpu.pipeline_mode<synchronous>, transform_indices = @transform_4, window_bounds = array<i64: 1, 128>}, {pipeline_mode = #tpu.pipeline_mode<synchronous>, transform_indices = @transform_5, window_bounds = array<i64: 8, 7>}, {pipeline_mode = #tpu.pipeline_mode<synchronous>, transform_indices = @transform_6, window_bounds = array<i64: 8, 5>}, {transform_indices = @transform_7, window_bounds = array<i64: 1, 8, 128>}]} {
    %c0 = arith.constant 0 : index
    %c0_0 = arith.constant 0 : index
    %c0_1 = arith.constant 0 : index
    %0 = vector.load %arg1[%c0, %c0_0, %c0_1] : memref<1x8x32xf32, #tpu.memory_space<vmem>>, vector<1x8x32xf32>
    %1 = vector.shape_cast %0 : vector<1x8x32xf32> to vector<8x32xf32>
    %c0_2 = arith.constant 0 : index
    %c0_3 = arith.constant 0 : index
    %2 = vector.load %arg2[%c0_2, %c0_3] : memref<32x1152xf32, #tpu.memory_space<vmem>>, vector<32x1152xf32>
    %cst = arith.constant dense<0.000000e+00> : vector<8x1152xf32>
    %3 = tpu.matmul %1, %2, %cst {dimension_numbers = #tpu.dot_dimension_numbers<[1], [0], [0], [1], [0, 0, 1, 1], [], []>} : vector<8x32xf32>, vector<32x1152xf32>, vector<8x1152xf32> -> vector<8x1152xf32>
    %c0_4 = arith.constant 0 : index
    %c0_5 = arith.constant 0 : index
    %4 = vector.load %arg3[%c0_4, %c0_5] : memref<1x1152xf32, #tpu.memory_space<vmem>>, vector<1x1152xf32>
    %5 = vector.broadcast %4 : vector<1x1152xf32> to vector<8x1152xf32>
    %6 = arith.addf %3, %5 : vector<8x1152xf32>
    %7 = vector.shape_cast %6 : vector<8x1152xf32> to vector<1x8x1152xf32>
    %8 = vector.extract_strided_slice %7 {offsets = [0, 0, 512], sizes = [1, 8, 32], strides = [1, 1, 1]} : vector<1x8x1152xf32> to vector<1x8x32xf32>
    %9 = tpu.iota {dimensions = array<i32: 0>} : vector<7x8xi32>
    %10 = tpu.iota {dimensions = array<i32: 1>} : vector<7x8xi32>
    %11 = arith.cmpi sge, %10, %9 : vector<7x8xi32>
    %c2_i32 = arith.constant 2 : i32
    %12 = vector.broadcast %c2_i32 : i32 to vector<7x8xi32>
    %13 = arith.addi %9, %12 : vector<7x8xi32>
    %14 = arith.cmpi slt, %10, %13 : vector<7x8xi32>
    %15 = arith.andi %11, %14 : vector<7x8xi1>
    %16 = arith.extui %15 : vector<7x8xi1> to vector<7x8xi32>
    %17 = arith.sitofp %16 : vector<7x8xi32> to vector<7x8xf32>
    %cst_6 = arith.constant 1.000000e+00 : f32
    %18 = vector.broadcast %cst_6 : f32 to vector<7x8xf32>
    %19 = arith.subf %18, %17 : vector<7x8xf32>
    %cst_7 = arith.constant -1.000000e+30 : f32
    %20 = vector.broadcast %cst_7 : f32 to vector<7x8xf32>
    %21 = arith.mulf %19, %20 : vector<7x8xf32>
    %22 = vector.shape_cast %21 : vector<7x8xf32> to vector<1x7x1x8xf32>
    %23 = vector.shape_cast %17 : vector<7x8xf32> to vector<1x7x8x1xf32>
    %cst_8 = arith.constant 0.000000e+00 : f32
    %24 = vector.broadcast %cst_8 : f32 to vector<1x7x32xf32>
    %25 = vector.extract_strided_slice %7 {offsets = [0, 0, 0], sizes = [1, 8, 32], strides = [1, 1, 1]} : vector<1x8x1152xf32> to vector<1x8x32xf32>
    %26 = vector.extract_strided_slice %7 {offsets = [0, 0, 640], sizes = [1, 8, 32], strides = [1, 1, 1]} : vector<1x8x1152xf32> to vector<1x8x32xf32>
    "tpu.trace_start"() <{level = 10 : i32, message = "bqd,bkd->bqk"}> : () -> ()
    %cst_9 = arith.constant dense<0.000000e+00> : vector<1x8x8xf32>
    %27 = tpu.matmul %25, %8, %cst_9 {dimension_numbers = #tpu.dot_dimension_numbers<[2], [2], [1], [1], [0, 0, 0, 1, 1, 1], [0], [0]>} : vector<1x8x32xf32>, vector<1x8x32xf32>, vector<1x8x8xf32> -> vector<1x8x8xf32>
    "tpu.trace_stop"() : () -> ()
    %28 = vector.shape_cast %27 : vector<1x8x8xf32> to vector<1x1x8x8xf32>
    %29 = vector.broadcast %28 : vector<1x1x8x8xf32> to vector<1x7x8x8xf32>
    %30 = vector.broadcast %22 : vector<1x7x1x8xf32> to vector<1x7x8x8xf32>
    %31 = arith.addf %29, %30 : vector<1x7x8x8xf32>
    %cst_10 = arith.constant dense<0xFF800000> : vector<1x7x8xf32>
    %32 = vector.multi_reduction <maximumf>, %31, %cst_10 [3] : vector<1x7x8x8xf32> to vector<1x7x8xf32>
    %33 = vector.shape_cast %32 : vector<1x7x8xf32> to vector<1x7x8x1xf32>
    %34 = vector.broadcast %33 : vector<1x7x8x1xf32> to vector<1x7x8x8xf32>
    %35 = arith.subf %31, %34 : vector<1x7x8x8xf32>
    %36 = math.exp %35 : vector<1x7x8x8xf32>
    %cst_11 = arith.constant dense<0.000000e+00> : vector<1x7x8xf32>
    %37 = vector.multi_reduction <add>, %36, %cst_11 [3] : vector<1x7x8x8xf32> to vector<1x7x8xf32>
    %38 = vector.shape_cast %37 : vector<1x7x8xf32> to vector<1x7x8x1xf32>
    %39 = tpu.reciprocal %38 {approx = true} : vector<1x7x8x1xf32> -> vector<1x7x8x1xf32>
    %40 = vector.broadcast %39 : vector<1x7x8x1xf32> to vector<1x7x8x8xf32>
    %41 = arith.mulf %36, %40 : vector<1x7x8x8xf32>
    %42 = vector.broadcast %23 : vector<1x7x8x1xf32> to vector<1x7x8x8xf32>
    %43 = arith.mulf %41, %42 : vector<1x7x8x8xf32>
    %cst_12 = arith.constant dense<0.000000e+00> : vector<1x7x8xf32>
    %44 = vector.multi_reduction <add>, %43, %cst_12 [2] : vector<1x7x8x8xf32> to vector<1x7x8xf32>
    "tpu.trace_start"() <{level = 10 : i32, message = "bsk,bkd->bsd"}> : () -> ()
    %cst_13 = arith.constant dense<0.000000e+00> : vector<1x7x32xf32>
    %45 = tpu.matmul %44, %26, %cst_13 {dimension_numbers = #tpu.dot_dimension_numbers<[2], [1], [1], [2], [0, 0, 0, 1, 1, 2], [0], [0]>} : vector<1x7x8xf32>, vector<1x8x32xf32>, vector<1x7x32xf32> -> vector<1x7x32xf32>
    "tpu.trace_stop"() : () -> ()
    %46 = arith.addf %24, %45 : vector<1x7x32xf32>
    %47 = vector.extract_strided_slice %7 {offsets = [0, 0, 32], sizes = [1, 8, 32], strides = [1, 1, 1]} : vector<1x8x1152xf32> to vector<1x8x32xf32>
    %48 = vector.extract_strided_slice %7 {offsets = [0, 0, 672], sizes = [1, 8, 32], strides = [1, 1, 1]} : vector<1x8x1152xf32> to vector<1x8x32xf32>
    "tpu.trace_start"() <{level = 10 : i32, message = "bqd,bkd->bqk"}> : () -> ()
    %cst_14 = arith.constant dense<0.000000e+00> : vector<1x8x8xf32>
    %49 = tpu.matmul %47, %8, %cst_14 {dimension_numbers = #tpu.dot_dimension_numbers<[2], [2], [1], [1], [0, 0, 0, 1, 1, 1], [0], [0]>} : vector<1x8x32xf32>, vector<1x8x32xf32>, vector<1x8x8xf32> -> vector<1x8x8xf32>
    "tpu.trace_stop"() : () -> ()
    %50 = vector.shape_cast %49 : vector<1x8x8xf32> to vector<1x1x8x8xf32>
    %51 = vector.broadcast %50 : vector<1x1x8x8xf32> to vector<1x7x8x8xf32>
    %52 = vector.broadcast %22 : vector<1x7x1x8xf32> to vector<1x7x8x8xf32>
    %53 = arith.addf %51, %52 : vector<1x7x8x8xf32>
    %cst_15 = arith.constant dense<0xFF800000> : vector<1x7x8xf32>
    %54 = vector.multi_reduction <maximumf>, %53, %cst_15 [3] : vector<1x7x8x8xf32> to vector<1x7x8xf32>
    %55 = vector.shape_cast %54 : vector<1x7x8xf32> to vector<1x7x8x1xf32>
    %56 = vector.broadcast %55 : vector<1x7x8x1xf32> to vector<1x7x8x8xf32>
    %57 = arith.subf %53, %56 : vector<1x7x8x8xf32>
    %58 = math.exp %57 : vector<1x7x8x8xf32>
    %cst_16 = arith.constant dense<0.000000e+00> : vector<1x7x8xf32>
    %59 = vector.multi_reduction <add>, %58, %cst_16 [3] : vector<1x7x8x8xf32> to vector<1x7x8xf32>
    %60 = vector.shape_cast %59 : vector<1x7x8xf32> to vector<1x7x8x1xf32>
    %61 = tpu.reciprocal %60 {approx = true} : vector<1x7x8x1xf32> -> vector<1x7x8x1xf32>
    %62 = vector.broadcast %61 : vector<1x7x8x1xf32> to vector<1x7x8x8xf32>
    %63 = arith.mulf %58, %62 : vector<1x7x8x8xf32>
    %64 = vector.broadcast %23 : vector<1x7x8x1xf32> to vector<1x7x8x8xf32>
    %65 = arith.mulf %63, %64 : vector<1x7x8x8xf32>
    %cst_17 = arith.constant dense<0.000000e+00> : vector<1x7x8xf32>
    %66 = vector.multi_reduction <add>, %65, %cst_17 [2] : vector<1x7x8x8xf32> to vector<1x7x8xf32>
    "tpu.trace_start"() <{level = 10 : i32, message = "bsk,bkd->bsd"}> : () -> ()
    %cst_18 = arith.constant dense<0.000000e+00> : vector<1x7x32xf32>
    %67 = tpu.matmul %66, %48, %cst_18 {dimension_numbers = #tpu.dot_dimension_numbers<[2], [1], [1], [2], [0, 0, 0, 1, 1, 2], [0], [0]>} : vector<1x7x8xf32>, vector<1x8x32xf32>, vector<1x7x32xf32> -> vector<1x7x32xf32>
    "tpu.trace_stop"() : () -> ()
    %68 = arith.addf %46, %67 : vector<1x7x32xf32>
    %69 = vector.extract_strided_slice %7 {offsets = [0, 0, 64], sizes = [1, 8, 32], strides = [1, 1, 1]} : vector<1x8x1152xf32> to vector<1x8x32xf32>
    %70 = vector.extract_strided_slice %7 {offsets = [0, 0, 704], sizes = [1, 8, 32], strides = [1, 1, 1]} : vector<1x8x1152xf32> to vector<1x8x32xf32>
    "tpu.trace_start"() <{level = 10 : i32, message = "bqd,bkd->bqk"}> : () -> ()
    %cst_19 = arith.constant dense<0.000000e+00> : vector<1x8x8xf32>
    %71 = tpu.matmul %69, %8, %cst_19 {dimension_numbers = #tpu.dot_dimension_numbers<[2], [2], [1], [1], [0, 0, 0, 1, 1, 1], [0], [0]>} : vector<1x8x32xf32>, vector<1x8x32xf32>, vector<1x8x8xf32> -> vector<1x8x8xf32>
    "tpu.trace_stop"() : () -> ()
    %72 = vector.shape_cast %71 : vector<1x8x8xf32> to vector<1x1x8x8xf32>
    %73 = vector.broadcast %72 : vector<1x1x8x8xf32> to vector<1x7x8x8xf32>
    %74 = vector.broadcast %22 : vector<1x7x1x8xf32> to vector<1x7x8x8xf32>
    %75 = arith.addf %73, %74 : vector<1x7x8x8xf32>
    %cst_20 = arith.constant dense<0xFF800000> : vector<1x7x8xf32>
    %76 = vector.multi_reduction <maximumf>, %75, %cst_20 [3] : vector<1x7x8x8xf32> to vector<1x7x8xf32>
    %77 = vector.shape_cast %76 : vector<1x7x8xf32> to vector<1x7x8x1xf32>
    %78 = vector.broadcast %77 : vector<1x7x8x1xf32> to vector<1x7x8x8xf32>
    %79 = arith.subf %75, %78 : vector<1x7x8x8xf32>
    %80 = math.exp %79 : vector<1x7x8x8xf32>
    %cst_21 = arith.constant dense<0.000000e+00> : vector<1x7x8xf32>
    %81 = vector.multi_reduction <add>, %80, %cst_21 [3] : vector<1x7x8x8xf32> to vector<1x7x8xf32>
    %82 = vector.shape_cast %81 : vector<1x7x8xf32> to vector<1x7x8x1xf32>
    %83 = tpu.reciprocal %82 {approx = true} : vector<1x7x8x1xf32> -> vector<1x7x8x1xf32>
    %84 = vector.broadcast %83 : vector<1x7x8x1xf32> to vector<1x7x8x8xf32>
    %85 = arith.mulf %80, %84 : vector<1x7x8x8xf32>
    %86 = vector.broadcast %23 : vector<1x7x8x1xf32> to vector<1x7x8x8xf32>
    %87 = arith.mulf %85, %86 : vector<1x7x8x8xf32>
    %cst_22 = arith.constant dense<0.000000e+00> : vector<1x7x8xf32>
    %88 = vector.multi_reduction <add>, %87, %cst_22 [2] : vector<1x7x8x8xf32> to vector<1x7x8xf32>
    "tpu.trace_start"() <{level = 10 : i32, message = "bsk,bkd->bsd"}> : () -> ()
    %cst_23 = arith.constant dense<0.000000e+00> : vector<1x7x32xf32>
    %89 = tpu.matmul %88, %70, %cst_23 {dimension_numbers = #tpu.dot_dimension_numbers<[2], [1], [1], [2], [0, 0, 0, 1, 1, 2], [0], [0]>} : vector<1x7x8xf32>, vector<1x8x32xf32>, vector<1x7x32xf32> -> vector<1x7x32xf32>
    "tpu.trace_stop"() : () -> ()
    %90 = arith.addf %68, %89 : vector<1x7x32xf32>
    %91 = vector.extract_strided_slice %7 {offsets = [0, 0, 96], sizes = [1, 8, 32], strides = [1, 1, 1]} : vector<1x8x1152xf32> to vector<1x8x32xf32>
    %92 = vector.extract_strided_slice %7 {offsets = [0, 0, 736], sizes = [1, 8, 32], strides = [1, 1, 1]} : vector<1x8x1152xf32> to vector<1x8x32xf32>
    "tpu.trace_start"() <{level = 10 : i32, message = "bqd,bkd->bqk"}> : () -> ()
    %cst_24 = arith.constant dense<0.000000e+00> : vector<1x8x8xf32>
    %93 = tpu.matmul %91, %8, %cst_24 {dimension_numbers = #tpu.dot_dimension_numbers<[2], [2], [1], [1], [0, 0, 0, 1, 1, 1], [0], [0]>} : vector<1x8x32xf32>, vector<1x8x32xf32>, vector<1x8x8xf32> -> vector<1x8x8xf32>
    "tpu.trace_stop"() : () -> ()
    %94 = vector.shape_cast %93 : vector<1x8x8xf32> to vector<1x1x8x8xf32>
    %95 = vector.broadcast %94 : vector<1x1x8x8xf32> to vector<1x7x8x8xf32>
    %96 = vector.broadcast %22 : vector<1x7x1x8xf32> to vector<1x7x8x8xf32>
    %97 = arith.addf %95, %96 : vector<1x7x8x8xf32>
    %cst_25 = arith.constant dense<0xFF800000> : vector<1x7x8xf32>
    %98 = vector.multi_reduction <maximumf>, %97, %cst_25 [3] : vector<1x7x8x8xf32> to vector<1x7x8xf32>
    %99 = vector.shape_cast %98 : vector<1x7x8xf32> to vector<1x7x8x1xf32>
    %100 = vector.broadcast %99 : vector<1x7x8x1xf32> to vector<1x7x8x8xf32>
    %101 = arith.subf %97, %100 : vector<1x7x8x8xf32>
    %102 = math.exp %101 : vector<1x7x8x8xf32>
    %cst_26 = arith.constant dense<0.000000e+00> : vector<1x7x8xf32>
    %103 = vector.multi_reduction <add>, %102, %cst_26 [3] : vector<1x7x8x8xf32> to vector<1x7x8xf32>
    %104 = vector.shape_cast %103 : vector<1x7x8xf32> to vector<1x7x8x1xf32>
    %105 = tpu.reciprocal %104 {approx = true} : vector<1x7x8x1xf32> -> vector<1x7x8x1xf32>
    %106 = vector.broadcast %105 : vector<1x7x8x1xf32> to vector<1x7x8x8xf32>
    %107 = arith.mulf %102, %106 : vector<1x7x8x8xf32>
    %108 = vector.broadcast %23 : vector<1x7x8x1xf32> to vector<1x7x8x8xf32>
    %109 = arith.mulf %107, %108 : vector<1x7x8x8xf32>
    %cst_27 = arith.constant dense<0.000000e+00> : vector<1x7x8xf32>
    %110 = vector.multi_reduction <add>, %109, %cst_27 [2] : vector<1x7x8x8xf32> to vector<1x7x8xf32>
    "tpu.trace_start"() <{level = 10 : i32, message = "bsk,bkd->bsd"}> : () -> ()
    %cst_28 = arith.constant dense<0.000000e+00> : vector<1x7x32xf32>
    %111 = tpu.matmul %110, %92, %cst_28 {dimension_numbers = #tpu.dot_dimension_numbers<[2], [1], [1], [2], [0, 0, 0, 1, 1, 2], [0], [0]>} : vector<1x7x8xf32>, vector<1x8x32xf32>, vector<1x7x32xf32> -> vector<1x7x32xf32>
    "tpu.trace_stop"() : () -> ()
    %112 = arith.addf %90, %111 : vector<1x7x32xf32>
    %cst_29 = arith.constant 5.000000e-01 : f32
    %113 = vector.broadcast %cst_29 : f32 to vector<1x7x32xf32>
    %114 = arith.mulf %112, %113 : vector<1x7x32xf32>
    %c0_30 = arith.constant 0 : index
    %c0_31 = arith.constant 0 : index
    %115 = vector.load %arg6[%c0_30, %c0_31] : memref<8x7xf32, #tpu.memory_space<vmem>>, vector<8x7xf32>
    %116 = vector.shape_cast %115 : vector<8x7xf32> to vector<1x8x7xf32>
    "tpu.trace_start"() <{level = 10 : i32, message = "bts,bsd->btd"}> : () -> ()
    %cst_32 = arith.constant dense<0.000000e+00> : vector<1x8x32xf32>
    %117 = tpu.matmul %116, %114, %cst_32 {dimension_numbers = #tpu.dot_dimension_numbers<[2], [1], [1], [2], [0, 0, 0, 1, 1, 2], [0], [0]>} : vector<1x8x7xf32>, vector<1x7x32xf32>, vector<1x8x32xf32> -> vector<1x8x32xf32>
    "tpu.trace_stop"() : () -> ()
    %118 = vector.extract_strided_slice %7 {offsets = [0, 0, 544], sizes = [1, 8, 32], strides = [1, 1, 1]} : vector<1x8x1152xf32> to vector<1x8x32xf32>
    %119 = tpu.iota {dimensions = array<i32: 0>} : vector<5x8xi32>
    %120 = tpu.iota {dimensions = array<i32: 1>} : vector<5x8xi32>
    %121 = arith.cmpi sge, %120, %119 : vector<5x8xi32>
    %c4_i32 = arith.constant 4 : i32
    %122 = vector.broadcast %c4_i32 : i32 to vector<5x8xi32>
    %123 = arith.addi %119, %122 : vector<5x8xi32>
    %124 = arith.cmpi slt, %120, %123 : vector<5x8xi32>
    %125 = arith.andi %121, %124 : vector<5x8xi1>
    %126 = arith.extui %125 : vector<5x8xi1> to vector<5x8xi32>
    %127 = arith.sitofp %126 : vector<5x8xi32> to vector<5x8xf32>
    %cst_33 = arith.constant 1.000000e+00 : f32
    %128 = vector.broadcast %cst_33 : f32 to vector<5x8xf32>
    %129 = arith.subf %128, %127 : vector<5x8xf32>
    %cst_34 = arith.constant -1.000000e+30 : f32
    %130 = vector.broadcast %cst_34 : f32 to vector<5x8xf32>
    %131 = arith.mulf %129, %130 : vector<5x8xf32>
    %132 = vector.shape_cast %131 : vector<5x8xf32> to vector<1x5x1x8xf32>
    %133 = vector.shape_cast %127 : vector<5x8xf32> to vector<1x5x8x1xf32>
    %cst_35 = arith.constant 0.000000e+00 : f32
    %134 = vector.broadcast %cst_35 : f32 to vector<1x5x32xf32>
    %135 = vector.extract_strided_slice %7 {offsets = [0, 0, 128], sizes = [1, 8, 32], strides = [1, 1, 1]} : vector<1x8x1152xf32> to vector<1x8x32xf32>
    %136 = vector.extract_strided_slice %7 {offsets = [0, 0, 768], sizes = [1, 8, 32], strides = [1, 1, 1]} : vector<1x8x1152xf32> to vector<1x8x32xf32>
    "tpu.trace_start"() <{level = 10 : i32, message = "bqd,bkd->bqk"}> : () -> ()
    %cst_36 = arith.constant dense<0.000000e+00> : vector<1x8x8xf32>
    %137 = tpu.matmul %135, %118, %cst_36 {dimension_numbers = #tpu.dot_dimension_numbers<[2], [2], [1], [1], [0, 0, 0, 1, 1, 1], [0], [0]>} : vector<1x8x32xf32>, vector<1x8x32xf32>, vector<1x8x8xf32> -> vector<1x8x8xf32>
    "tpu.trace_stop"() : () -> ()
    %138 = vector.shape_cast %137 : vector<1x8x8xf32> to vector<1x1x8x8xf32>
    %139 = vector.broadcast %138 : vector<1x1x8x8xf32> to vector<1x5x8x8xf32>
    %140 = vector.broadcast %132 : vector<1x5x1x8xf32> to vector<1x5x8x8xf32>
    %141 = arith.addf %139, %140 : vector<1x5x8x8xf32>
    %cst_37 = arith.constant dense<0xFF800000> : vector<1x5x8xf32>
    %142 = vector.multi_reduction <maximumf>, %141, %cst_37 [3] : vector<1x5x8x8xf32> to vector<1x5x8xf32>
    %143 = vector.shape_cast %142 : vector<1x5x8xf32> to vector<1x5x8x1xf32>
    %144 = vector.broadcast %143 : vector<1x5x8x1xf32> to vector<1x5x8x8xf32>
    %145 = arith.subf %141, %144 : vector<1x5x8x8xf32>
    %146 = math.exp %145 : vector<1x5x8x8xf32>
    %cst_38 = arith.constant dense<0.000000e+00> : vector<1x5x8xf32>
    %147 = vector.multi_reduction <add>, %146, %cst_38 [3] : vector<1x5x8x8xf32> to vector<1x5x8xf32>
    %148 = vector.shape_cast %147 : vector<1x5x8xf32> to vector<1x5x8x1xf32>
    %149 = tpu.reciprocal %148 {approx = true} : vector<1x5x8x1xf32> -> vector<1x5x8x1xf32>
    %150 = vector.broadcast %149 : vector<1x5x8x1xf32> to vector<1x5x8x8xf32>
    %151 = arith.mulf %146, %150 : vector<1x5x8x8xf32>
    %152 = vector.broadcast %133 : vector<1x5x8x1xf32> to vector<1x5x8x8xf32>
    %153 = arith.mulf %151, %152 : vector<1x5x8x8xf32>
    %cst_39 = arith.constant dense<0.000000e+00> : vector<1x5x8xf32>
    %154 = vector.multi_reduction <add>, %153, %cst_39 [2] : vector<1x5x8x8xf32> to vector<1x5x8xf32>
    "tpu.trace_start"() <{level = 10 : i32, message = "bsk,bkd->bsd"}> : () -> ()
    %cst_40 = arith.constant dense<0.000000e+00> : vector<1x5x32xf32>
    %155 = tpu.matmul %154, %136, %cst_40 {dimension_numbers = #tpu.dot_dimension_numbers<[2], [1], [1], [2], [0, 0, 0, 1, 1, 2], [0], [0]>} : vector<1x5x8xf32>, vector<1x8x32xf32>, vector<1x5x32xf32> -> vector<1x5x32xf32>
    "tpu.trace_stop"() : () -> ()
    %156 = arith.addf %134, %155 : vector<1x5x32xf32>
    %157 = vector.extract_strided_slice %7 {offsets = [0, 0, 160], sizes = [1, 8, 32], strides = [1, 1, 1]} : vector<1x8x1152xf32> to vector<1x8x32xf32>
    %158 = vector.extract_strided_slice %7 {offsets = [0, 0, 800], sizes = [1, 8, 32], strides = [1, 1, 1]} : vector<1x8x1152xf32> to vector<1x8x32xf32>
    "tpu.trace_start"() <{level = 10 : i32, message = "bqd,bkd->bqk"}> : () -> ()
    %cst_41 = arith.constant dense<0.000000e+00> : vector<1x8x8xf32>
    %159 = tpu.matmul %157, %118, %cst_41 {dimension_numbers = #tpu.dot_dimension_numbers<[2], [2], [1], [1], [0, 0, 0, 1, 1, 1], [0], [0]>} : vector<1x8x32xf32>, vector<1x8x32xf32>, vector<1x8x8xf32> -> vector<1x8x8xf32>
    "tpu.trace_stop"() : () -> ()
    %160 = vector.shape_cast %159 : vector<1x8x8xf32> to vector<1x1x8x8xf32>
    %161 = vector.broadcast %160 : vector<1x1x8x8xf32> to vector<1x5x8x8xf32>
    %162 = vector.broadcast %132 : vector<1x5x1x8xf32> to vector<1x5x8x8xf32>
    %163 = arith.addf %161, %162 : vector<1x5x8x8xf32>
    %cst_42 = arith.constant dense<0xFF800000> : vector<1x5x8xf32>
    %164 = vector.multi_reduction <maximumf>, %163, %cst_42 [3] : vector<1x5x8x8xf32> to vector<1x5x8xf32>
    %165 = vector.shape_cast %164 : vector<1x5x8xf32> to vector<1x5x8x1xf32>
    %166 = vector.broadcast %165 : vector<1x5x8x1xf32> to vector<1x5x8x8xf32>
    %167 = arith.subf %163, %166 : vector<1x5x8x8xf32>
    %168 = math.exp %167 : vector<1x5x8x8xf32>
    %cst_43 = arith.constant dense<0.000000e+00> : vector<1x5x8xf32>
    %169 = vector.multi_reduction <add>, %168, %cst_43 [3] : vector<1x5x8x8xf32> to vector<1x5x8xf32>
    %170 = vector.shape_cast %169 : vector<1x5x8xf32> to vector<1x5x8x1xf32>
    %171 = tpu.reciprocal %170 {approx = true} : vector<1x5x8x1xf32> -> vector<1x5x8x1xf32>
    %172 = vector.broadcast %171 : vector<1x5x8x1xf32> to vector<1x5x8x8xf32>
    %173 = arith.mulf %168, %172 : vector<1x5x8x8xf32>
    %174 = vector.broadcast %133 : vector<1x5x8x1xf32> to vector<1x5x8x8xf32>
    %175 = arith.mulf %173, %174 : vector<1x5x8x8xf32>
    %cst_44 = arith.constant dense<0.000000e+00> : vector<1x5x8xf32>
    %176 = vector.multi_reduction <add>, %175, %cst_44 [2] : vector<1x5x8x8xf32> to vector<1x5x8xf32>
    "tpu.trace_start"() <{level = 10 : i32, message = "bsk,bkd->bsd"}> : () -> ()
    %cst_45 = arith.constant dense<0.000000e+00> : vector<1x5x32xf32>
    %177 = tpu.matmul %176, %158, %cst_45 {dimension_numbers = #tpu.dot_dimension_numbers<[2], [1], [1], [2], [0, 0, 0, 1, 1, 2], [0], [0]>} : vector<1x5x8xf32>, vector<1x8x32xf32>, vector<1x5x32xf32> -> vector<1x5x32xf32>
    "tpu.trace_stop"() : () -> ()
    %178 = arith.addf %156, %177 : vector<1x5x32xf32>
    %179 = vector.extract_strided_slice %7 {offsets = [0, 0, 192], sizes = [1, 8, 32], strides = [1, 1, 1]} : vector<1x8x1152xf32> to vector<1x8x32xf32>
    %180 = vector.extract_strided_slice %7 {offsets = [0, 0, 832], sizes = [1, 8, 32], strides = [1, 1, 1]} : vector<1x8x1152xf32> to vector<1x8x32xf32>
    "tpu.trace_start"() <{level = 10 : i32, message = "bqd,bkd->bqk"}> : () -> ()
    %cst_46 = arith.constant dense<0.000000e+00> : vector<1x8x8xf32>
    %181 = tpu.matmul %179, %118, %cst_46 {dimension_numbers = #tpu.dot_dimension_numbers<[2], [2], [1], [1], [0, 0, 0, 1, 1, 1], [0], [0]>} : vector<1x8x32xf32>, vector<1x8x32xf32>, vector<1x8x8xf32> -> vector<1x8x8xf32>
    "tpu.trace_stop"() : () -> ()
    %182 = vector.shape_cast %181 : vector<1x8x8xf32> to vector<1x1x8x8xf32>
    %183 = vector.broadcast %182 : vector<1x1x8x8xf32> to vector<1x5x8x8xf32>
    %184 = vector.broadcast %132 : vector<1x5x1x8xf32> to vector<1x5x8x8xf32>
    %185 = arith.addf %183, %184 : vector<1x5x8x8xf32>
    %cst_47 = arith.constant dense<0xFF800000> : vector<1x5x8xf32>
    %186 = vector.multi_reduction <maximumf>, %185, %cst_47 [3] : vector<1x5x8x8xf32> to vector<1x5x8xf32>
    %187 = vector.shape_cast %186 : vector<1x5x8xf32> to vector<1x5x8x1xf32>
    %188 = vector.broadcast %187 : vector<1x5x8x1xf32> to vector<1x5x8x8xf32>
    %189 = arith.subf %185, %188 : vector<1x5x8x8xf32>
    %190 = math.exp %189 : vector<1x5x8x8xf32>
    %cst_48 = arith.constant dense<0.000000e+00> : vector<1x5x8xf32>
    %191 = vector.multi_reduction <add>, %190, %cst_48 [3] : vector<1x5x8x8xf32> to vector<1x5x8xf32>
    %192 = vector.shape_cast %191 : vector<1x5x8xf32> to vector<1x5x8x1xf32>
    %193 = tpu.reciprocal %192 {approx = true} : vector<1x5x8x1xf32> -> vector<1x5x8x1xf32>
    %194 = vector.broadcast %193 : vector<1x5x8x1xf32> to vector<1x5x8x8xf32>
    %195 = arith.mulf %190, %194 : vector<1x5x8x8xf32>
    %196 = vector.broadcast %133 : vector<1x5x8x1xf32> to vector<1x5x8x8xf32>
    %197 = arith.mulf %195, %196 : vector<1x5x8x8xf32>
    %cst_49 = arith.constant dense<0.000000e+00> : vector<1x5x8xf32>
    %198 = vector.multi_reduction <add>, %197, %cst_49 [2] : vector<1x5x8x8xf32> to vector<1x5x8xf32>
    "tpu.trace_start"() <{level = 10 : i32, message = "bsk,bkd->bsd"}> : () -> ()
    %cst_50 = arith.constant dense<0.000000e+00> : vector<1x5x32xf32>
    %199 = tpu.matmul %198, %180, %cst_50 {dimension_numbers = #tpu.dot_dimension_numbers<[2], [1], [1], [2], [0, 0, 0, 1, 1, 2], [0], [0]>} : vector<1x5x8xf32>, vector<1x8x32xf32>, vector<1x5x32xf32> -> vector<1x5x32xf32>
    "tpu.trace_stop"() : () -> ()
    %200 = arith.addf %178, %199 : vector<1x5x32xf32>
    %201 = vector.extract_strided_slice %7 {offsets = [0, 0, 224], sizes = [1, 8, 32], strides = [1, 1, 1]} : vector<1x8x1152xf32> to vector<1x8x32xf32>
    %202 = vector.extract_strided_slice %7 {offsets = [0, 0, 864], sizes = [1, 8, 32], strides = [1, 1, 1]} : vector<1x8x1152xf32> to vector<1x8x32xf32>
    "tpu.trace_start"() <{level = 10 : i32, message = "bqd,bkd->bqk"}> : () -> ()
    %cst_51 = arith.constant dense<0.000000e+00> : vector<1x8x8xf32>
    %203 = tpu.matmul %201, %118, %cst_51 {dimension_numbers = #tpu.dot_dimension_numbers<[2], [2], [1], [1], [0, 0, 0, 1, 1, 1], [0], [0]>} : vector<1x8x32xf32>, vector<1x8x32xf32>, vector<1x8x8xf32> -> vector<1x8x8xf32>
    "tpu.trace_stop"() : () -> ()
    %204 = vector.shape_cast %203 : vector<1x8x8xf32> to vector<1x1x8x8xf32>
    %205 = vector.broadcast %204 : vector<1x1x8x8xf32> to vector<1x5x8x8xf32>
    %206 = vector.broadcast %132 : vector<1x5x1x8xf32> to vector<1x5x8x8xf32>
    %207 = arith.addf %205, %206 : vector<1x5x8x8xf32>
    %cst_52 = arith.constant dense<0xFF800000> : vector<1x5x8xf32>
    %208 = vector.multi_reduction <maximumf>, %207, %cst_52 [3] : vector<1x5x8x8xf32> to vector<1x5x8xf32>
    %209 = vector.shape_cast %208 : vector<1x5x8xf32> to vector<1x5x8x1xf32>
    %210 = vector.broadcast %209 : vector<1x5x8x1xf32> to vector<1x5x8x8xf32>
    %211 = arith.subf %207, %210 : vector<1x5x8x8xf32>
    %212 = math.exp %211 : vector<1x5x8x8xf32>
    %cst_53 = arith.constant dense<0.000000e+00> : vector<1x5x8xf32>
    %213 = vector.multi_reduction <add>, %212, %cst_53 [3] : vector<1x5x8x8xf32> to vector<1x5x8xf32>
    %214 = vector.shape_cast %213 : vector<1x5x8xf32> to vector<1x5x8x1xf32>
    %215 = tpu.reciprocal %214 {approx = true} : vector<1x5x8x1xf32> -> vector<1x5x8x1xf32>
    %216 = vector.broadcast %215 : vector<1x5x8x1xf32> to vector<1x5x8x8xf32>
    %217 = arith.mulf %212, %216 : vector<1x5x8x8xf32>
    %218 = vector.broadcast %133 : vector<1x5x8x1xf32> to vector<1x5x8x8xf32>
    %219 = arith.mulf %217, %218 : vector<1x5x8x8xf32>
    %cst_54 = arith.constant dense<0.000000e+00> : vector<1x5x8xf32>
    %220 = vector.multi_reduction <add>, %219, %cst_54 [2] : vector<1x5x8x8xf32> to vector<1x5x8xf32>
    "tpu.trace_start"() <{level = 10 : i32, message = "bsk,bkd->bsd"}> : () -> ()
    %cst_55 = arith.constant dense<0.000000e+00> : vector<1x5x32xf32>
    %221 = tpu.matmul %220, %202, %cst_55 {dimension_numbers = #tpu.dot_dimension_numbers<[2], [1], [1], [2], [0, 0, 0, 1, 1, 2], [0], [0]>} : vector<1x5x8xf32>, vector<1x8x32xf32>, vector<1x5x32xf32> -> vector<1x5x32xf32>
    "tpu.trace_stop"() : () -> ()
    %222 = arith.addf %200, %221 : vector<1x5x32xf32>
    %cst_56 = arith.constant 2.500000e-01 : f32
    %223 = vector.broadcast %cst_56 : f32 to vector<1x5x32xf32>
    %224 = arith.mulf %222, %223 : vector<1x5x32xf32>
    %c0_57 = arith.constant 0 : index
    %c0_58 = arith.constant 0 : index
    %225 = vector.load %arg7[%c0_57, %c0_58] : memref<8x5xf32, #tpu.memory_space<vmem>>, vector<8x5xf32>
    %226 = vector.shape_cast %225 : vector<8x5xf32> to vector<1x8x5xf32>
    "tpu.trace_start"() <{level = 10 : i32, message = "bts,bsd->btd"}> : () -> ()
    %cst_59 = arith.constant dense<0.000000e+00> : vector<1x8x32xf32>
    %227 = tpu.matmul %226, %224, %cst_59 {dimension_numbers = #tpu.dot_dimension_numbers<[2], [1], [1], [2], [0, 0, 0, 1, 1, 2], [0], [0]>} : vector<1x8x5xf32>, vector<1x5x32xf32>, vector<1x8x32xf32> -> vector<1x8x32xf32>
    "tpu.trace_stop"() : () -> ()
    %228 = vector.extract_strided_slice %7 {offsets = [0, 0, 576], sizes = [1, 8, 32], strides = [1, 1, 1]} : vector<1x8x1152xf32> to vector<1x8x32xf32>
    %cst_60 = arith.constant 0.000000e+00 : f32
    %229 = vector.broadcast %cst_60 : f32 to vector<1x8x32xf32>
    %230 = vector.extract_strided_slice %7 {offsets = [0, 0, 256], sizes = [1, 8, 32], strides = [1, 1, 1]} : vector<1x8x1152xf32> to vector<1x8x32xf32>
    %231 = vector.extract_strided_slice %7 {offsets = [0, 0, 896], sizes = [1, 8, 32], strides = [1, 1, 1]} : vector<1x8x1152xf32> to vector<1x8x32xf32>
    "tpu.trace_start"() <{level = 10 : i32, message = "bqd,bkd->bqk"}> : () -> ()
    %cst_61 = arith.constant dense<0.000000e+00> : vector<1x8x8xf32>
    %232 = tpu.matmul %230, %228, %cst_61 {dimension_numbers = #tpu.dot_dimension_numbers<[2], [2], [1], [1], [0, 0, 0, 1, 1, 1], [0], [0]>} : vector<1x8x32xf32>, vector<1x8x32xf32>, vector<1x8x8xf32> -> vector<1x8x8xf32>
    "tpu.trace_stop"() : () -> ()
    %cst_62 = arith.constant dense<0xFF800000> : vector<1x8xf32>
    %233 = vector.multi_reduction <maximumf>, %232, %cst_62 [2] : vector<1x8x8xf32> to vector<1x8xf32>
    %234 = vector.shape_cast %233 : vector<1x8xf32> to vector<1x8x1xf32>
    %235 = vector.broadcast %234 : vector<1x8x1xf32> to vector<1x8x8xf32>
    %236 = arith.subf %232, %235 : vector<1x8x8xf32>
    %237 = math.exp %236 : vector<1x8x8xf32>
    %cst_63 = arith.constant dense<0.000000e+00> : vector<1x8xf32>
    %238 = vector.multi_reduction <add>, %237, %cst_63 [2] : vector<1x8x8xf32> to vector<1x8xf32>
    %239 = vector.shape_cast %238 : vector<1x8xf32> to vector<1x8x1xf32>
    %240 = tpu.reciprocal %239 {approx = true} : vector<1x8x1xf32> -> vector<1x8x1xf32>
    %241 = vector.broadcast %240 : vector<1x8x1xf32> to vector<1x8x8xf32>
    %242 = arith.mulf %237, %241 : vector<1x8x8xf32>
    "tpu.trace_start"() <{level = 10 : i32, message = "bqk,bkd->bqd"}> : () -> ()
    %cst_64 = arith.constant dense<0.000000e+00> : vector<1x8x32xf32>
    %243 = tpu.matmul %242, %231, %cst_64 {dimension_numbers = #tpu.dot_dimension_numbers<[2], [1], [1], [2], [0, 0, 0, 1, 1, 2], [0], [0]>} : vector<1x8x8xf32>, vector<1x8x32xf32>, vector<1x8x32xf32> -> vector<1x8x32xf32>
    "tpu.trace_stop"() : () -> ()
    %244 = arith.addf %229, %243 : vector<1x8x32xf32>
    %245 = vector.extract_strided_slice %7 {offsets = [0, 0, 288], sizes = [1, 8, 32], strides = [1, 1, 1]} : vector<1x8x1152xf32> to vector<1x8x32xf32>
    %246 = vector.extract_strided_slice %7 {offsets = [0, 0, 928], sizes = [1, 8, 32], strides = [1, 1, 1]} : vector<1x8x1152xf32> to vector<1x8x32xf32>
    "tpu.trace_start"() <{level = 10 : i32, message = "bqd,bkd->bqk"}> : () -> ()
    %cst_65 = arith.constant dense<0.000000e+00> : vector<1x8x8xf32>
    %247 = tpu.matmul %245, %228, %cst_65 {dimension_numbers = #tpu.dot_dimension_numbers<[2], [2], [1], [1], [0, 0, 0, 1, 1, 1], [0], [0]>} : vector<1x8x32xf32>, vector<1x8x32xf32>, vector<1x8x8xf32> -> vector<1x8x8xf32>
    "tpu.trace_stop"() : () -> ()
    %cst_66 = arith.constant dense<0xFF800000> : vector<1x8xf32>
    %248 = vector.multi_reduction <maximumf>, %247, %cst_66 [2] : vector<1x8x8xf32> to vector<1x8xf32>
    %249 = vector.shape_cast %248 : vector<1x8xf32> to vector<1x8x1xf32>
    %250 = vector.broadcast %249 : vector<1x8x1xf32> to vector<1x8x8xf32>
    %251 = arith.subf %247, %250 : vector<1x8x8xf32>
    %252 = math.exp %251 : vector<1x8x8xf32>
    %cst_67 = arith.constant dense<0.000000e+00> : vector<1x8xf32>
    %253 = vector.multi_reduction <add>, %252, %cst_67 [2] : vector<1x8x8xf32> to vector<1x8xf32>
    %254 = vector.shape_cast %253 : vector<1x8xf32> to vector<1x8x1xf32>
    %255 = tpu.reciprocal %254 {approx = true} : vector<1x8x1xf32> -> vector<1x8x1xf32>
    %256 = vector.broadcast %255 : vector<1x8x1xf32> to vector<1x8x8xf32>
    %257 = arith.mulf %252, %256 : vector<1x8x8xf32>
    "tpu.trace_start"() <{level = 10 : i32, message = "bqk,bkd->bqd"}> : () -> ()
    %cst_68 = arith.constant dense<0.000000e+00> : vector<1x8x32xf32>
    %258 = tpu.matmul %257, %246, %cst_68 {dimension_numbers = #tpu.dot_dimension_numbers<[2], [1], [1], [2], [0, 0, 0, 1, 1, 2], [0], [0]>} : vector<1x8x8xf32>, vector<1x8x32xf32>, vector<1x8x32xf32> -> vector<1x8x32xf32>
    "tpu.trace_stop"() : () -> ()
    %259 = arith.addf %244, %258 : vector<1x8x32xf32>
    %260 = vector.extract_strided_slice %7 {offsets = [0, 0, 320], sizes = [1, 8, 32], strides = [1, 1, 1]} : vector<1x8x1152xf32> to vector<1x8x32xf32>
    %261 = vector.extract_strided_slice %7 {offsets = [0, 0, 960], sizes = [1, 8, 32], strides = [1, 1, 1]} : vector<1x8x1152xf32> to vector<1x8x32xf32>
    "tpu.trace_start"() <{level = 10 : i32, message = "bqd,bkd->bqk"}> : () -> ()
    %cst_69 = arith.constant dense<0.000000e+00> : vector<1x8x8xf32>
    %262 = tpu.matmul %260, %228, %cst_69 {dimension_numbers = #tpu.dot_dimension_numbers<[2], [2], [1], [1], [0, 0, 0, 1, 1, 1], [0], [0]>} : vector<1x8x32xf32>, vector<1x8x32xf32>, vector<1x8x8xf32> -> vector<1x8x8xf32>
    "tpu.trace_stop"() : () -> ()
    %cst_70 = arith.constant dense<0xFF800000> : vector<1x8xf32>
    %263 = vector.multi_reduction <maximumf>, %262, %cst_70 [2] : vector<1x8x8xf32> to vector<1x8xf32>
    %264 = vector.shape_cast %263 : vector<1x8xf32> to vector<1x8x1xf32>
    %265 = vector.broadcast %264 : vector<1x8x1xf32> to vector<1x8x8xf32>
    %266 = arith.subf %262, %265 : vector<1x8x8xf32>
    %267 = math.exp %266 : vector<1x8x8xf32>
    %cst_71 = arith.constant dense<0.000000e+00> : vector<1x8xf32>
    %268 = vector.multi_reduction <add>, %267, %cst_71 [2] : vector<1x8x8xf32> to vector<1x8xf32>
    %269 = vector.shape_cast %268 : vector<1x8xf32> to vector<1x8x1xf32>
    %270 = tpu.reciprocal %269 {approx = true} : vector<1x8x1xf32> -> vector<1x8x1xf32>
    %271 = vector.broadcast %270 : vector<1x8x1xf32> to vector<1x8x8xf32>
    %272 = arith.mulf %267, %271 : vector<1x8x8xf32>
    "tpu.trace_start"() <{level = 10 : i32, message = "bqk,bkd->bqd"}> : () -> ()
    %cst_72 = arith.constant dense<0.000000e+00> : vector<1x8x32xf32>
    %273 = tpu.matmul %272, %261, %cst_72 {dimension_numbers = #tpu.dot_dimension_numbers<[2], [1], [1], [2], [0, 0, 0, 1, 1, 2], [0], [0]>} : vector<1x8x8xf32>, vector<1x8x32xf32>, vector<1x8x32xf32> -> vector<1x8x32xf32>
    "tpu.trace_stop"() : () -> ()
    %274 = arith.addf %259, %273 : vector<1x8x32xf32>
    %275 = vector.extract_strided_slice %7 {offsets = [0, 0, 352], sizes = [1, 8, 32], strides = [1, 1, 1]} : vector<1x8x1152xf32> to vector<1x8x32xf32>
    %276 = vector.extract_strided_slice %7 {offsets = [0, 0, 992], sizes = [1, 8, 32], strides = [1, 1, 1]} : vector<1x8x1152xf32> to vector<1x8x32xf32>
    "tpu.trace_start"() <{level = 10 : i32, message = "bqd,bkd->bqk"}> : () -> ()
    %cst_73 = arith.constant dense<0.000000e+00> : vector<1x8x8xf32>
    %277 = tpu.matmul %275, %228, %cst_73 {dimension_numbers = #tpu.dot_dimension_numbers<[2], [2], [1], [1], [0, 0, 0, 1, 1, 1], [0], [0]>} : vector<1x8x32xf32>, vector<1x8x32xf32>, vector<1x8x8xf32> -> vector<1x8x8xf32>
    "tpu.trace_stop"() : () -> ()
    %cst_74 = arith.constant dense<0xFF800000> : vector<1x8xf32>
    %278 = vector.multi_reduction <maximumf>, %277, %cst_74 [2] : vector<1x8x8xf32> to vector<1x8xf32>
    %279 = vector.shape_cast %278 : vector<1x8xf32> to vector<1x8x1xf32>
    %280 = vector.broadcast %279 : vector<1x8x1xf32> to vector<1x8x8xf32>
    %281 = arith.subf %277, %280 : vector<1x8x8xf32>
    %282 = math.exp %281 : vector<1x8x8xf32>
    %cst_75 = arith.constant dense<0.000000e+00> : vector<1x8xf32>
    %283 = vector.multi_reduction <add>, %282, %cst_75 [2] : vector<1x8x8xf32> to vector<1x8xf32>
    %284 = vector.shape_cast %283 : vector<1x8xf32> to vector<1x8x1xf32>
    %285 = tpu.reciprocal %284 {approx = true} : vector<1x8x1xf32> -> vector<1x8x1xf32>
    %286 = vector.broadcast %285 : vector<1x8x1xf32> to vector<1x8x8xf32>
    %287 = arith.mulf %282, %286 : vector<1x8x8xf32>
    "tpu.trace_start"() <{level = 10 : i32, message = "bqk,bkd->bqd"}> : () -> ()
    %cst_76 = arith.constant dense<0.000000e+00> : vector<1x8x32xf32>
    %288 = tpu.matmul %287, %276, %cst_76 {dimension_numbers = #tpu.dot_dimension_numbers<[2], [1], [1], [2], [0, 0, 0, 1, 1, 2], [0], [0]>} : vector<1x8x8xf32>, vector<1x8x32xf32>, vector<1x8x32xf32> -> vector<1x8x32xf32>
    "tpu.trace_stop"() : () -> ()
    %289 = arith.addf %274, %288 : vector<1x8x32xf32>
    %290 = vector.extract_strided_slice %7 {offsets = [0, 0, 608], sizes = [1, 8, 32], strides = [1, 1, 1]} : vector<1x8x1152xf32> to vector<1x8x32xf32>
    %cst_77 = arith.constant 0.000000e+00 : f32
    %291 = vector.broadcast %cst_77 : f32 to vector<1x8x32xf32>
    %292 = vector.extract_strided_slice %7 {offsets = [0, 0, 384], sizes = [1, 8, 32], strides = [1, 1, 1]} : vector<1x8x1152xf32> to vector<1x8x32xf32>
    %293 = vector.extract_strided_slice %7 {offsets = [0, 0, 1024], sizes = [1, 8, 32], strides = [1, 1, 1]} : vector<1x8x1152xf32> to vector<1x8x32xf32>
    "tpu.trace_start"() <{level = 10 : i32, message = "bqd,bkd->bqk"}> : () -> ()
    %cst_78 = arith.constant dense<0.000000e+00> : vector<1x8x8xf32>
    %294 = tpu.matmul %292, %290, %cst_78 {dimension_numbers = #tpu.dot_dimension_numbers<[2], [2], [1], [1], [0, 0, 0, 1, 1, 1], [0], [0]>} : vector<1x8x32xf32>, vector<1x8x32xf32>, vector<1x8x8xf32> -> vector<1x8x8xf32>
    "tpu.trace_stop"() : () -> ()
    %cst_79 = arith.constant dense<0xFF800000> : vector<1x8xf32>
    %295 = vector.multi_reduction <maximumf>, %294, %cst_79 [2] : vector<1x8x8xf32> to vector<1x8xf32>
    %296 = vector.shape_cast %295 : vector<1x8xf32> to vector<1x8x1xf32>
    %297 = vector.broadcast %296 : vector<1x8x1xf32> to vector<1x8x8xf32>
    %298 = arith.subf %294, %297 : vector<1x8x8xf32>
    %299 = math.exp %298 : vector<1x8x8xf32>
    %cst_80 = arith.constant dense<0.000000e+00> : vector<1x8xf32>
    %300 = vector.multi_reduction <add>, %299, %cst_80 [2] : vector<1x8x8xf32> to vector<1x8xf32>
    %301 = vector.shape_cast %300 : vector<1x8xf32> to vector<1x8x1xf32>
    %302 = tpu.reciprocal %301 {approx = true} : vector<1x8x1xf32> -> vector<1x8x1xf32>
    %303 = vector.broadcast %302 : vector<1x8x1xf32> to vector<1x8x8xf32>
    %304 = arith.mulf %299, %303 : vector<1x8x8xf32>
    "tpu.trace_start"() <{level = 10 : i32, message = "bqk,bkd->bqd"}> : () -> ()
    %cst_81 = arith.constant dense<0.000000e+00> : vector<1x8x32xf32>
    %305 = tpu.matmul %304, %293, %cst_81 {dimension_numbers = #tpu.dot_dimension_numbers<[2], [1], [1], [2], [0, 0, 0, 1, 1, 2], [0], [0]>} : vector<1x8x8xf32>, vector<1x8x32xf32>, vector<1x8x32xf32> -> vector<1x8x32xf32>
    "tpu.trace_stop"() : () -> ()
    %306 = arith.addf %291, %305 : vector<1x8x32xf32>
    %307 = vector.extract_strided_slice %7 {offsets = [0, 0, 416], sizes = [1, 8, 32], strides = [1, 1, 1]} : vector<1x8x1152xf32> to vector<1x8x32xf32>
    %308 = vector.extract_strided_slice %7 {offsets = [0, 0, 1056], sizes = [1, 8, 32], strides = [1, 1, 1]} : vector<1x8x1152xf32> to vector<1x8x32xf32>
    "tpu.trace_start"() <{level = 10 : i32, message = "bqd,bkd->bqk"}> : () -> ()
    %cst_82 = arith.constant dense<0.000000e+00> : vector<1x8x8xf32>
    %309 = tpu.matmul %307, %290, %cst_82 {dimension_numbers = #tpu.dot_dimension_numbers<[2], [2], [1], [1], [0, 0, 0, 1, 1, 1], [0], [0]>} : vector<1x8x32xf32>, vector<1x8x32xf32>, vector<1x8x8xf32> -> vector<1x8x8xf32>
    "tpu.trace_stop"() : () -> ()
    %cst_83 = arith.constant dense<0xFF800000> : vector<1x8xf32>
    %310 = vector.multi_reduction <maximumf>, %309, %cst_83 [2] : vector<1x8x8xf32> to vector<1x8xf32>
    %311 = vector.shape_cast %310 : vector<1x8xf32> to vector<1x8x1xf32>
    %312 = vector.broadcast %311 : vector<1x8x1xf32> to vector<1x8x8xf32>
    %313 = arith.subf %309, %312 : vector<1x8x8xf32>
    %314 = math.exp %313 : vector<1x8x8xf32>
    %cst_84 = arith.constant dense<0.000000e+00> : vector<1x8xf32>
    %315 = vector.multi_reduction <add>, %314, %cst_84 [2] : vector<1x8x8xf32> to vector<1x8xf32>
    %316 = vector.shape_cast %315 : vector<1x8xf32> to vector<1x8x1xf32>
    %317 = tpu.reciprocal %316 {approx = true} : vector<1x8x1xf32> -> vector<1x8x1xf32>
    %318 = vector.broadcast %317 : vector<1x8x1xf32> to vector<1x8x8xf32>
    %319 = arith.mulf %314, %318 : vector<1x8x8xf32>
    "tpu.trace_start"() <{level = 10 : i32, message = "bqk,bkd->bqd"}> : () -> ()
    %cst_85 = arith.constant dense<0.000000e+00> : vector<1x8x32xf32>
    %320 = tpu.matmul %319, %308, %cst_85 {dimension_numbers = #tpu.dot_dimension_numbers<[2], [1], [1], [2], [0, 0, 0, 1, 1, 2], [0], [0]>} : vector<1x8x8xf32>, vector<1x8x32xf32>, vector<1x8x32xf32> -> vector<1x8x32xf32>
    "tpu.trace_stop"() : () -> ()
    %321 = arith.addf %306, %320 : vector<1x8x32xf32>
    %322 = vector.extract_strided_slice %7 {offsets = [0, 0, 448], sizes = [1, 8, 32], strides = [1, 1, 1]} : vector<1x8x1152xf32> to vector<1x8x32xf32>
    %323 = vector.extract_strided_slice %7 {offsets = [0, 0, 1088], sizes = [1, 8, 32], strides = [1, 1, 1]} : vector<1x8x1152xf32> to vector<1x8x32xf32>
    "tpu.trace_start"() <{level = 10 : i32, message = "bqd,bkd->bqk"}> : () -> ()
    %cst_86 = arith.constant dense<0.000000e+00> : vector<1x8x8xf32>
    %324 = tpu.matmul %322, %290, %cst_86 {dimension_numbers = #tpu.dot_dimension_numbers<[2], [2], [1], [1], [0, 0, 0, 1, 1, 1], [0], [0]>} : vector<1x8x32xf32>, vector<1x8x32xf32>, vector<1x8x8xf32> -> vector<1x8x8xf32>
    "tpu.trace_stop"() : () -> ()
    %cst_87 = arith.constant dense<0xFF800000> : vector<1x8xf32>
    %325 = vector.multi_reduction <maximumf>, %324, %cst_87 [2] : vector<1x8x8xf32> to vector<1x8xf32>
    %326 = vector.shape_cast %325 : vector<1x8xf32> to vector<1x8x1xf32>
    %327 = vector.broadcast %326 : vector<1x8x1xf32> to vector<1x8x8xf32>
    %328 = arith.subf %324, %327 : vector<1x8x8xf32>
    %329 = math.exp %328 : vector<1x8x8xf32>
    %cst_88 = arith.constant dense<0.000000e+00> : vector<1x8xf32>
    %330 = vector.multi_reduction <add>, %329, %cst_88 [2] : vector<1x8x8xf32> to vector<1x8xf32>
    %331 = vector.shape_cast %330 : vector<1x8xf32> to vector<1x8x1xf32>
    %332 = tpu.reciprocal %331 {approx = true} : vector<1x8x1xf32> -> vector<1x8x1xf32>
    %333 = vector.broadcast %332 : vector<1x8x1xf32> to vector<1x8x8xf32>
    %334 = arith.mulf %329, %333 : vector<1x8x8xf32>
    "tpu.trace_start"() <{level = 10 : i32, message = "bqk,bkd->bqd"}> : () -> ()
    %cst_89 = arith.constant dense<0.000000e+00> : vector<1x8x32xf32>
    %335 = tpu.matmul %334, %323, %cst_89 {dimension_numbers = #tpu.dot_dimension_numbers<[2], [1], [1], [2], [0, 0, 0, 1, 1, 2], [0], [0]>} : vector<1x8x8xf32>, vector<1x8x32xf32>, vector<1x8x32xf32> -> vector<1x8x32xf32>
    "tpu.trace_stop"() : () -> ()
    %336 = arith.addf %321, %335 : vector<1x8x32xf32>
    %337 = vector.extract_strided_slice %7 {offsets = [0, 0, 480], sizes = [1, 8, 32], strides = [1, 1, 1]} : vector<1x8x1152xf32> to vector<1x8x32xf32>
    %338 = vector.extract_strided_slice %7 {offsets = [0, 0, 1120], sizes = [1, 8, 32], strides = [1, 1, 1]} : vector<1x8x1152xf32> to vector<1x8x32xf32>
    "tpu.trace_start"() <{level = 10 : i32, message = "bqd,bkd->bqk"}> : () -> ()
    %cst_90 = arith.constant dense<0.000000e+00> : vector<1x8x8xf32>
    %339 = tpu.matmul %337, %290, %cst_90 {dimension_numbers = #tpu.dot_dimension_numbers<[2], [2], [1], [1], [0, 0, 0, 1, 1, 1], [0], [0]>} : vector<1x8x32xf32>, vector<1x8x32xf32>, vector<1x8x8xf32> -> vector<1x8x8xf32>
    "tpu.trace_stop"() : () -> ()
    %cst_91 = arith.constant dense<0xFF800000> : vector<1x8xf32>
    %340 = vector.multi_reduction <maximumf>, %339, %cst_91 [2] : vector<1x8x8xf32> to vector<1x8xf32>
    %341 = vector.shape_cast %340 : vector<1x8xf32> to vector<1x8x1xf32>
    %342 = vector.broadcast %341 : vector<1x8x1xf32> to vector<1x8x8xf32>
    %343 = arith.subf %339, %342 : vector<1x8x8xf32>
    %344 = math.exp %343 : vector<1x8x8xf32>
    %cst_92 = arith.constant dense<0.000000e+00> : vector<1x8xf32>
    %345 = vector.multi_reduction <add>, %344, %cst_92 [2] : vector<1x8x8xf32> to vector<1x8xf32>
    %346 = vector.shape_cast %345 : vector<1x8xf32> to vector<1x8x1xf32>
    %347 = tpu.reciprocal %346 {approx = true} : vector<1x8x1xf32> -> vector<1x8x1xf32>
    %348 = vector.broadcast %347 : vector<1x8x1xf32> to vector<1x8x8xf32>
    %349 = arith.mulf %344, %348 : vector<1x8x8xf32>
    "tpu.trace_start"() <{level = 10 : i32, message = "bqk,bkd->bqd"}> : () -> ()
    %cst_93 = arith.constant dense<0.000000e+00> : vector<1x8x32xf32>
    %350 = tpu.matmul %349, %338, %cst_93 {dimension_numbers = #tpu.dot_dimension_numbers<[2], [1], [1], [2], [0, 0, 0, 1, 1, 2], [0], [0]>} : vector<1x8x8xf32>, vector<1x8x32xf32>, vector<1x8x32xf32> -> vector<1x8x32xf32>
    "tpu.trace_stop"() : () -> ()
    %351 = arith.addf %336, %350 : vector<1x8x32xf32>
    %352 = tpu.concatenate %117, %227, %289, %351 in 2 : vector<1x8x32xf32>, vector<1x8x32xf32>, vector<1x8x32xf32>, vector<1x8x32xf32> -> vector<1x8x128xf32>
    %353 = vector.shape_cast %352 : vector<1x8x128xf32> to vector<8x128xf32>
    %c0_94 = arith.constant 0 : index
    %c0_95 = arith.constant 0 : index
    %354 = vector.load %arg4[%c0_94, %c0_95] : memref<128x128xf32, #tpu.memory_space<vmem>>, vector<128x128xf32>
    %cst_96 = arith.constant dense<0.000000e+00> : vector<8x128xf32>
    %355 = tpu.matmul %353, %354, %cst_96 {dimension_numbers = #tpu.dot_dimension_numbers<[1], [0], [0], [1], [0, 0, 1, 1], [], []>} : vector<8x128xf32>, vector<128x128xf32>, vector<8x128xf32> -> vector<8x128xf32>
    %c0_97 = arith.constant 0 : index
    %c0_98 = arith.constant 0 : index
    %356 = vector.load %arg5[%c0_97, %c0_98] : memref<1x128xf32, #tpu.memory_space<vmem>>, vector<1x128xf32>
    %357 = vector.broadcast %356 : vector<1x128xf32> to vector<8x128xf32>
    %358 = arith.addf %355, %357 : vector<8x128xf32>
    %359 = vector.shape_cast %358 : vector<8x128xf32> to vector<1x8x128xf32>
    %c0_99 = arith.constant 0 : index
    %c0_100 = arith.constant 0 : index
    %c0_101 = arith.constant 0 : index
    %360 = vector.load %arg8[%c0_99, %c0_100, %c0_101] : memref<1x8x128xf32, #tpu.memory_space<vmem>>, vector<1x8x128xf32>
    tpu.vector_store %arg8[%c0_99, %c0_100, %c0_101], %359 {strides = array<i32>} : memref<1x8x128xf32, #tpu.memory_space<vmem>>, vector<1x8x128xf32>,
    return
  }
  func.func @transform_0(%arg0: i32) -> (i32, i32, i32) {
    %c0_i32 = arith.constant 0 : i32
    %c0_i32_0 = arith.constant 0 : i32
    %c0_i32_1 = arith.constant 0 : i32
    return %arg0, %c0_i32, %c0_i32_0 : i32, i32, i32
  }
  func.func @transform_1(%arg0: i32) -> (i32, i32) {
    %c0_i32 = arith.constant 0 : i32
    %c0_i32_0 = arith.constant 0 : i32
    %c0_i32_1 = arith.constant 0 : i32
    return %c0_i32, %c0_i32_0 : i32, i32
  }
  func.func @transform_2(%arg0: i32) -> (i32, i32) {
    %c0_i32 = arith.constant 0 : i32
    %c0_i32_0 = arith.constant 0 : i32
    %c0_i32_1 = arith.constant 0 : i32
    return %c0_i32, %c0_i32_0 : i32, i32
  }
  func.func @transform_3(%arg0: i32) -> (i32, i32) {
    %c0_i32 = arith.constant 0 : i32
    %c0_i32_0 = arith.constant 0 : i32
    %c0_i32_1 = arith.constant 0 : i32
    return %c0_i32, %c0_i32_0 : i32, i32
  }
  func.func @transform_4(%arg0: i32) -> (i32, i32) {
    %c0_i32 = arith.constant 0 : i32
    %c0_i32_0 = arith.constant 0 : i32
    %c0_i32_1 = arith.constant 0 : i32
    return %c0_i32, %c0_i32_0 : i32, i32
  }
  func.func @transform_5(%arg0: i32) -> (i32, i32) {
    %c0_i32 = arith.constant 0 : i32
    %c0_i32_0 = arith.constant 0 : i32
    %c0_i32_1 = arith.constant 0 : i32
    return %c0_i32, %c0_i32_0 : i32, i32
  }
  func.func @transform_6(%arg0: i32) -> (i32, i32) {
    %c0_i32 = arith.constant 0 : i32
    %c0_i32_0 = arith.constant 0 : i32
    %c0_i32_1 = arith.constant 0 : i32
    return %c0_i32, %c0_i32_0 : i32, i32
  }
  func.func @transform_7(%arg0: i32) -> (i32, i32, i32) {
    %c0_i32 = arith.constant 0 : i32
    %c0_i32_0 = arith.constant 0 : i32
    %c0_i32_1 = arith.constant 0 : i32
    return %arg0, %c0_i32, %c0_i32_0 : i32, i32, i32
  }
}

</mosaic_0001>

<bundles_post_ra>
// kernel: multi_scale_attention_pallas.1
= control target key start
LH: loop header
LB: loop body
LE: loop exit
PB: predicated region body
PF: predicated region fallthrough
CT: control target
= control target key end

     0   :  { %12 = vsyncpa [#allocation3], 0  ;;  %s7351_s0 = inlined_call_operand.hbm [shape: f32[2,8,32], index: 0, kind: input, shape index: {}]   ;;  %s7352_s1 = inlined_call_operand.hbm [shape: f32[32,1152], index: 1, kind: input, shape index: {}]   ;;  %s7353_s2 = inlined_call_operand.hbm [shape: f32[1,1152], index: 2, kind: input, shape index: {}]   ;;  %s7354_s3 = inlined_call_operand.hbm [shape: f32[128,128], index: 3, kind: input, shape index: {}]   ;;  %s7355_s4 = inlined_call_operand.vmem [shape: f32[1,128], index: 4, kind: input, shape index: {}]   ;;  %s7356_s5 = inlined_call_operand.vmem [shape: f32[8,7], index: 5, kind: input, shape index: {}]   ;;  %s7357_s6 = inlined_call_operand.vmem [shape: f32[8,5], index: 6, kind: input, shape index: {}]   ;;  %s7358_s7 = inlined_call_operand.vmem [shape: f32[2,8,128], index: 7, kind: output, shape index: {}]  }
   0x1   :  { %14 = vsyncpa [#allocation3 + $0x1], 0 }
   0x2   :  { %15 = vsyncpa [#allocation5], 0 }
   0x3   :  { %16 = vsyncpa [#allocation8], 0  ;;  %s5931_s24 = smov 0   ;;  %s5933_s25 = smov 0  }
   0x4   :  { %s5935_s26 = smov 0   ;;  %s5937_s27 = smov 0  }
   0x5 LB: > { %s5950_s28 = sadd.s32 4294967295, %s5874_s27   ;;  %p42_p0 = scmp.ne.s32.totalorder %s5866_s25, %s5862_s24  ;;  %s5874_s27 = sphi %s5937_s27, %s7418_s27   ;;  %s5870_s26 = sphi %s5935_s26, %s7417_s26   ;;  %s5866_s25 = sphi %s5933_s25, %s7416_s25   ;;  %s5862_s24 = sphi %s5931_s24, %s7415_s24  }
   0x6   : > { %p7359_p1 = scmp.eq.s32.totalorder %s5950_s28, 0  ;;  %p4944_p2 = scmp.ge.s32.totalorder %s5874_s27, 1 }
   0x7   : > { %p205_p3 = scmp.lt.s32.totalorder %s5874_s27, 3  ;;  %s5876_s8 = smov [#allocation4]  }
   0x8   : > { %p5958_p4 = por %p7359_p1, %p42_p0  ;;  %s217_s9 = sshll.u32 %s5876_s8, 4  ;;  %s5966_s9 = int_to_ptr.vmem [resolvable:$true] %s217_s9 }
   0x9   : > { %p5962_p5 = pnand %p4944_p2, %p205_p3  ;;  %s5877_s11 = smov [#allocation6]  }
   0xa   : > { %s7377_s29 = scalar_select %p5958_p4, 1, 0 }
   0xb   : > { %s7378_s30 = scalar_select %p5962_p5, 1, 0 }
   0xc   : > { %p5426_p6 = pneg %p5962_p5  ;;  %s231_s12 = sshll.u32 %s5877_s11, 4  ;;  %s5976_s12 = int_to_ptr.vmem [resolvable:$true] %s231_s12 }
   0xd   : > { %s5878_s13 = smov [#allocation7]   ;;  %s5718_s17 = scalar_lea.hbm %s7352_s1, 4608 }
   0xe   : > { %p5972_p7 = pnand %p5426_p6, %p7359_p1  ;;  %s5978_s14 = sshll.u32 %s5878_s13, 4  ;;  %s242_s14 = int_to_ptr.vmem [resolvable:$true] %s5978_s14 }
   0xf   : > { %p5719_p8 = scmp.ne.s32.totalorder %s7352_s1, %s5718_s17  ;;  %p5725_p12 = scmp.lt.u32.totalorder %s5718_s17, %s7352_s1 }
  0x10   : > { %p5988_p9 = pneg %p5972_p7 }
  0x12   : > { %p5721_p10 = pnand %p5988_p9, %p5719_p8 }
  0x14   : > { %p5722_p11 = pneg %p5721_p10 }
  0x16   : > { %p5727_p13 = pnand %p5725_p12, %p5722_p11 }
  0x18   : > { %5730 = shalt.err (!%p5727_p13)
}
  0x19   : > { %s5731_s23 = scalar_lea.vmem %s5966_s9, 4608  ;;  %p5739_p6 = scmp.lt.s32.totalorder %s5966_s9, %s5966_s9 }
  0x1a   : > { %p5732_p0 = scmp.ne.s32.totalorder %s5966_s9, %s5731_s23  ;;  %p5740_p1 = scmp.lt.s32.totalorder %s5731_s23, %s5731_s23 }
  0x1c   : > { %p5734_p2 = pnand %p5732_p0, %p5988_p9  ;;  %p5741_p8 = por %p5740_p1, %p5739_p6 }
  0x1e   : > { %p5735_p3 = pneg %p5734_p2 }
  0x20   : > { %p5742_p10 = pnand %p5741_p8, %p5735_p3 }
  0x22   : > { %5745 = shalt.err (!%p5742_p10)
}
  0x23   : > { %s5879_s24 = smov 1152   ;;  %s5880_s8 = smov 72  }
  0x24   : > { %5429 = dma.hbm_to_vmem [thread:$0]  (!%p5972_p7), %s7352_s1, 4608, %s5966_s9, [#allocation5], %s5879_s24, %s5879_s24, %s5880_s8  }
  0x25   : > { %s5746_s17 = scalar_lea.hbm %s7353_s2, 144 }
  0x26   : > { %p5747_p1 = scmp.ne.s32.totalorder %s7353_s2, %s5746_s17  ;;  %p5753_p13 = scmp.lt.u32.totalorder %s5746_s17, %s7353_s2 }
  0x28   : > { %p5749_p11 = pnand %p5747_p1, %p5988_p9 }
  0x2a   : > { %p5750_p12 = pneg %p5749_p11 }
  0x2c   : > { %p5755_p0 = pnand %p5753_p13, %p5750_p12 }
  0x2e   : > { %5758 = shalt.err (!%p5755_p0)
}
  0x2f   : > { %s5759_s9 = scalar_lea.vmem %s5976_s12, 144  ;;  %s5766_s23 = scalar_lea.vmem %s5976_s12, 160 }
  0x30   : > { %p5760_p2 = scmp.ne.s32.totalorder %s5976_s12, %s5759_s9  ;;  %p5767_p8 = scmp.lt.s32.totalorder %s5976_s12, %s5976_s12 }
  0x31   : > { %p5768_p10 = scmp.lt.s32.totalorder %s5766_s23, %s5759_s9 }
  0x32   : > { %p5762_p3 = pnand %p5760_p2, %p5988_p9 }
  0x33   : > { %p5769_p1 = por %p5768_p10, %p5767_p8 }
  0x34   : > { %p5763_p6 = pneg %p5762_p3 }
  0x36   : > { %p5770_p11 = pnand %p5769_p1, %p5763_p6 }
  0x38   : > { %5773 = shalt.err (!%p5770_p11)
}
  0x39   : > { %5432 = dma.hbm_to_vmem [thread:$0]  (!%p5972_p7), %s7353_s2, 144, %s5976_s12, [#allocation5]  }
  0x3a   : > { %s5774_s15 = scalar_lea.hbm %s7354_s3, 2048 }
  0x3b   : > { %p5775_p12 = scmp.ne.s32.totalorder %s7354_s3, %s5774_s15  ;;  %p5781_p2 = scmp.lt.u32.totalorder %s5774_s15, %s7354_s3 }
  0x3d   : > { %p5777_p13 = pnand %p5775_p12, %p5988_p9 }
  0x3f   : > { %p5778_p0 = pneg %p5777_p13 }
  0x41   : > { %p5783_p3 = pnand %p5781_p2, %p5778_p0 }
  0x43   : > { %5786 = shalt.err (!%p5783_p3)
}
  0x44   : > { %s5787_s21 = scalar_lea.vmem %s242_s14, 2048  ;;  %p5795_p1 = scmp.lt.s32.totalorder %s242_s14, %s242_s14 }
  0x45   : > { %p5788_p6 = scmp.ne.s32.totalorder %s242_s14, %s5787_s21  ;;  %p5796_p11 = scmp.lt.s32.totalorder %s5787_s21, %s5787_s21 }
  0x47   : > { %p5790_p8 = pnand %p5788_p6, %p5988_p9  ;;  %p5797_p4 = por %p5796_p11, %p5795_p1 }
  0x49   : > { %p5791_p10 = pneg %p5790_p8 }
  0x4b   : > { %p5798_p5 = pnand %p5797_p4, %p5791_p10 }
  0x4d   : > { %5801 = shalt.err (!%p5798_p5)
}
  0x4e   : > { %s5881_s12 = smov 128   ;;  %s5882_s20 = smov 8  }
  0x4f   : > { %5435 = dma.hbm_to_vmem [thread:$0]  (!%p5972_p7), %s7354_s3, 2048, %s242_s14, [#allocation8], %s5881_s12, %s5881_s12, %s5882_s20  }
  0x50   : > { %s6053_s23 = sadd.s32 1, %s5874_s27   ;;  %s29_s8 = sadd.s32 1, %s5870_s26 }
  0x51   : > { %s26_s24 = ssub.s32 %s5874_s27, %s6053_s23  ;;  %p36_p5 = scmp.ne.s32.totalorder %s5870_s26, %s5866_s25 }
  0x52   : > { %p27_p4 = scmp.eq.s32.totalorder %s26_s24, 0  ;;  %p37_p9 = scmp.eq.s32.totalorder %s5874_s27, 0 }
  0x53   : > { %p5443_p12 = scmp.lt.s32.totalorder %s5874_s27, 2  ;;  %s264_s13 = sand.u32 1, %s5870_s26  }
  0x54   : > { %s6063_s11 = scalar_select %p27_p4, %s5870_s26, %s29_s8  }
  0x55   : > { %p38_p13 = por %p37_p9, %p36_p5  ;;  %s4949_s15 = sshll.u32 %s264_s13, 3 }
  0x56   : > { %s4950_s16 = sshll.u32 %s5874_s27, 7  ;;  %s268_s14 = scalar_lea.vmem [#allocation2], %s4949_s15 }
  0x57   : > { %s6070_s18 = scalar_lea.hbm %s7351_s0, %s4950_s16  ;;  %s275_s19 = sshll.u32 %s268_s14, 4  ;;  %s6072_s19 = int_to_ptr.vmem [resolvable:$true] %s275_s19 }
  0x58   : > { %p6074_p7 = pnand %p5443_p12, %p38_p13  ;;  %s265_s27 = scalar_lea.sflag [#allocation3], %s264_s13 }
  0x59   : > { %s5802_s12 = scalar_lea.hbm %s6070_s18, 128  ;;  %s5807_s9 = scalar_lea.hbm %s7351_s0, 256 }
  0x5a   : > { %p5803_p0 = scmp.ne.s32.totalorder %s6070_s18, %s5802_s12  ;;  %p5804_p2 = pneg %p6074_p7 }
  0x5b   : > { %p5808_p8 = scmp.lt.u32.totalorder %s6070_s18, %s7351_s0  ;;  %p5809_p10 = scmp.lt.u32.totalorder %s5807_s9, %s5802_s12 }
  0x5c   : > { %p5805_p3 = pnand %p5804_p2, %p5803_p0  ;;  %p5811_p11 = scmp.lt.u32.totalorder %s5802_s12, %s6070_s18 }
  0x5d   : > { %p5810_p1 = por %p5809_p10, %p5808_p8 }
  0x5e   : > { %p5806_p6 = pneg %p5805_p3 }
  0x5f   : > { %p5812_p4 = por %p5811_p11, %p5810_p1 }
  0x61   : > { %p5813_p5 = pnand %p5812_p4, %p5806_p6 }
  0x63   : > { %5816 = shalt.err (!%p5813_p5)
}
  0x64   : > { %s5817_s13 = scalar_lea.vmem %s6072_s19, 128  ;;  %s5883_s15 = smov [#allocation2]  }
  0x65   : > { %p5818_p9 = scmp.ne.s32.totalorder %s6072_s19, %s5817_s13  ;;  %s5822_s16 = sshll.u32 %s5883_s15, 4  ;;  %s5823_s16 = int_to_ptr.vmem [resolvable:$false] %s5822_s16 }
  0x66   : > { %s5824_s10 = scalar_lea.vmem %s5823_s16, 256  ;;  %p5825_p0 = scmp.lt.s32.totalorder %s6072_s19, %s5823_s16 }
  0x67   : > { %p5820_p12 = pnand %p5818_p9, %p5804_p2  ;;  %p5826_p3 = scmp.lt.s32.totalorder %s5824_s10, %s5817_s13 }
  0x69   : > { %p5821_p13 = pneg %p5820_p12  ;;  %p5827_p8 = por %p5826_p3, %p5825_p0 }
  0x6b   : > { %p5828_p10 = pnand %p5827_p8, %p5821_p13 }
  0x6d   : > { %5831 = shalt.err (!%p5828_p10)
}
  0x6e   : > { %5439 = dma.hbm_to_vmem [thread:$0]  (!%p6074_p7), %s6070_s18, 128, %s6072_s19, %s265_s27  }
  0x6f   : > { %p7382_p6 = scmp.ne.s32.totalorder %s7378_s30, 0 }
  0x71   : > { %284 = sbr.rel (%p7382_p6) target bundleno = 3342 (0xd0e), region = 48 }
  0x78   : > { %s286_s17 = sand.u32 1, %s5866_s25   ;;  %p7383_p2 = scmp.ne.s32.totalorder %s7377_s29, 0 }
  0x79   : > { %s6106_s14 = sshll.u32 %s286_s17, 3  ;;  %s287_s12 = scalar_lea.sflag [#allocation3], %s286_s17 }
  0x7a   : > { %s290_s20 = scalar_lea.vmem [#allocation2], %s6106_s14 }
  0x7b   : > { %5849 = dma.done.wait (%p7383_p2), %s287_s12, 128  }
  0x7c   : > { %5851 = vsyncadd (%p7383_p2), %s287_s12, 4294967168  ;;  %p7384_p1 = scmp.eq.s32.totalorder %s5950_s28, 0 }
  0x7e   : > { %5853 = dma.done.wait (%p7384_p1), [#allocation5], 4752   ;;  %p7385_p7 = pmov %p7384_p1 }
  0x7f   : > { %p7386_p11 = pmov %p7384_p1 }
  0x80   : > { %5855 = vsyncadd (%p7385_p7), [#allocation5], 4294962544 }
  0x81   : > { %5857 = dma.done.wait (%p7386_p11), [#allocation8], 2048   ;;  %p7387_p4 = pmov %p7384_p1 }
  0x82   : > { %v7364_v0 = vmov 0.0   ;;  %v338_v1 = vld [vmem:[#allocation4 + $0x8] sm:$0xff]  ;;  %v347_v2 = vld [vmem:[#allocation4 + $0x50] sm:$0xff]  ;;  %v337_v3 = vld [vmem:[#allocation4] sm:$0xff]  ;;  %vm422_vm0 = vcmask 261120   ;;  %v7362_v40 = vmov 0.0|0.0   ;;  %v377_v57 = vlaneseq }
  0x83   : > { %5859 = vsyncadd (%p7387_p4), [#allocation8], 4294965248  ;;  %490 = vmatprep.mubr.f32.mxu0 %v7364_v0  ;;  %703 = vmatprep.mubr.f32.mxu1 %v7364_v0  ;;  %v5326_v4 = vpack.c.bf16 %v347_v2, %v338_v1  ;;  %v346_v5 = vld [vmem:[#allocation4 + $0x48] sm:$0xff]  ;;  %v356_v6 = vld [vmem:[#allocation4 + $0x98] sm:$0xff]  ;;  %vm5886_vm1 = vmmov 0   ;;  %s5887_s29 = smov 32  }
  0x84   : > { %v365_v7 = vld [vmem:[#allocation4 + $0xe0] sm:$0xff]  ;;  %v5328_v8 = vpack.c.bf16 %v346_v5, %v337_v3  ;;  %v355_v10 = vld [vmem:[#allocation4 + $0x90] sm:$0xff]  ;;  %v364_v11 = vld [vmem:[#allocation4 + $0xd8] sm:$0xff]  ;;  %v6149_v58 = vshrl.u32 %v377_v57, 7  ;;  %v783_v62 = vand.u32 127, %v377_v57  ;;  %s5888_s30 = smov 96  }
  0x85   : > { %v5330_v9 = vpack.c.bf16 %v365_v7, %v356_v6  ;;  %5327 = vmatprep.subr.bf16.mxu0 %v5326_v4  ;;  %v340_v12 = vld [vmem:[#allocation4 + $0x18] sm:$0xff]  ;;  %v349_v13 = vld [vmem:[#allocation4 + $0x60] sm:$0xff]  ;;  %v5332_v14 = vpack.c.bf16 %v364_v11, %v355_v10  ;;  %v339_v16 = vld [vmem:[#allocation4 + $0x10] sm:$0xff]  ;;  %s5889_s18 = smov 64   ;;  %vm1008_vm7 = vcmask 64512   ;;  %vm1363_vm8 = vcmask 1041409  }
  0x86   : > { %5329 = vmatpush1.bf16.msra.mxu0 %v5328_v8  ;;  %v5334_v15 = vpack.c.bf16 %v349_v13, %v340_v12  ;;  %v348_v17 = vld [vmem:[#allocation4 + $0x58] sm:$0xff]  ;;  %v358_v18 = vld [vmem:[#allocation4 + $0xa8] sm:$0xff]  ;;  %v367_v19 = vld [vmem:[#allocation4 + $0xf0] sm:$0xff]  ;;  %7388 = vst [vmem:[#allocation12_spill] sm:$0xff] %v6149_v58  ;;  %v6152_v59 = vsub.s32 0, %v6149_v58  ;;  %v785_v63 = vadd.s32 2, %v6149_v58  ;;  %vm784_vm2 = vcmp.ge.s32.totalorder %v783_v62, %v6149_v58 }
  0x87   : > { %5331 = vmatprep.subr.bf16.mxu0 %v5330_v9  ;;  %v6125_v20 = vld [vmem:[%s290_s20] sm:$0xff]  ;;  %v5336_v21 = vpack.c.bf16 %v348_v17, %v339_v16  ;;  %v5338_v22 = vpack.c.bf16 %v367_v19, %v358_v18  ;;  %v357_v23 = vld [vmem:[#allocation4 + $0xa0] sm:$0xff]  ;;  %v366_v24 = vld [vmem:[#allocation4 + $0xe8] sm:$0xff]  ;;  %v2222_v1 = vadd.s32 4, %v6149_v58  ;;  %v6175_v8 = vsub.s32 1, %v6149_v58  ;;  %p332_p5 = scmp.lt.s32.totalorder %s5950_s28, 1 }
  0x88   : > { %v342_v25 = vld [vmem:[#allocation4 + $0x28] sm:$0xff]  ;;  %v351_v26 = vld [vmem:[#allocation4 + $0x70] sm:$0xff]  ;;  %v5340_v27 = vpack.c.bf16 %v366_v24, %v357_v23  ;;  %v341_v29 = vld [vmem:[#allocation4 + $0x20] sm:$0xff]  ;;  %vm786_vm3 = vcmp.lt.s32.totalorder %v783_v62, %v785_v63  ;;  %v6178_v9 = vsub.s32 3, %v6149_v58  ;;  %v6188_v13 = vsub.s32 2, %v6149_v58 }
  0x89   : > { %v5342_v28 = vpack.c.bf16 %v351_v26, %v342_v25  ;;  %v350_v30 = vld [vmem:[#allocation4 + $0x68] sm:$0xff]  ;;  %v360_v31 = vld [vmem:[#allocation4 + $0xb8] sm:$0xff]  ;;  %v369_v32 = vld [vmem:[#allocation4 + $0x100] sm:$0xff]  ;;  %vm2223_vm4 = vcmp.lt.s32.totalorder %v783_v62, %v2222_v1  ;;  %7391 = vst [vmem:[#allocation13_spill] sm:$0xff] %v6175_v8  ;;  %vm1365_vm9 = vcmask 1042434   ;;  %vm1367_vm10 = vcmask 1043459  }
  0x8a   : > { %5333 = vmatpush1.bf16.msra.mxu0 %v5332_v14  ;;  %v5344_v33 = vpack.c.bf16 %v350_v30, %v341_v29  ;;  %v5346_v34 = vpack.c.bf16 %v369_v32, %v360_v31  ;;  %v359_v35 = vld [vmem:[#allocation4 + $0xb0] sm:$0xff]  ;;  %v368_v36 = vld [vmem:[#allocation4 + $0xf8] sm:$0xff]  ;;  %v345_v38 = vld [vmem:[#allocation4 + $0x40] sm:$0xff]  ;;  %7392 = vst [vmem:[#allocation14_spill] sm:$0xff] %v6178_v9  ;;  %vm1369_vm11 = vcmask 1044484   ;;  %vm1371_vm12 = vcmask 1045509  }
  0x8b   : > { %5335 = vmatprep.subr.bf16.mxu0 %v5334_v15  ;;  %v5348_v37 = vpack.c.bf16 %v368_v36, %v359_v35  ;;  %v354_v39 = vld [vmem:[#allocation4 + $0x88] sm:$0xff]  ;;  %v363_v42 = vld [vmem:[#allocation4 + $0xd0] sm:$0xff]  ;;  %v372_v43 = vld [vmem:[#allocation4 + $0x118] sm:$0xff]  ;;  %7394 = vst [vmem:[#allocation16_spill] sm:$0xff] %v6188_v13  ;;  %v6193_v15 = vsub.s32 4, %v6149_v58  ;;  %vm1373_vm13 = vcmask 1046534  }
  0x8c   : > { %v5359_v41 = vpack.c.bf16 %v354_v39, %v345_v38  ;;  %v5362_v44 = vpack.c.bf16 %v372_v43, %v363_v42  ;;  %v344_v45 = vld [vmem:[#allocation4 + $0x38] sm:$0xff]  ;;  %v353_v46 = vld [vmem:[#allocation4 + $0x80] sm:$0xff]  ;;  %v343_v47 = vld [vmem:[#allocation4 + $0x30] sm:$0xff]  ;;  %vm2148_vm14 = vcmask 1046528   ;;  %vm2144_vm15 = vcmask 56320   ;;  %s7420_s28 = smov (!%p332_p5, %s5950_s28), 1 }
  0x8d   : > { %4958 = vmatmul.mubr.msk.f32.vlgmr.msra.gmra.mrb[0].mxu0 %vm422_vm0, %v6125_v20  ;;  %v5350_v48 = vpack.c.bf16 %v353_v46, %v344_v45  ;;  %v352_v49 = vld [vmem:[#allocation4 + $0x78] sm:$0xff]  ;;  %v362_v50 = vld [vmem:[#allocation4 + $0xc8] sm:$0xff]  ;;  %v371_v51 = vld [vmem:[#allocation4 + $0x110] sm:$0xff]  ;;  %7396 = vst [vmem:[#allocation18_spill] sm:$0xff] %v6193_v15  ;;  %s4956_s9 = sshll.u32 %s7420_s28, 3 }
  0x8e   : > { %5337 = vmatpush1.bf16.msra.mxu0 %v5336_v21  ;;  %561 = vmatprep.mubr.f32.mxu0 %v7364_v0  ;;  %v5352_v52 = vpack.c.bf16 %v352_v49, %v343_v47  ;;  %v5354_v53 = vpack.c.bf16 %v371_v51, %v362_v50  ;;  %v361_v54 = vld [vmem:[#allocation4 + $0xc0] sm:$0xff]  ;;  %v370_v55 = vld [vmem:[#allocation4 + $0x108] sm:$0xff]  ;;  %vm787_vm5 = vmand %vm784_vm2, %vm786_vm3  ;;  %vm3366_vm3 = vcmask 39936   ;;  %s335_s16 = scalar_lea.vmem %s7358_s7, %s4956_s9 }
  0x8f   : > { %5339 = vmatprep.subr.bf16.mxu0 %v5338_v22  ;;  %5351 = vmatprep.subr.bf16.mxu1 %v5350_v48  ;;  %v5356_v56 = vpack.c.bf16 %v370_v55, %v361_v54  ;;  %v6154_v60 = vld [vmem:[#allocation6] sm:$0xff]  ;;  %v6164_v5 = vsel %vm787_vm5, 1.0, %v7364_v0  ;;  %vm6166_vm6 = vmand %vm784_vm2, %vm2223_vm4  ;;  %vm3370_vm2 = vcmask 1044480   ;;  %vm4753_vm4 = vcmask 785408  }
  0x90   : > { %5353 = vmatpush1.bf16.msra.mxu1 %v5352_v52  ;;  %v380_v61 = vrot.slane %v6154_v60, %v6152_v59  ;;  %v844_v7 = vrot.slane %v6164_v5, %v6152_v59  ;;  %v865_v10 = vrot.slane %v6164_v5, %v6178_v9  ;;  %v851_v11 = vrot.slane %v6164_v5, %v6175_v8 }
  0x91   : > { %5355 = vmatprep.subr.bf16.mxu1 %v5354_v53  ;;  %v858_v16 = vrot.slane %v6164_v5, %v6188_v13  ;;  %v396_v17 = vrot.slane %v6154_v60, %v6193_v15  ;;  %v790_v30 = vsub.f32 1.0, %v6164_v5 }
  0x92   : > { %5341 = vmatpush1.bf16.msra.mxu0 %v5340_v27 }
  0x93   : > { %5343 = vmatprep.subr.bf16.mxu0 %v5342_v28  ;;  %v5890_v28 = vmov 1966171168   ;;  %v791_v32 = vmul.f32 -1e+30, %v790_v30 }
  0x94   : > { %5357 = vmatpush1.bf16.msra.mxu1 %v5356_v56  ;;  %v795_v29 = vunpack.c.l.s4 %v5890_v28 }
  0x95   : > { %4959 = vmatmul.mubr.msk.f32.vlgmr.msra.gmra.mrb[2].mxu0 %vm422_vm0, %v6125_v20  ;;  %5126 = vmatprep.subr.mxu1 %v7364_v0  ;;  %v793_v35 = vcombine.high %v791_v32, %v791_v32 }
  0x96   : > { %5345 = vmatpush1.bf16.msra.mxu0 %v5344_v33  ;;  %632 = vmatprep.mubr.f32.mxu0 %v7364_v0  ;;  %v796_v31 = vunpack.c.0.s8 %v795_v29 }
  0x97   : > { %5347 = vmatprep.subr.bf16.mxu0 %v5346_v34  ;;  %4961 = vmatmul.mubr.msk.f32.vlgmr.msra.gmra.mrb[0].mxu1 %vm422_vm0, %v6125_v20 }
  0x98   : > { %5128 = vmatprep.mubr.msk.f32.mxu1 %vm5886_vm1, %v7364_v0  ;;  %v6235_v33 = vsub.s32 %v796_v31, %v6149_v58 }
  0x9a   : > { %5349 = vmatpush1.bf16.msra.mxu0 %v5348_v37  ;;  %v800_v34 = vrot.slane %v791_v32, %v6235_v33  ;;  %v807_v37 = vrot.slane %v793_v35, %v6235_v33 }
  0x9b   : > { %5358 = vmatprep.subr.bf16.mxu0 %v7362_v40 }
  0x9c   : > { %v808_v36 = vcombine.high %v800_v34, %v800_v34  ;;  %v816_v39 = vrot.slane %v800_v34, %v6235_v33  ;;  %v823_v47 = vrot.slane %v807_v37, %v6235_v33 }
  0x9d   : > { %4960 = vmatmul.mubr.msk.f32.vlgmr.msra.gmra.mrb[4].mxu0 %vm422_vm0, %v6125_v20 }
  0x9e   : > { %5360 = vmatpush3.bf16.msra.mxu0 %v5359_v41  ;;  %5118 = vmatprep.mubr.msk.f32.mxu0 %vm5886_vm1, %v7364_v0  ;;  %v830_v38 = vrot.slane %v808_v36, %v6235_v33  ;;  %v809_v41 = vcombine.high %v807_v37, %v807_v37  ;;  %v838_v43 = vcombine.high %v816_v39, %v816_v39 }
  0x9f   : > { %5361 = vmatprep.subr.bf16.mxu0 %v7362_v40  ;;  %v6245_v45 = vrot.slane %v816_v39, %v6152_v59  ;;  %v6265_v55 = vrot.slane %v823_v47, %v6152_v59  ;;  %v839_v56 = vcombine.high %v823_v47, %v823_v47 }
  0xa0   : > { %v840_v42 = vcombine.high %v830_v38, %v830_v38  ;;  %v837_v46 = vrot.slane %v809_v41, %v6235_v33  ;;  %v6253_v49 = vrot.slane %v838_v43, %v6152_v59 }
  0xa1   : > { %v6278_v1 = vrot.slane %v839_v56, %v6152_v59 }
  0xa2   : > { %5363 = vmatpush3.bf16.msra.mxu0 %v5362_v44  ;;  %v6242_v44 = vrot.slane %v830_v38, %v6152_v59  ;;  %v6250_v48 = vrot.slane %v840_v42, %v6152_v59  ;;  %v6262_v54 = vrot.slane %v837_v46, %v6152_v59 }
  0xa3   : > { %5121 = vmatprep.subr.mxu0 %v7364_v0 }
  0xa5   : > { %5119 = vmatmul.mubr.msk.f32.vlgmr.msra.gmra.mrb[6].mxu0 %vm422_vm0, %v6125_v20 }
  0xa6   : > { %5123 = vmatprep.mubr.msk.f32.mxu0 %vm5886_vm1, %v7364_v0 }
 0x160   : > { %v492_v2 = vpop.f32.mrb[0].mxu0 }
 0x161   : > { %v493_v3 = vadd.f32 %v492_v2, %v380_v61  ;;  %v6161_v4 = vpop.f32.mrb[1].mxu0 }
 0x163   : > { %1839 = vrot.lane.b32.xlu1 %v493_v3, %s5887_s29  ;;  %1142 = vrot.lane.b32.xlu0 %v493_v3, %s5888_s30 }
 0x167   : > { %1536 = vrot.lane.b32.xlu0 %v493_v3, %s5889_s18  ;;  %846 = vbcast.lane.b32.xlu1 %v844_v7, 256 }
 0x168   : > { %v6185_v12 = vpop.f32.mrb[2].mxu0 }
 0x169   : > { %7393 = vst [vmem:[#allocation15_spill] sm:$0xff] %v6185_v12  ;;  %v6190_v14 = vpop.f32.mrb[3].mxu0 }
 0x16a   : > { %7395 = vst [vmem:[#allocation17_spill] sm:$0xff] %v6190_v14  ;;  %v6220_v25 = vpop.f32.mrb[0].mxu1 }
 0x16b   : > { %867 = vbcast.lane.b32.xlu1 %v865_v10, 256  ;;  %853 = vbcast.lane.b32.xlu0 %v851_v11, 256  ;;  %7399 = vst [vmem:[#allocation21_spill] sm:$0xff] %v6220_v25  ;;  %v6223_v26 = vpop.f32.mrb[1].mxu1 }
 0x16c   : > { %7400 = vst [vmem:[#allocation22_spill] sm:$0xff] %v6223_v26 }
 0x16f   : > { %860 = vbcast.lane.b32.xlu0 %v858_v16, 256 }
 0x170   : > { %v634_v18 = vpop.f32.mrb[4].mxu0 }
 0x171   : > { %v6199_v19 = vadd.f32 %v634_v18, %v396_v17  ;;  %v6201_v20 = vpop.f32.mrb[5].mxu0 }
 0x173   : > { %7397 = vst [vmem:[#allocation19_spill] sm:$0xff] %v6199_v19  ;;  %5122 = vmatpush3.xpose.msk.msra.mxu0 %vm422_vm0, %v6199_v19  ;;  %5127 = vmatpush3.xpose.msk.msra.mxu1 %vm422_vm0, %v6199_v19 }
 0x174   : > { %5141 = vmatprep.subr.mxu1 %v7364_v0  ;;  %5131 = vmatprep.subr.mxu0 %v7364_v0 }
 0x176   : > { %5124 = vmatmul.mubr.msk.f32.vlgmr.msra.gmra.mrb[8].mxu0 %vm422_vm0, %v493_v3 }
 0x177   : > { %5133 = vmatprep.mubr.msk.f32.mxu0 %vm5886_vm1, %v7364_v0 }
 0x178   : > { %v6212_v21 = vpop.f32.mrb[6].mxu0 }
 0x179   : > { %7398 = vst [vmem:[#allocation20_spill] sm:$0xff] %v6212_v21  ;;  %v5120_v22 = vpop.f32.mrb[7].mxu0 }
 0x1d5   : > { %v1143_v23 = vpop.permute.xlu0 %1142  ;;  %v1840_v27 = vpop.permute.xlu1 %1839 }
 0x1d6   : > { %5129 = vmatmul.mubr.msk.f32.vlgmr.msra.gmra.mrb[2].mxu1 %vm422_vm0, %v1143_v23 }
 0x1d7   : > { %5142 = vmatpush3.xpose.msk.msra.mxu1 %vm422_vm0, %v6199_v19  ;;  %5143 = vmatprep.mubr.msk.f32.mxu1 %vm5886_vm1, %v7364_v0 }
 0x1d8   : > { %5151 = vmatprep.subr.mxu1 %v7364_v0 }
 0x1d9   : > { %v1537_v24 = vpop.permute.xlu0 %1536 }
 0x1da   : > { %5144 = vmatmul.mubr.msk.f32.vlgmr.msra.gmra.mrb[4].mxu1 %vm422_vm0, %v1537_v24 }
 0x1db   : > { %5152 = vmatpush3.xpose.msk.msra.mxu1 %vm422_vm0, %v6199_v19  ;;  %5153 = vmatprep.mubr.msk.f32.mxu1 %vm5886_vm1, %v7364_v0 }
 0x1dc   : > { %5161 = vmatprep.subr.mxu1 %v7364_v0 }
 0x1de   : > { %5154 = vmatmul.mubr.msk.f32.vlgmr.msra.gmra.mrb[6].mxu1 %vm422_vm0, %v1840_v27 }
 0x1df   : > { %5163 = vmatprep.mubr.msk.f32.mxu1 %vm5886_vm1, %v7364_v0 }
 0x249   : > { %v962_v50 = vpop.f32.mrb[8].mxu0 }
 0x24a   : > { %v5125_v51 = vpop.f32.mrb[9].mxu0  ;;  %v6256_v52 = vadd.f32 %v6242_v44, %v962_v50  ;;  %v6259_v53 = vadd.f32 %v6245_v45, %v962_v50  ;;  %v6272_v62 = vadd.f32 %v6250_v48, %v962_v50  ;;  %v6275_v63 = vadd.f32 %v6253_v49, %v962_v50 }
 0x24b   : > { %v6285_v7 = vadd.f32 %v6262_v54, %v962_v50  ;;  %v6288_v10 = vadd.f32 %v6265_v55, %v962_v50  ;;  %v6295_v17 = vadd.f32 %v6278_v1, %v962_v50 }
 0x24c   : > { %v1012_v57 = vsel %vm1008_vm7, %v6256_v52, -inf  ;;  %v1009_v61 = vsel %vm1008_vm7, %v6259_v53, -inf  ;;  %v1018_v2 = vsel %vm1008_vm7, %v6272_v62, -inf  ;;  %v1015_v3 = vsel %vm1008_vm7, %v6275_v63, -inf }
 0x24d   : > { %1013 = vmax.xlane.f32.xlu0 %v1012_v57  ;;  %1010 = vmax.xlane.f32.xlu1 %v1009_v61  ;;  %v1024_v11 = vsel %vm1008_vm7, %v6285_v7, -inf  ;;  %v1021_v16 = vsel %vm1008_vm7, %v6288_v10, -inf  ;;  %v1027_v18 = vsel %vm1008_vm7, %v6295_v17, -inf }
 0x251   : > { %1019 = vmax.xlane.f32.xlu0 %v1018_v2  ;;  %1016 = vmax.xlane.f32.xlu1 %v1015_v3 }
 0x255   : > { %1025 = vmax.xlane.f32.xlu0 %v1024_v11  ;;  %1022 = vmax.xlane.f32.xlu1 %v1021_v16 }
 0x259   : > { %1028 = vmax.xlane.f32.xlu1 %v1027_v18 }
 0x2a9   : > { %v1212_v22 = vpop.f32.mrb[2].mxu1 }
 0x2aa   : > { %v5130_v23 = vpop.f32.mrb[3].mxu1  ;;  %v6300_v24 = vadd.f32 %v1212_v22, %v6242_v44  ;;  %v6303_v27 = vadd.f32 %v1212_v22, %v6245_v45  ;;  %v6310_v30 = vadd.f32 %v1212_v22, %v6253_v49  ;;  %v6313_v31 = vadd.f32 %v1212_v22, %v6250_v48 }
 0x2ab   : > { %v6320_v37 = vadd.f32 %v1212_v22, %v6265_v55  ;;  %v6323_v38 = vadd.f32 %v1212_v22, %v6262_v54  ;;  %v6330_v46 = vadd.f32 %v1212_v22, %v6278_v1 }
 0x2ac   : > { %v1226_v28 = vsel %vm1008_vm7, %v6300_v24, -inf  ;;  %v1223_v29 = vsel %vm1008_vm7, %v6303_v27, -inf  ;;  %v1229_v35 = vsel %vm1008_vm7, %v6310_v30, -inf  ;;  %v1232_v36 = vsel %vm1008_vm7, %v6313_v31, -inf }
 0x2ad   : > { %v1606_v32 = vpop.f32.mrb[4].mxu1  ;;  %1227 = vmax.xlane.f32.xlu0 %v1226_v28  ;;  %1224 = vmax.xlane.f32.xlu1 %v1223_v29  ;;  %v1235_v42 = vsel %vm1008_vm7, %v6320_v37, -inf  ;;  %v1238_v43 = vsel %vm1008_vm7, %v6323_v38, -inf  ;;  %v1241_v50 = vsel %vm1008_vm7, %v6330_v46, -inf }
 0x2ae   : > { %v5145_v34 = vpop.f32.mrb[5].mxu1  ;;  %v6333_v47 = vadd.f32 %v1606_v32, %v6242_v44  ;;  %v6340_v56 = vadd.f32 %v1606_v32, %v6245_v45  ;;  %v6343_v57 = vadd.f32 %v1606_v32, %v6250_v48  ;;  %v6350_v3 = vadd.f32 %v1606_v32, %v6253_v49 }
 0x2af   : > { %v6353_v11 = vadd.f32 %v1606_v32, %v6262_v54  ;;  %v6360_v22 = vadd.f32 %v1606_v32, %v6265_v55  ;;  %v6370_v34 = vadd.f32 %v1606_v32, %v6278_v1 }
 0x2b0   : > { %v1620_v51 = vsel %vm1008_vm7, %v6333_v47, -inf  ;;  %v1617_v61 = vsel %vm1008_vm7, %v6340_v56, -inf  ;;  %v1626_v2 = vsel %vm1008_vm7, %v6343_v57, -inf  ;;  %v1623_v16 = vsel %vm1008_vm7, %v6350_v3, -inf }
 0x2b1   : > { %v1909_v39 = vpop.f32.mrb[6].mxu1  ;;  %1230 = vmax.xlane.f32.xlu0 %v1229_v35  ;;  %1233 = vmax.xlane.f32.xlu1 %v1232_v36  ;;  %v1632_v18 = vsel %vm1008_vm7, %v6353_v11, -inf  ;;  %v1629_v28 = vsel %vm1008_vm7, %v6360_v22, -inf }
 0x2b2   : > { %v5155_v41 = vpop.f32.mrb[7].mxu1  ;;  %v6363_v23 = vadd.f32 %v1909_v39, %v6245_v45  ;;  %v6373_v35 = vadd.f32 %v1909_v39, %v6253_v49  ;;  %v1635_v45 = vsel %vm1008_vm7, %v6370_v34, -inf }
 0x2b3   : > { %v6380_v41 = vadd.f32 %v1909_v39, %v6242_v44  ;;  %v6395_v44 = vpop.permute.xlu1 %846 }
 0x2b4   : > { %v1920_v29 = vsel %vm1008_vm7, %v6363_v23, -inf  ;;  %v1926_v36 = vsel %vm1008_vm7, %v6373_v35, -inf }
 0x2b5   : > { %1236 = vmax.xlane.f32.xlu0 %v1235_v42  ;;  %1239 = vmax.xlane.f32.xlu1 %v1238_v43  ;;  %v6383_v42 = vadd.f32 %v1909_v39, %v6265_v55  ;;  %v1923_v49 = vsel %vm1008_vm7, %v6380_v41, -inf  ;;  %v6390_v43 = vadd.f32 %v1909_v39, %v6250_v48  ;;  %v6397_v55 = vpop.permute.xlu0 %853 }
 0x2b7   : > { %v1932_v32 = vsel %vm1008_vm7, %v6383_v42, -inf }
 0x2b9   : > { %1242 = vmax.xlane.f32.xlu0 %v1241_v50  ;;  %1621 = vmax.xlane.f32.xlu1 %v1620_v51  ;;  %v6393_v50 = vadd.f32 %v1909_v39, %v6278_v1  ;;  %v1929_v51 = vsel %vm1008_vm7, %v6390_v43, -inf  ;;  %v6408_v1 = vpop.permute.xlu1 %867 }
 0x2bd   : > { %1618 = vmax.xlane.f32.xlu0 %v1617_v61  ;;  %1627 = vmax.xlane.f32.xlu1 %v1626_v2  ;;  %v1938_v61 = vsel %vm1008_vm7, %v6393_v50, -inf  ;;  %v6404_v2 = vadd.f32 %v1909_v39, %v6262_v54 }
 0x2bf   : > { %v1935_v48 = vsel %vm1008_vm7, %v6404_v2, -inf }
 0x2c1   : > { %1624 = vmax.xlane.f32.xlu0 %v1623_v16  ;;  %1633 = vmax.xlane.f32.xlu1 %v1632_v18  ;;  %v6410_v16 = vpop.permute.xlu0 %860 }
 0x2c5   : > { %1630 = vmax.xlane.f32.xlu0 %v1629_v28  ;;  %1921 = vmax.xlane.f32.xlu1 %v1920_v29 }
 0x2c9   : > { %1636 = vmax.xlane.f32.xlu0 %v1635_v45  ;;  %1927 = vmax.xlane.f32.xlu1 %v1926_v36 }
 0x2cd   : > { %1924 = vmax.xlane.f32.xlu0 %v1923_v49  ;;  %1933 = vmax.xlane.f32.xlu1 %v1932_v32 }
 0x2d1   : > { %1930 = vmax.xlane.f32.xlu0 %v1929_v51  ;;  %1939 = vmax.xlane.f32.xlu1 %v1938_v61 }
 0x2d5   : > { %1936 = vmax.xlane.f32.xlu0 %v1935_v48 }
 0x2da   : > { %v1014_v18 = vpop.xlane.xlu0 %1013  ;;  %v1011_v28 = vpop.xlane.xlu1 %1010 }
 0x2db   : > { %v1031_v29 = vsub.f32 %v6256_v52, %v1014_v18  ;;  %v1030_v45 = vsub.f32 %v6259_v53, %v1011_v28 }
 0x2dd   : > { %v1039_v36 = vmul.f32 1.442695, %v1031_v29  ;;  %v1037_v49 = vmul.f32 1.442695, %v1030_v45 }
 0x2de   : > { %v1020_v54 = vpop.xlane.xlu0 %1019  ;;  %v1017_v39 = vpop.xlane.xlu1 %1016 }
 0x2df   : > { %5493 = vpow2.f32 %v1039_v36  ;;  %v1033_v32 = vsub.f32 %v6272_v62, %v1020_v54  ;;  %v1032_v51 = vsub.f32 %v6275_v63, %v1017_v39 }
 0x2e0   : > { %5495 = vpow2.f32 %v1037_v49 }
 0x2e1   : > { %v1043_v61 = vmul.f32 1.442695, %v1033_v32  ;;  %v1041_v40 = vmul.f32 1.442695, %v1032_v51 }
 0x2e2   : > { %v1026_v0 = vpop.xlane.xlu0 %1025  ;;  %v1023_v48 = vpop.xlane.xlu1 %1022 }
 0x2e3   : > { %5497 = vpow2.f32 %v1043_v61  ;;  %v1035_v21 = vsub.f32 %v6285_v7, %v1026_v0  ;;  %v1034_v52 = vsub.f32 %v6288_v10, %v1023_v48 }
 0x2e4   : > { %5499 = vpow2.f32 %v1041_v40 }
 0x2e5   : > { %v1047_v53 = vmul.f32 1.442695, %v1035_v21  ;;  %v1045_v18 = vmul.f32 1.442695, %v1034_v52 }
 0x2e6   : > { %v1029_v28 = vpop.xlane.xlu1 %1028 }
 0x2e7   : > { %5501 = vpow2.f32 %v1047_v53  ;;  %v1036_v29 = vsub.f32 %v6295_v17, %v1029_v28 }
 0x2e8   : > { %5503 = vpow2.f32 %v1045_v18 }
 0x2e9   : > { %v6419_v62 = vpop.eup %5493  ;;  %v1049_v63 = vmul.f32 1.442695, %v1036_v29 }
 0x2ea   : > { %v6421_v45 = vpop.eup %5495  ;;  %v1054_v36 = vsel %vm1008_vm7, %v6419_v62, 0.0 }
 0x2eb   : > { %5505 = vpow2.f32 %v1049_v63  ;;  %1055 = vadd.xlane.f32.xlu0 %v1054_v36  ;;  %v1051_v0 = vsel %vm1008_vm7, %v6421_v45, 0.0 }
 0x2ec   : > { %1052 = vadd.xlane.f32.xlu1 %v1051_v0 }
 0x2ed   : > { %v6427_v40 = vpop.eup %5497 }
 0x2ee   : > { %v6429_v21 = vpop.eup %5499  ;;  %v1060_v7 = vsel %vm1008_vm7, %v6427_v40, 0.0 }
 0x2ef   : > { %1061 = vadd.xlane.f32.xlu0 %v1060_v7  ;;  %v1057_v10 = vsel %vm1008_vm7, %v6429_v21, 0.0 }
 0x2f0   : > { %1058 = vadd.xlane.f32.xlu1 %v1057_v10 }
 0x2f1   : > { %v6435_v17 = vpop.eup %5501 }
 0x2f2   : > { %v6437_v49 = vpop.eup %5503  ;;  %v1066_v54 = vsel %vm1008_vm7, %v6435_v17, 0.0 }
 0x2f3   : > { %1067 = vadd.xlane.f32.xlu0 %v1066_v54  ;;  %v1063_v39 = vsel %vm1008_vm7, %v6437_v49, 0.0 }
 0x2f4   : > { %1064 = vadd.xlane.f32.xlu1 %v1063_v39 }
 0x2f5   : > { %v6443_v32 = vpop.eup %5505 }
 0x2f6   : > { %v1069_v51 = vsel %vm1008_vm7, %v6443_v32, 0.0 }
 0x2f8   : > { %1070 = vadd.xlane.f32.xlu1 %v1069_v51 }
 0x33a   : > { %v1228_v61 = vpop.xlane.xlu0 %1227  ;;  %v1225_v48 = vpop.xlane.xlu1 %1224 }
 0x33b   : > { %v1245_v52 = vsub.f32 %v6300_v24, %v1228_v61  ;;  %v1244_v53 = vsub.f32 %v6303_v27, %v1225_v48 }
 0x33d   : > { %v1253_v18 = vmul.f32 1.442695, %v1245_v52  ;;  %v1251_v28 = vmul.f32 1.442695, %v1244_v53 }
 0x33e   : > { %v1231_v29 = vpop.xlane.xlu0 %1230  ;;  %v1234_v63 = vpop.xlane.xlu1 %1233 }
 0x33f   : > { %5507 = vpow2.f32 %v1253_v18  ;;  %v1246_v36 = vsub.f32 %v6310_v30, %v1231_v29  ;;  %v1247_v0 = vsub.f32 %v6313_v31, %v1234_v63 }
 0x340   : > { %5509 = vpow2.f32 %v1251_v28 }
 0x341   : > { %v1255_v7 = vmul.f32 1.442695, %v1246_v36  ;;  %v1257_v10 = vmul.f32 1.442695, %v1247_v0 }
 0x342   : > { %v1237_v54 = vpop.xlane.xlu0 %1236  ;;  %v1240_v39 = vpop.xlane.xlu1 %1239 }
 0x343   : > { %5511 = vpow2.f32 %v1255_v7  ;;  %v1248_v51 = vsub.f32 %v6320_v37, %v1237_v54  ;;  %v1249_v24 = vsub.f32 %v6323_v38, %v1240_v39 }
 0x344   : > { %5513 = vpow2.f32 %v1257_v10 }
 0x345   : > { %v1259_v27 = vmul.f32 1.442695, %v1248_v51  ;;  %v1261_v61 = vmul.f32 1.442695, %v1249_v24 }
 0x346   : > { %v1243_v48 = vpop.xlane.xlu0 %1242  ;;  %v1622_v52 = vpop.xlane.xlu1 %1621 }
 0x347   : > { %5515 = vpow2.f32 %v1259_v27  ;;  %v1250_v30 = vsub.f32 %v6330_v46, %v1243_v48  ;;  %v1639_v31 = vsub.f32 %v6333_v47, %v1622_v52 }
 0x348   : > { %5517 = vpow2.f32 %v1261_v61 }
 0x349   : > { %v6455_v53 = vpop.eup %5507  ;;  %v1263_v18 = vmul.f32 1.442695, %v1250_v30  ;;  %v1647_v28 = vmul.f32 1.442695, %v1639_v31 }
 0x34a   : > { %v6457_v29 = vpop.eup %5509  ;;  %v1619_v37 = vpop.xlane.xlu0 %1618  ;;  %v1268_v38 = vsel %vm1008_vm7, %v6455_v53, 0.0 }
 0x34b   : > { %v1628_v63 = vpop.xlane.xlu1 %1627  ;;  %5519 = vpow2.f32 %v1263_v18  ;;  %v1638_v36 = vsub.f32 %v6340_v56, %v1619_v37  ;;  %1269 = vadd.xlane.f32.xlu1 %v1268_v38  ;;  %v1265_v46 = vsel %vm1008_vm7, %v6457_v29, 0.0 }
 0x34c   : > { %v1641_v0 = vsub.f32 %v6343_v57, %v1628_v63  ;;  %5521 = vpow2.f32 %v1647_v28  ;;  %1266 = vadd.xlane.f32.xlu0 %v1265_v46 }
 0x34d   : > { %v6465_v47 = vpop.eup %5511  ;;  %v1645_v7 = vmul.f32 1.442695, %v1638_v36 }
 0x34e   : > { %v1651_v10 = vmul.f32 1.442695, %v1641_v0  ;;  %v6467_v54 = vpop.eup %5513  ;;  %v1625_v39 = vpop.xlane.xlu0 %1624  ;;  %v1271_v24 = vsel %vm1008_vm7, %v6465_v47, 0.0 }
 0x34f   : > { %v1634_v51 = vpop.xlane.xlu1 %1633  ;;  %5523 = vpow2.f32 %v1645_v7  ;;  %v1640_v56 = vsub.f32 %v6350_v3, %v1625_v39  ;;  %v1274_v27 = vsel %vm1008_vm7, %v6467_v54, 0.0 }
 0x350   : > { %v1643_v57 = vsub.f32 %v6353_v11, %v1634_v51  ;;  %5525 = vpow2.f32 %v1651_v10  ;;  %1272 = vadd.xlane.f32.xlu0 %v1271_v24  ;;  %1275 = vadd.xlane.f32.xlu1 %v1274_v27 }
 0x351   : > { %v6475_v61 = vpop.eup %5515  ;;  %v1649_v48 = vmul.f32 1.442695, %v1640_v56 }
 0x352   : > { %v1655_v52 = vmul.f32 1.442695, %v1643_v57  ;;  %v6477_v30 = vpop.eup %5517  ;;  %v1631_v31 = vpop.xlane.xlu0 %1630  ;;  %v1277_v28 = vsel %vm1008_vm7, %v6475_v61, 0.0 }
 0x353   : > { %v1922_v18 = vpop.xlane.xlu1 %1921  ;;  %5527 = vpow2.f32 %v1649_v48  ;;  %v1642_v3 = vsub.f32 %v6360_v22, %v1631_v31  ;;  %v1280_v37 = vsel %vm1008_vm7, %v6477_v30, 0.0 }
 0x354   : > { %v1941_v11 = vsub.f32 %v6363_v23, %v1922_v18  ;;  %5529 = vpow2.f32 %v1655_v52  ;;  %1278 = vadd.xlane.f32.xlu0 %v1277_v28  ;;  %1281 = vadd.xlane.f32.xlu1 %v1280_v37 }
 0x355   : > { %v6485_v63 = vpop.eup %5519  ;;  %v1653_v38 = vmul.f32 1.442695, %v1642_v3 }
 0x356   : > { %v1948_v36 = vmul.f32 1.442695, %v1941_v11  ;;  %v6487_v0 = vpop.eup %5521  ;;  %v1637_v46 = vpop.xlane.xlu0 %1636  ;;  %v1283_v10 = vsel %vm1008_vm7, %v6485_v63, 0.0 }
 0x357   : > { %v1928_v7 = vpop.xlane.xlu1 %1927  ;;  %5531 = vpow2.f32 %v1653_v38  ;;  %v1644_v22 = vsub.f32 %v6370_v34, %v1637_v46  ;;  %v1662_v39 = vsel %vm1008_vm7, %v6487_v0, 0.0 }
 0x358   : > { %v1943_v23 = vsub.f32 %v6373_v35, %v1928_v7  ;;  %5533 = vpow2.f32 %v1948_v36  ;;  %1284 = vadd.xlane.f32.xlu0 %v1283_v10  ;;  %1663 = vadd.xlane.f32.xlu1 %v1662_v39 }
 0x359   : > { %v6495_v51 = vpop.eup %5523  ;;  %v1657_v24 = vmul.f32 1.442695, %v1644_v22 }
 0x35a   : > { %v1952_v56 = vmul.f32 1.442695, %v1943_v23  ;;  %v6497_v57 = vpop.eup %5525  ;;  %v1925_v27 = vpop.xlane.xlu0 %1924  ;;  %v1659_v52 = vsel %vm1008_vm7, %v6495_v51, 0.0 }
 0x35b   : > { %v1934_v48 = vpop.xlane.xlu1 %1933  ;;  %5535 = vpow2.f32 %v1657_v24  ;;  %v1942_v34 = vsub.f32 %v6380_v41, %v1925_v27  ;;  %v1668_v31 = vsel %vm1008_vm7, %v6497_v57, 0.0 }
 0x35c   : > { %v1945_v35 = vsub.f32 %v6383_v42, %v1934_v48  ;;  %5537 = vpow2.f32 %v1952_v56  ;;  %1660 = vadd.xlane.f32.xlu0 %v1659_v52  ;;  %1669 = vadd.xlane.f32.xlu1 %v1668_v31 }
 0x35d   : > { %v6505_v18 = vpop.eup %5527  ;;  %v1950_v28 = vmul.f32 1.442695, %v1942_v34 }
 0x35e   : > { %v1956_v3 = vmul.f32 1.442695, %v1945_v35  ;;  %v6507_v11 = vpop.eup %5529  ;;  %v1931_v37 = vpop.xlane.xlu0 %1930  ;;  %v1665_v38 = vsel %vm1008_vm7, %v6505_v18, 0.0 }
 0x35f   : > { %5539 = vpow2.f32 %v1950_v28  ;;  %v1944_v41 = vsub.f32 %v6390_v43, %v1931_v37  ;;  %v1940_v42 = vpop.xlane.xlu1 %1939  ;;  %v1674_v36 = vsel %vm1008_vm7, %v6507_v11, 0.0 }
 0x360   : > { %5541 = vpow2.f32 %v1956_v3  ;;  %1666 = vadd.xlane.f32.xlu0 %v1665_v38  ;;  %1675 = vadd.xlane.f32.xlu1 %v1674_v36  ;;  %v1947_v22 = vsub.f32 %v6393_v50, %v1940_v42  ;;  %v399_v36 = vsub.s32 5, %v6149_v58 }
 0x361   : > { %v6514_v46 = vpop.eup %5531  ;;  %v1954_v7 = vmul.f32 1.442695, %v1944_v41 }
 0x362   : > { %v6516_v10 = vpop.eup %5533  ;;  %v1937_v23 = vpop.xlane.xlu0 %1936  ;;  %v1671_v39 = vsel %vm1008_vm7, %v6514_v46, 0.0  ;;  %v1960_v52 = vmul.f32 1.442695, %v1947_v22  ;;  %v879_v22 = vrot.slane %v6164_v5, %v399_v36 }
 0x363   : > { %5543 = vpow2.f32 %v1954_v7  ;;  %v1946_v43 = vsub.f32 %v6404_v2, %v1937_v23  ;;  %v1962_v24 = vsel %vm1008_vm7, %v6516_v10, 0.0  ;;  %v7366_v23 = vsub.s32 6, %v6149_v58 }
 0x364   : > { %1672 = vadd.xlane.f32.xlu0 %v1671_v39  ;;  %1963 = vadd.xlane.f32.xlu1 %v1962_v24 }
 0x365   : > { %v6524_v56 = vpop.eup %5535  ;;  %v1958_v27 = vmul.f32 1.442695, %v1946_v43  ;;  %v886_v39 = vrot.slane %v6164_v5, %v7366_v23  ;;  %v400_v43 = vrot.slane %v6154_v60, %v399_v36 }
 0x366   : > { %v6526_v48 = vpop.eup %5537  ;;  %v1677_v50 = vsel %vm1008_vm7, %v6524_v56, 0.0 }
 0x367   : > { %5545 = vpow2.f32 %v1958_v27  ;;  %v1968_v34 = vsel %vm1008_vm7, %v6526_v48, 0.0  ;;  %v6560_v24 = vadd.f32 %v6201_v20, %v400_v43  ;;  %v872_v27 = vrot.slane %v6164_v5, %v6193_v15 }
 0x368   : > { %1678 = vadd.xlane.f32.xlu0 %v1677_v50  ;;  %1969 = vadd.xlane.f32.xlu1 %v1968_v34  ;;  %5547 = vpow2.f32 %v1960_v52  ;;  %v384_v52 = vrot.slane %v6154_v60, %v6175_v8 }
 0x369   : > { %v6532_v2 = vpop.eup %5539 }
 0x36a   : > { %v6534_v35 = vpop.eup %5541  ;;  %v1965_v31 = vsel %vm1008_vm7, %v6532_v2, 0.0  ;;  %v6573_v50 = vadd.f32 %v6161_v4, %v384_v52 }
 0x36b   : > { %v1974_v28 = vsel %vm1008_vm7, %v6534_v35, 0.0 }
 0x36c   : > { %1966 = vadd.xlane.f32.xlu0 %v1965_v31  ;;  %1975 = vadd.xlane.f32.xlu1 %v1974_v28 }
 0x36d   : > { %v6540_v3 = vpop.eup %5543 }
 0x36e   : > { %v1971_v37 = vsel %vm1008_vm7, %v6540_v3, 0.0 }
 0x370   : > { %1972 = vadd.xlane.f32.xlu0 %v1971_v37 }
 0x371   : > { %v6544_v38 = vpop.eup %5545 }
 0x372   : > { %v1977_v41 = vsel %vm1008_vm7, %v6544_v38, 0.0  ;;  %v6548_v42 = vpop.eup %5547 }
 0x373   : > { %v1980_v7 = vsel %vm1008_vm7, %v6548_v42, 0.0 }
 0x374   : > { %1978 = vadd.xlane.f32.xlu0 %v1977_v41 }
 0x378   : > { %1981 = vadd.xlane.f32.xlu0 %v1980_v7  ;;  %v1056_v20 = vpop.xlane.xlu0 %1055 }
 0x379   : > { %v1053_v60 = vpop.xlane.xlu1 %1052  ;;  %5549 = vrcp.f32 %v1056_v20 }
 0x37a   : > { %5551 = vrcp.f32 %v1053_v60 }
 0x37c   : > { %v1062_v4 = vpop.xlane.xlu0 %1061 }
 0x37d   : > { %881 = vbcast.lane.b32.xlu1 %v879_v22, 256  ;;  %v1059_v5 = vpop.xlane.xlu1 %1058 }
 0x37e   : > { %5553 = vrcp.f32 %v1059_v5 }
 0x37f   : > { %5555 = vrcp.f32 %v1062_v4 }
 0x380   : > { %v6587_v28 = vpop.xlane.xlu0 %1067 }
 0x381   : > { %888 = vbcast.lane.b32.xlu1 %v886_v39, 256  ;;  %v6583_v34 = vpop.xlane.xlu1 %1064 }
 0x383   : > { %v5550_v37 = vpop.eup %5549 }
 0x384   : > { %v5552_v36 = vpop.eup %5551  ;;  %v1080_v7 = vmul.f32 %v5550_v37, %v6419_v62 }
 0x385   : > { %1376 = vrot.lane.b32.xlu1 %v6560_v24, %s5888_s30  ;;  %v6585_v31 = vpop.xlane.xlu1 %1070  ;;  %v1079_v43 = vmul.f32 %v5552_v36, %v6421_v45 }
 0x387   : > { %v1086_v4 = vmul.f32 %v1079_v43, %v6395_v44 }
 0x388   : > { %v5554_v39 = vpop.eup %5553 }
 0x389   : > { %1763 = vrot.lane.b32.xlu1 %v6560_v24, %s5889_s18  ;;  %v5556_v5 = vpop.eup %5555  ;;  %v1081_v20 = vmul.f32 %v5554_v39, %v6429_v21  ;;  %v1093_v26 = vsel %vm1008_vm7, %v1086_v4, 0.0 }
 0x38a   : > { %v1082_v62 = vmul.f32 %v5556_v5, %v6427_v40  ;;  %v1094_v40 = vrot.slane %v1093_v26, 4 }
 0x38b   : > { %v1088_v45 = vmul.f32 %v1081_v20, %v6410_v16 }
 0x38c   : > { %v1095_v25 = vadd.f32 %v1094_v40, %v1093_v26 }
 0x38d   : > { %2304 = vrot.lane.b32.xlu1 %v6199_v19, %s5888_s30 }
 0x38e   : > { %874 = vbcast.lane.b32.xlu0 %v872_v27, 256  ;;  %v1087_v27 = vmul.f32 %v1080_v7, %v6397_v55 }
 0x390   : > { %v1100_v23 = vsel %vm1008_vm7, %v1087_v27, 0.0 }
 0x391   : > { %2846 = vrot.lane.b32.xlu1 %v6573_v50, %s5889_s18  ;;  %v1101_v7 = vrot.slane %v1100_v23, 4 }
 0x392   : > { %2066 = vrot.lane.b32.xlu0 %v6560_v24, %s5887_s29 }
 0x393   : > { %v1102_v14 = vadd.f32 %v1101_v7, %v1100_v23 }
 0x395   : > { %v1103_v7 = vrot.slane %v1102_v14, 2 }
 0x396   : > { %2506 = vrot.lane.b32.xlu0 %v6573_v50, %s5888_s30 }
 0x39a   : > { %3105 = vrot.lane.b32.xlu0 %v6573_v50, %s5887_s29 }
 0x3d8   : > { %v1270_v41 = vpop.xlane.xlu1 %1269 }
 0x3d9   : > { %v1267_v22 = vpop.xlane.xlu0 %1266  ;;  %5557 = vrcp.f32 %v1270_v41 }
 0x3da   : > { %5559 = vrcp.f32 %v1267_v22 }
 0x3dd   : > { %v1273_v52 = vpop.xlane.xlu0 %1272  ;;  %v1276_v60 = vpop.xlane.xlu1 %1275 }
 0x3de   : > { %5561 = vrcp.f32 %v1273_v52  ;;  %v1089_v52 = vmul.f32 %v1082_v62, %v6408_v1 }
 0x3df   : > { %5563 = vrcp.f32 %v1276_v60  ;;  %v1107_v60 = vsel %vm1008_vm7, %v1088_v45, 0.0 }
 0x3e0   : > { %v1114_v12 = vsel %vm1008_vm7, %v1089_v52, 0.0 }
 0x3e1   : > { %v6596_v37 = vpop.xlane.xlu0 %1278  ;;  %v1282_v41 = vpop.xlane.xlu1 %1281  ;;  %v1115_v45 = vrot.slane %v1114_v12, 4 }
 0x3e3   : > { %v5558_v22 = vpop.eup %5557  ;;  %v1116_v15 = vadd.f32 %v1115_v45, %v1114_v12 }
 0x3e4   : > { %v5560_v36 = vpop.eup %5559  ;;  %v1294_v39 = vmul.f32 %v5558_v22, %v6455_v53  ;;  %v1108_v22 = vrot.slane %v1107_v60, 4 }
 0x3e5   : > { %v1293_v21 = vmul.f32 %v5560_v36, %v6457_v29  ;;  %v6603_v43 = vpop.xlane.xlu0 %1284  ;;  %v1664_v27 = vpop.xlane.xlu1 %1663  ;;  %v1117_v45 = vrot.slane %v1116_v15, 2 }
 0x3e6   : > { %5565 = vrcp.f32 %v1664_v27  ;;  %v1301_v62 = vmul.f32 %v1294_v39, %v6397_v55  ;;  %v1109_v58 = vadd.f32 %v1108_v22, %v1107_v60 }
 0x3e7   : > { %v1300_v4 = vmul.f32 %v1293_v21, %v6395_v44 }
 0x3e8   : > { %v5562_v5 = vpop.eup %5561  ;;  %v1314_v21 = vsel %vm1008_vm7, %v1301_v62, 0.0  ;;  %v1110_v62 = vrot.slane %v1109_v58, 2 }
 0x3e9   : > { %v5564_v20 = vpop.eup %5563  ;;  %v1295_v29 = vmul.f32 %v5562_v5, %v6465_v47  ;;  %v1661_v36 = vpop.xlane.xlu0 %1660  ;;  %v1307_v52 = vsel %vm1008_vm7, %v1300_v4, 0.0  ;;  %v1096_v5 = vrot.slane %v1095_v25, 2 }
 0x3ea   : > { %v1670_v53 = vpop.xlane.xlu1 %1669  ;;  %v1296_v19 = vmul.f32 %v5564_v20, %v6467_v54  ;;  %5567 = vrcp.f32 %v1661_v36  ;;  %v1308_v54 = vrot.slane %v1307_v52, 4  ;;  %v1315_v20 = vrot.slane %v1314_v21, 4 }
 0x3eb   : > { %5569 = vrcp.f32 %v1670_v53  ;;  %v1302_v23 = vmul.f32 %v1295_v29, %v6410_v16  ;;  %v1104_v36 = vadd.f32 %v1103_v7, %v1102_v14  ;;  %v1097_v60 = vadd.f32 %v1096_v5, %v1095_v25 }
 0x3ec   : > { %v1303_v47 = vmul.f32 %v1296_v19, %v6408_v1 }
 0x3ed   : > { %v1667_v27 = vpop.xlane.xlu0 %1666  ;;  %v1321_v26 = vsel %vm1008_vm7, %v1302_v23, 0.0  ;;  %v1309_v23 = vadd.f32 %v1308_v54, %v1307_v52 }
 0x3ee   : > { %v1676_v39 = vpop.xlane.xlu1 %1675  ;;  %5571 = vrcp.f32 %v1667_v27  ;;  %v1328_v53 = vsel %vm1008_vm7, %v1303_v47, 0.0  ;;  %v1322_v12 = vrot.slane %v1321_v26, 4  ;;  %v1316_v27 = vadd.f32 %v1315_v20, %v1314_v21 }
 0x3ef   : > { %5573 = vrcp.f32 %v6587_v28  ;;  %v1329_v7 = vrot.slane %v1328_v53, 4  ;;  %v1105_v47 = vrot.slane %v1104_v36, 1  ;;  %v1310_v54 = vrot.slane %v1309_v23, 2 }
 0x3f0   : > { %v5566_v40 = vpop.eup %5565  ;;  %5575 = vrcp.f32 %v1282_v41  ;;  %v1323_v5 = vadd.f32 %v1322_v12, %v1321_v26  ;;  %v1317_v20 = vrot.slane %v1316_v27, 2 }
 0x3f1   : > { %v6617_v29 = vpop.xlane.xlu0 %1672  ;;  %v1688_v19 = vmul.f32 %v5566_v40, %v6487_v0  ;;  %5577 = vrcp.f32 %v6583_v34  ;;  %v1111_v0 = vadd.f32 %v1110_v62, %v1109_v58  ;;  %v1098_v34 = vrot.slane %v1097_v60, 1 }
 0x3f2   : > { %v1964_v4 = vpop.xlane.xlu1 %1963  ;;  %v1330_v40 = vadd.f32 %v1329_v7, %v1328_v53  ;;  %v1324_v26 = vrot.slane %v1323_v5, 2 }
 0x3f3   : > { %v1695_v14 = vmul.f32 %v1688_v19, %v6397_v55  ;;  %5579 = vrcp.f32 %v1964_v4 }
 0x3f4   : > { %v5568_v22 = vpop.eup %5567  ;;  %5581 = vrcp.f32 %v6585_v31 }
 0x3f5   : > { %v5570_v28 = vpop.eup %5569  ;;  %v1687_v9 = vmul.f32 %v5568_v22, %v6495_v51  ;;  %v6624_v13 = vpop.xlane.xlu0 %1678  ;;  %v1708_v25 = vsel %vm1008_vm7, %v1695_v14, 0.0  ;;  %5583 = vrcp.f32 %v6596_v37  ;;  %v1118_v51 = vadd.f32 %v1117_v45, %v1116_v15 }
 0x3f6   : > { %v1970_v41 = vpop.xlane.xlu1 %1969  ;;  %v1690_v52 = vmul.f32 %v5570_v28, %v6497_v57  ;;  %5585 = vrcp.f32 %v1676_v39  ;;  %v1709_v4 = vrot.slane %v1708_v25, 4  ;;  %v1112_v37 = vrot.slane %v1111_v0, 1 }
 0x3f7   : > { %v1694_v19 = vmul.f32 %v1687_v9, %v6395_v44  ;;  %5587 = vrcp.f32 %v6603_v43  ;;  %v1099_v39 = vadd.f32 %v1098_v34, %v1097_v60  ;;  %v1106_v15 = vadd.f32 %v1105_v47, %v1104_v36 }
 0x3f8   : > { %v5572_v21 = vpop.eup %5571  ;;  %v1697_v12 = vmul.f32 %v1690_v52, %v6408_v1  ;;  %v1311_v22 = vadd.f32 %v1310_v54, %v1309_v23  ;;  %v1318_v45 = vadd.f32 %v1317_v20, %v1316_v27  ;;  %v1119_v9 = vrot.slane %v1118_v51, 1 }
 0x3f9   : > { %v1689_v58 = vmul.f32 %v5572_v21, %v6505_v18  ;;  %v1967_v31 = vpop.xlane.xlu0 %1966  ;;  %v5574_v57 = vpop.eup %5573  ;;  %v1331_v14 = vrot.slane %v1330_v40, 2  ;;  %v1710_v28 = vadd.f32 %v1709_v4, %v1708_v25  ;;  %v1701_v7 = vsel %vm1008_vm7, %v1694_v19, 0.0 }
 0x3fa   : > { %v6632_v62 = vpop.xlane.xlu1 %1975  ;;  %v5576_v53 = vpop.eup %5575  ;;  %5589 = vrcp.f32 %v1967_v31  ;;  %v1084_v52 = vmul.f32 %v5574_v57, %v6435_v17  ;;  %v1113_v36 = vadd.f32 %v1112_v37, %v1111_v0  ;;  %v1325_v23 = vadd.f32 %v1324_v26, %v1323_v5 }
 0x3fb   : > { %v5578_v18 = vpop.eup %5577  ;;  %v1696_v43 = vmul.f32 %v1689_v58, %v6410_v16  ;;  %5591 = vrcp.f32 %v1970_v41  ;;  %v1722_v27 = vsel %vm1008_vm7, %v1697_v12, 0.0  ;;  %v1298_v47 = vmul.f32 %v5576_v53, %v6477_v30 }
 0x3fc   : > { %v1458_v25 = vsel %vm1363_vm8, %v1106_v15, %v1099_v39  ;;  %v1312_v54 = vrot.slane %v1311_v22, 1  ;;  %v1319_v20 = vrot.slane %v1318_v45, 1  ;;  %v1702_v4 = vrot.slane %v1701_v7, 4 }
 0x3fd   : > { %v1973_v21 = vpop.xlane.xlu0 %1972  ;;  %v5580_v60 = vpop.eup %5579  ;;  %5593 = vrcp.f32 %v6617_v29  ;;  %v1332_v41 = vadd.f32 %v1331_v14, %v1330_v40  ;;  %v1711_v58 = vrot.slane %v1710_v28, 2  ;;  %v1715_v17 = vsel %vm1008_vm7, %v1696_v43, 0.0 }
 0x3fe   : > { %v6638_v8 = vpop.permute.xlu1 %881  ;;  %v5582_v34 = vpop.eup %5581  ;;  %v1120_v5 = vadd.f32 %v1119_v9, %v1118_v51  ;;  %v1723_v37 = vrot.slane %v1722_v27, 4  ;;  %v1990_v30 = vmul.f32 %v5580_v60, %v6516_v10  ;;  %v1459_v26 = vsel %vm1365_vm9, %v1113_v36, %v1458_v25 }
 0x3ff   : > { %v5584_v19 = vpop.eup %5583  ;;  %v1305_v57 = vmul.f32 %v1298_v47, %v6638_v8  ;;  %5595 = vrcp.f32 %v6624_v13  ;;  %v1085_v29 = vmul.f32 %v5582_v34, %v6443_v32  ;;  %v6654_v40 = vmul.f32 %v5578_v18, %v6437_v49 }
 0x400   : > { %v5586_v31 = vpop.eup %5585  ;;  %v1326_v39 = vrot.slane %v1325_v23, 1  ;;  %v1703_v53 = vadd.f32 %v1702_v4, %v1701_v7  ;;  %v1716_v51 = vrot.slane %v1715_v17, 4  ;;  %v1313_v9 = vadd.f32 %v1312_v54, %v1311_v22 }
 0x401   : > { %v1979_v12 = vpop.xlane.xlu0 %1978  ;;  %v5588_v15 = vpop.eup %5587  ;;  %v1320_v14 = vadd.f32 %v1319_v20, %v1318_v45  ;;  %v1712_v43 = vadd.f32 %v1711_v58, %v1710_v28  ;;  %5597 = vrcp.f32 %v1973_v21  ;;  %v1333_v60 = vrot.slane %v1332_v41, 1 }
 0x402   : > { %v6646_v0 = vpop.permute.xlu1 %888  ;;  %v6657_v36 = vsel %vm1367_vm10, %v1120_v5, %v1459_v26  ;;  %v1724_v47 = vadd.f32 %v1723_v37, %v1722_v27  ;;  %v1997_v32 = vmul.f32 %v1990_v30, %v6395_v44  ;;  %v1692_v49 = vmul.f32 %v5586_v31, %v6507_v11 }
 0x403   : > { %v1342_v18 = vsel %vm1008_vm7, %v1305_v57, 0.0  ;;  %v1091_v7 = vmul.f32 %v1084_v52, %v6638_v8  ;;  %v1299_v22 = vmul.f32 %v5588_v15, %v6485_v63  ;;  %v1297_v45 = vmul.f32 %v5584_v19, %v6475_v61 }
 0x404   : > { %v5590_v13 = vpop.eup %5589  ;;  %v7401_v28 = vmov 0.0   ;;  %v1327_v21 = vadd.f32 %v1326_v39, %v1325_v23  ;;  %v1704_v34 = vrot.slane %v1703_v53, 2  ;;  %v1717_v54 = vadd.f32 %v1716_v51, %v1715_v17 }
 0x405   : > { %v5592_v25 = vpop.eup %5591  ;;  %v1699_v27 = vmul.f32 %v1692_v49, %v6638_v8  ;;  %v1364_v44 = vsel %vm1363_vm8, %v1320_v14, %v1313_v9  ;;  %v1713_v11 = vrot.slane %v1712_v43, 1  ;;  %v1991_v20 = vmul.f32 %v5590_v13, %v6532_v2  ;;  %v1982_v58 = vpop.xlane.xlu0 %1981 }
 0x406   : > { %v1377_v10 = vpop.permute.xlu1 %1376  ;;  %v1343_v4 = vrot.slane %v1342_v18, 4  ;;  %v6669_v52 = vadd.f32 %v1333_v60, %v1332_v41  ;;  %v1725_v5 = vrot.slane %v1724_v47, 2  ;;  %v2004_v61 = vsel %vm1008_vm7, %v1997_v32, 0.0 }
 0x407   : > { %5132 = vmatpush3.msra.mxu0 %v1377_v10  ;;  %v5594_v63 = vpop.eup %5593  ;;  %5599 = vrcp.f32 %v1979_v12  ;;  %v1306_v23 = vmul.f32 %v1299_v22, %v6646_v0  ;;  %v1992_v19 = vmul.f32 %v5592_v25, %v6526_v48  ;;  %v1128_v17 = vsel %vm1008_vm7, %v1091_v7, 0.0 }
 0x408   : > { %5136 = vmatprep.subr.mxu0 %v7401_v28  ;;  %5601 = vrcp.f32 %v6632_v62  ;;  %v1092_v31 = vmul.f32 %v1085_v29, %v6646_v0  ;;  %v6677_v2 = vadd.f32 %v1704_v34, %v1703_v53  ;;  %v1718_v37 = vrot.slane %v1717_v54, 2 }
 0x409   : > { %v1736_v41 = vsel %vm1008_vm7, %v1699_v27, 0.0  ;;  %v6681_v30 = vsel %vm1365_vm9, %v1327_v21, %v1364_v44  ;;  %v5596_v57 = vpop.eup %5595  ;;  %v2005_v26 = vrot.slane %v2004_v61, 4  ;;  %v1998_v12 = vmul.f32 %v1991_v20, %v6397_v55  ;;  %v875_v13 = vpop.permute.xlu0 %874 }
 0x40a   : > { %v1344_v39 = vadd.f32 %v1343_v4, %v1342_v18  ;;  %v1691_v48 = vmul.f32 %v5594_v63, %v6514_v46  ;;  %v6685_v62 = vadd.f32 %v1713_v11, %v1712_v43  ;;  %v6687_v15 = vadd.f32 %v1725_v5, %v1724_v47 }
 0x40b   : > { %v1129_v29 = vrot.slane %v1128_v17, 4  ;;  %v1349_v53 = vsel %vm1008_vm7, %v1306_v23, 0.0  ;;  %v5598_v51 = vpop.eup %5597  ;;  %v1999_v9 = vmul.f32 %v1992_v19, %v6410_v16  ;;  %v1737_v14 = vrot.slane %v1736_v41, 4 }
 0x40c   : > { %v1135_v10 = vsel %vm1008_vm7, %v1092_v31, 0.0  ;;  %v1350_v60 = vrot.slane %v1349_v53, 4  ;;  %v1706_v55 = vrot.slane %v6677_v2, 1  ;;  %v6693_v32 = vadd.f32 %v1718_v37, %v1717_v54 }
 0x40d   : > { %v1693_v46 = vmul.f32 %v5596_v57, %v6524_v56  ;;  %5603 = vrcp.f32 %v1982_v58  ;;  %v6696_v43 = vadd.f32 %v2005_v26, %v2004_v61  ;;  %v2011_v47 = vsel %vm1008_vm7, %v1998_v12, 0.0 }
 0x40e   : > { %v1345_v49 = vrot.slane %v1344_v39, 2  ;;  %v1351_v18 = vadd.f32 %v1350_v60, %v1349_v53  ;;  %v1993_v16 = vmul.f32 %v5598_v51, %v6540_v3  ;;  %v1136_v7 = vrot.slane %v1135_v10, 4 }
 0x40f   : > { %v1090_v22 = vmul.f32 %v6654_v40, %v875_v13  ;;  %v1304_v21 = vmul.f32 %v1297_v45, %v875_v13  ;;  %v2018_v25 = vsel %vm1008_vm7, %v1999_v9, 0.0  ;;  %v1130_v34 = vadd.f32 %v1129_v29, %v1128_v17 }
 0x410   : > { %v6702_v54 = vadd.f32 %v1737_v14, %v1736_v41  ;;  %v1698_v27 = vmul.f32 %v1691_v48, %v875_v13  ;;  %v1352_v44 = vrot.slane %v1351_v18, 2  ;;  %v1700_v11 = vmul.f32 %v1693_v46, %v6646_v0 }
 0x411   : > { %v5600_v56 = vpop.eup %5599  ;;  %v1121_v20 = vsel %vm1008_vm7, %v1090_v22, 0.0  ;;  %v1335_v4 = vsel %vm1008_vm7, %v1304_v21, 0.0  ;;  %v2007_v3 = vrot.slane %v6696_v43, 2  ;;  %v2012_v63 = vrot.slane %v2011_v47, 4 }
 0x412   : > { %v5602_v58 = vpop.eup %5601  ;;  %v1122_v40 = vrot.slane %v1121_v20, 4  ;;  %v1336_v45 = vrot.slane %v1335_v4, 4  ;;  %v2000_v5 = vmul.f32 %v1993_v16, %v6408_v1  ;;  %v1346_v61 = vadd.f32 %v1345_v49, %v1344_v39 }
 0x413   : > { %v1137_v23 = vadd.f32 %v1136_v7, %v1135_v10  ;;  %v1729_v19 = vsel %vm1008_vm7, %v1698_v27, 0.0  ;;  %v1995_v17 = vmul.f32 %v5600_v56, %v6544_v38  ;;  %v2019_v57 = vrot.slane %v2018_v25, 4 }
 0x414   : > { %v1123_v31 = vadd.f32 %v1122_v40, %v1121_v20  ;;  %v1337_v37 = vadd.f32 %v1336_v45, %v1335_v4  ;;  %v1730_v41 = vrot.slane %v1729_v19, 4  ;;  %v1131_v26 = vrot.slane %v1130_v34, 2 }
 0x415   : > { %v1353_v12 = vadd.f32 %v1352_v44, %v1351_v18  ;;  %v1743_v48 = vsel %vm1008_vm7, %v1700_v11, 0.0  ;;  %v2013_v29 = vadd.f32 %v2012_v63, %v2011_v47  ;;  %v2025_v9 = vsel %vm1008_vm7, %v2000_v5, 0.0 }
 0x416   : > { %v1124_v53 = vrot.slane %v1123_v31, 2  ;;  %v1338_v1 = vrot.slane %v1337_v37, 2  ;;  %v1731_v39 = vadd.f32 %v1730_v41, %v1729_v19  ;;  %v1347_v14 = vrot.slane %v1346_v61, 1 }
 0x417   : > { %v5604_v51 = vpop.eup %5603  ;;  %v1138_v10 = vrot.slane %v1137_v23, 2  ;;  %v1994_v38 = vmul.f32 %v5602_v58, %v6534_v35  ;;  %v2002_v60 = vmul.f32 %v1995_v17, %v6638_v8  ;;  %v1744_v46 = vrot.slane %v1743_v48, 4 }
 0x418   : > { %v1125_v49 = vadd.f32 %v1124_v53, %v1123_v31  ;;  %v1339_v16 = vadd.f32 %v1338_v1, %v1337_v37  ;;  %v1739_v18 = vrot.slane %v6702_v54, 2  ;;  %v1996_v7 = vmul.f32 %v5604_v51, %v6548_v42 }
 0x419   : > { %v2001_v47 = vmul.f32 %v1994_v38, %v875_v13  ;;  %v1354_v22 = vrot.slane %v1353_v12, 1  ;;  %v2020_v21 = vadd.f32 %v2019_v57, %v2018_v25  ;;  %v1732_v44 = vrot.slane %v1731_v39, 2 }
 0x41a   : > { %v1126_v27 = vrot.slane %v1125_v49, 1  ;;  %v1340_v56 = vrot.slane %v1339_v16, 1  ;;  %v2014_v11 = vrot.slane %v2013_v29, 2  ;;  %v2026_v20 = vrot.slane %v2025_v9, 4 }
 0x41b   : > { %v1132_v4 = vadd.f32 %v1131_v26, %v1130_v34  ;;  %v1139_v63 = vadd.f32 %v1138_v10, %v1137_v23  ;;  %v2039_v35 = vsel %vm1008_vm7, %v2002_v60, 0.0  ;;  %v1745_v8 = vadd.f32 %v1744_v46, %v1743_v48 }
 0x41c   : > { %v1341_v58 = vadd.f32 %v1340_v56, %v1339_v16  ;;  %v1348_v40 = vadd.f32 %v1347_v14, %v1346_v61  ;;  %v2003_v45 = vmul.f32 %v1996_v7, %v6646_v0  ;;  %v2032_v5 = vsel %vm1008_vm7, %v2001_v47, 0.0 }
 0x41d   : > { %v1355_v42 = vadd.f32 %v1354_v22, %v1353_v12  ;;  %v1368_v13 = vsel %vm1367_vm10, %v6669_v52, %v6681_v30  ;;  %v1733_v25 = vadd.f32 %v1732_v44, %v1731_v39  ;;  %v1127_v17 = vadd.f32 %v1126_v27, %v1125_v49 }
 0x41e   : > { %v1370_v19 = vsel %vm1369_vm11, %v1341_v58, %v1368_v13  ;;  %v1720_v34 = vrot.slane %v6693_v32, 1  ;;  %v2027_v23 = vadd.f32 %v2026_v20, %v2025_v9  ;;  %v1133_v31 = vrot.slane %v1132_v4, 1 }
 0x41f   : > { %v2040_v37 = vrot.slane %v2039_v35, 4  ;;  %v1372_v61 = vsel %vm1371_vm12, %v1348_v40, %v1370_v19  ;;  %v2015_v41 = vadd.f32 %v2014_v11, %v2013_v29  ;;  %v1740_v0 = vadd.f32 %v1739_v18, %v6702_v54  ;;  %v1764_v11 = vpop.permute.xlu1 %1763 }
 0x420   : > { %v2033_v57 = vrot.slane %v2032_v5, 4  ;;  %v1374_v26 = vsel %vm1373_vm13, %v1355_v42, %v1372_v61  ;;  %v1746_v12 = vrot.slane %v1745_v8, 2  ;;  %v1140_v52 = vrot.slane %v1139_v63, 1 }
 0x421   : > { %5134 = vmatmul.mubr.msk.f32.vlgmr.msra.gmra.mrb[10].mxu0 %vm1008_vm7, %v1374_v26  ;;  %v1707_v30 = vadd.f32 %v1706_v55, %v6677_v2  ;;  %v2046_v48 = vsel %vm1008_vm7, %v2003_v45, 0.0  ;;  %v1734_v53 = vrot.slane %v1733_v25, 1  ;;  %v1461_v54 = vsel %vm1369_vm11, %v1127_v17, %v6657_v36 }
 0x422   : > { %5137 = vmatpush3.msra.mxu0 %v6560_v24  ;;  %5138 = vmatprep.mubr.msk.f32.mxu0 %vm5886_vm1, %v7401_v28  ;;  %v1721_v29 = vadd.f32 %v1720_v34, %v6693_v32  ;;  %v2047_v1 = vrot.slane %v2046_v48, 4  ;;  %v2028_v39 = vrot.slane %v2027_v23, 2  ;;  %v1134_v51 = vadd.f32 %v1133_v31, %v1132_v4 }
 0x423   : > { %5146 = vmatprep.subr.mxu0 %v7401_v28  ;;  %v1727_v2 = vrot.slane %v6687_v15, 1  ;;  %v2041_v55 = vadd.f32 %v2040_v37, %v2039_v35  ;;  %v2021_v9 = vrot.slane %v2020_v21, 2  ;;  %v2034_v14 = vadd.f32 %v2033_v57, %v2032_v5  ;;  %v2067_v37 = vpop.permute.xlu0 %2066 }
 0x424   : > { %v2048_v10 = vadd.f32 %v2047_v1, %v2046_v48  ;;  %v2008_v24 = vadd.f32 %v2007_v3, %v6696_v43  ;;  %v1741_v38 = vrot.slane %v1740_v0, 1  ;;  %v1462_v36 = vsel %vm1371_vm12, %v1134_v51, %v1461_v54  ;;  %v2305_v48 = vpop.permute.xlu1 %2304 }
 0x425   : > { %v1757_v32 = vsel %vm1363_vm8, %v6685_v62, %v1707_v30  ;;  %v1747_v60 = vadd.f32 %v1746_v12, %v1745_v8  ;;  %v1141_v46 = vadd.f32 %v1140_v52, %v1139_v63  ;;  %v1735_v49 = vadd.f32 %v1734_v53, %v1733_v25 }
 0x426   : > { %v1758_v16 = vsel %vm1365_vm9, %v1721_v29, %v1757_v32  ;;  %v2016_v18 = vrot.slane %v2015_v41, 1  ;;  %v1728_v7 = vadd.f32 %v1727_v2, %v6687_v15  ;;  %v2029_v47 = vadd.f32 %v2028_v39, %v2027_v23 }
 0x427   : > { %v2042_v22 = vrot.slane %v2041_v55, 2  ;;  %v2022_v27 = vadd.f32 %v2021_v9, %v2020_v21  ;;  %v2035_v56 = vrot.slane %v2034_v14, 2  ;;  %v1463_v43 = vsel %vm1373_vm13, %v1141_v46, %v1462_v36  ;;  %v2507_v53 = vpop.permute.xlu0 %2506  ;;  %v2143_v46 = vld [vmem:[%s7356_s5] sm:$0xff] }
 0x428   : > { %v2049_v3 = vrot.slane %v2048_v10, 2  ;;  %v2009_v44 = vrot.slane %v2008_v24, 1  ;;  %v1759_v62 = vsel %vm1367_vm10, %v1728_v7, %v1758_v16  ;;  %v1748_v20 = vrot.slane %v1747_v60, 1  ;;  %v2847_v54 = vpop.permute.xlu1 %2846 }
 0x429   : > { %5139 = vmatmul.mubr.msk.f32.vlgmr.msra.gmra.mrb[10].mxu0 %vm1008_vm7, %v1463_v43  ;;  %v1760_v15 = vsel %vm1369_vm11, %v1735_v49, %v1759_v62  ;;  %v1742_v21 = vadd.f32 %v1741_v38, %v1740_v0  ;;  %v2017_v4 = vadd.f32 %v2016_v18, %v2015_v41  ;;  %v2030_v63 = vrot.slane %v2029_v47, 1 }
 0x42a   : > { %5147 = vmatpush3.msra.mxu0 %v1764_v11  ;;  %5148 = vmatprep.mubr.msk.f32.mxu0 %vm5886_vm1, %v7401_v28  ;;  %v2043_v35 = vadd.f32 %v2042_v22, %v2041_v55  ;;  %v2023_v8 = vrot.slane %v2022_v27, 1  ;;  %v2036_v58 = vadd.f32 %v2035_v56, %v2034_v14  ;;  %v2050_v40 = vadd.f32 %v2049_v3, %v2048_v10 }
 0x42b   : > { %5156 = vmatprep.subr.mxu0 %v7401_v28  ;;  %v2010_v45 = vadd.f32 %v2009_v44, %v2008_v24  ;;  %v1761_v5 = vsel %vm1371_vm12, %v1742_v21, %v1760_v15  ;;  %v1749_v42 = vadd.f32 %v1748_v20, %v1747_v60  ;;  %v2031_v13 = vadd.f32 %v2030_v63, %v2029_v47  ;;  %v3106_v29 = vpop.permute.xlu0 %3105 }
 0x42c   : > { %v2044_v25 = vrot.slane %v2043_v35, 1  ;;  %v2037_v17 = vrot.slane %v2036_v58, 1  ;;  %v2024_v23 = vadd.f32 %v2023_v8, %v2022_v27  ;;  %v2051_v31 = vrot.slane %v2050_v40, 1 }
 0x42d   : > { %v2060_v19 = vsel %vm1363_vm8, %v2017_v4, %v2010_v45  ;;  %v1762_v34 = vsel %vm1373_vm13, %v1749_v42, %v1761_v5  ;;  %v6789_v1 = vsel %vm6166_vm6, 1.0, %v7401_v28 }
 0x42e   : > { %v2061_v61 = vsel %vm1365_vm9, %v2024_v23, %v2060_v19  ;;  %v2045_v41 = vadd.f32 %v2044_v25, %v2043_v35  ;;  %v2038_v57 = vadd.f32 %v2037_v17, %v2036_v58  ;;  %v2052_v26 = vadd.f32 %v2051_v31, %v2050_v40 }
 0x42f   : > { %v2062_v0 = vsel %vm1367_vm10, %v2031_v13, %v2061_v61  ;;  %v2227_v39 = vsub.f32 1.0, %v6789_v1 }
 0x430   : > { %v2063_v12 = vsel %vm1369_vm11, %v2038_v57, %v2062_v0 }
 0x431   : > { %5149 = vmatmul.mubr.msk.f32.vlgmr.msra.gmra.mrb[10].mxu0 %vm1008_vm7, %v1762_v34  ;;  %v2064_v52 = vsel %vm1371_vm12, %v2045_v41, %v2063_v12  ;;  %v2228_v51 = vmul.f32 -1e+30, %v2227_v39 }
 0x432   : > { %5157 = vmatpush3.msra.mxu0 %v2067_v37  ;;  %5158 = vmatprep.mubr.msk.f32.mxu0 %vm5886_vm1, %v7401_v28  ;;  %v2065_v30 = vsel %vm1373_vm13, %v2052_v26, %v2064_v52 }
 0x433   : > { %5171 = vmatprep.subr.mxu0 %v7401_v28  ;;  %v2237_v2 = vrot.slane %v2228_v51, %v6235_v33  ;;  %v2230_v9 = vcombine.high %v2228_v51, %v2228_v51 }
 0x435   : > { %v2245_v55 = vcombine.high %v2237_v2, %v2237_v2  ;;  %v2252_v10 = vrot.slane %v2237_v2, %v6235_v33  ;;  %v2244_v24 = vrot.slane %v2230_v9, %v6235_v33 }
 0x437   : > { %v2266_v14 = vrot.slane %v2245_v55, %v6235_v33  ;;  %v2267_v38 = vcombine.high %v2252_v10, %v2252_v10  ;;  %v6803_v16 = vrot.slane %v2252_v10, %v6152_v59  ;;  %v2259_v18 = vrot.slane %v2244_v24, %v6235_v33 }
 0x439   : > { %5159 = vmatmul.mubr.msk.f32.vlgmr.msra.gmra.mrb[10].mxu0 %vm1008_vm7, %v2065_v30  ;;  %v2268_v36 = vcombine.high %v2266_v14, %v2266_v14  ;;  %v6800_v49 = vrot.slane %v2266_v14, %v6152_v59  ;;  %v6807_v7 = vrot.slane %v2267_v38, %v6152_v59  ;;  %v6820_v33 = vrot.slane %v2259_v18, %v6152_v59 }
 0x43a   : > { %5172 = vmatpush3.xpose.msk.msra.mxu0 %vm422_vm0, %v2305_v48  ;;  %5173 = vmatprep.mubr.msk.f32.mxu0 %vm5886_vm1, %v7401_v28 }
 0x43b   : > { %5186 = vmatprep.subr.mxu0 %v7401_v28  ;;  %v6810_v47 = vrot.slane %v2268_v36, %v6152_v59 }
 0x43d   : > { %5174 = vmatmul.mubr.msk.f32.vlgmr.msra.gmra.mrb[12].mxu0 %vm422_vm0, %v2507_v53 }
 0x43e   : > { %5187 = vmatpush3.xpose.msk.msra.mxu0 %vm422_vm0, %v2305_v48  ;;  %5188 = vmatprep.mubr.msk.f32.mxu0 %vm5886_vm1, %v7401_v28 }
 0x43f   : > { %5196 = vmatprep.subr.mxu0 %v7401_v28 }
 0x441   : > { %5189 = vmatmul.mubr.msk.f32.vlgmr.msra.gmra.mrb[14].mxu0 %vm422_vm0, %v2847_v54 }
 0x442   : > { %5197 = vmatpush3.xpose.msk.msra.mxu0 %vm422_vm0, %v2305_v48  ;;  %5198 = vmatprep.mubr.msk.f32.mxu0 %vm5886_vm1, %v7401_v28 }
 0x443   : > { %5206 = vmatprep.subr.mxu0 %v7401_v28 }
 0x445   : > { %5199 = vmatmul.mubr.msk.f32.vlgmr.msra.gmra.mrb[16].mxu0 %vm422_vm0, %v3106_v29 }
 0x446   : > { %5208 = vmatprep.mubr.msk.f32.mxu0 %vm5886_vm1, %v7401_v28 }
 0x50c   : > { %v2137_v32 = vpop.f32.mrb[10].mxu0 }
 0x50d   : > { %v2142_v6 = vmul.f32 0.5, %v2137_v32  ;;  %v5160_v60 = vpop.f32.mrb[11].mxu0 }
 0x50f   : > { %5162 = vmatpush3.msk.msra.mxu1 %vm2148_vm14, %v2142_v6 }
 0x510   : > { %v2576_v22 = vpop.f32.mrb[12].mxu0  ;;  %5164 = vmatmul.mubr.msk.f32.vlgmr.msra.gmra.mrb[8].mxu1 %vm2144_vm15, %v2143_v46  ;;  %5166 = vmatprep.subr.mxu1 %v7401_v28 }
 0x511   : > { %v5175_v27 = vpop.f32.mrb[13].mxu0  ;;  %v6814_v56 = vadd.f32 %v2576_v22, %v6800_v49  ;;  %v2580_v43 = vadd.f32 %v2576_v22, %v6803_v16  ;;  %5168 = vmatprep.mubr.msk.f32.mxu1 %vm5886_vm1, %v7401_v28  ;;  %v2582_v11 = vadd.f32 %v2576_v22, %v6807_v7  ;;  %v6827_v62 = vadd.f32 %v2576_v22, %v6810_v47 }
 0x512   : > { %v6834_v63 = vadd.f32 %v2576_v22, %v6820_v33 }
 0x513   : > { %v2588_v3 = vsel %vm1008_vm7, %v6814_v56, -inf  ;;  %v2585_v44 = vsel %vm1008_vm7, %v2580_v43, -inf  ;;  %v2591_v21 = vsel %vm1008_vm7, %v2582_v11, -inf  ;;  %v2594_v4 = vsel %vm1008_vm7, %v6827_v62, -inf }
 0x514   : > { %2589 = vmax.xlane.f32.xlu0 %v2588_v3  ;;  %2586 = vmax.xlane.f32.xlu1 %v2585_v44  ;;  %v2916_v20 = vpop.f32.mrb[14].mxu0  ;;  %v2597_v40 = vsel %vm1008_vm7, %v6834_v63, -inf }
 0x515   : > { %v5190_v15 = vpop.f32.mrb[15].mxu0  ;;  %v6837_v35 = vadd.f32 %v2916_v20, %v6800_v49  ;;  %v6851_v5 = vadd.f32 %v2916_v20, %v6803_v16  ;;  %v6889_v9 = vadd.f32 %v2916_v20, %v6810_v47  ;;  %v6892_v14 = vadd.f32 %v2916_v20, %v6820_v33 }
 0x516   : > { %5167 = vmatpush3.xpose.msk.msra.mxu1 %vm422_vm0, %v2305_v48  ;;  %v6881_v48 = vadd.f32 %v2916_v20, %v6807_v7 }
 0x517   : > { %5176 = vmatprep.subr.mxu1 %v7401_v28  ;;  %v2928_v45 = vsel %vm1008_vm7, %v6837_v35, -inf  ;;  %v2925_v42 = vsel %vm1008_vm7, %v6851_v5, -inf  ;;  %v2934_v60 = vsel %vm1008_vm7, %v6889_v9, -inf  ;;  %v2937_v46 = vsel %vm1008_vm7, %v6892_v14, -inf }
 0x518   : > { %2592 = vmax.xlane.f32.xlu0 %v2591_v21  ;;  %2595 = vmax.xlane.f32.xlu1 %v2594_v4  ;;  %v6840_v8 = vpop.f32.mrb[16].mxu0  ;;  %v2931_v55 = vsel %vm1008_vm7, %v6881_v48, -inf }
 0x519   : > { %5169 = vmatmul.mubr.msk.f32.vlgmr.msra.gmra.mrb[10].mxu1 %vm422_vm0, %v6573_v50  ;;  %v5200_v58 = vpop.f32.mrb[17].mxu0  ;;  %v6902_v18 = vadd.f32 %v6840_v8, %v6800_v49  ;;  %v6906_v22 = vadd.f32 %v6840_v8, %v6803_v16 }
 0x51a   : > { %5178 = vmatprep.mubr.msk.f32.mxu1 %vm5886_vm1, %v7401_v28 }
 0x51b   : > { %v3187_v44 = vsel %vm1008_vm7, %v6902_v18, -inf }
 0x51c   : > { %2598 = vmax.xlane.f32.xlu0 %v2597_v40  ;;  %2929 = vmax.xlane.f32.xlu1 %v2928_v45 }
 0x520   : > { %2926 = vmax.xlane.f32.xlu0 %v2925_v42 }
 0x5a1   : > { %v2590_v25 = vpop.xlane.xlu0 %2589  ;;  %v2587_v31 = vpop.xlane.xlu1 %2586 }
 0x5a2   : > { %v2600_v26 = vsub.f32 %v2580_v43, %v2587_v31  ;;  %v2601_v54 = vsub.f32 %v6814_v56, %v2590_v25 }
 0x5a4   : > { %v2605_v39 = vmul.f32 1.442695, %v2600_v26  ;;  %v2607_v10 = vmul.f32 1.442695, %v2601_v54 }
 0x5a5   : > { %v2593_v37 = vpop.xlane.xlu0 %2592  ;;  %v2596_v53 = vpop.xlane.xlu1 %2595 }
 0x5a6   : > { %v2602_v51 = vsub.f32 %v2582_v11, %v2593_v37  ;;  %v2603_v24 = vsub.f32 %v6827_v62, %v2596_v53  ;;  %5605 = vpow2.f32 %v2605_v39  ;;  %v6920_v11 = vadd.f32 %v6840_v8, %v6807_v7 }
 0x5a7   : > { %5607 = vpow2.f32 %v2607_v10 }
 0x5a8   : > { %v2609_v38 = vmul.f32 1.442695, %v2602_v51  ;;  %v2611_v27 = vmul.f32 1.442695, %v2603_v24  ;;  %v3190_v21 = vsel %vm1008_vm7, %v6920_v11, -inf }
 0x5a9   : > { %v2599_v29 = vpop.xlane.xlu0 %2598  ;;  %v2930_v32 = vpop.xlane.xlu1 %2929 }
 0x5aa   : > { %v2604_v36 = vsub.f32 %v6834_v63, %v2599_v29  ;;  %v2941_v56 = vsub.f32 %v6837_v35, %v2930_v32  ;;  %5609 = vpow2.f32 %v2609_v38 }
 0x5ab   : > { %5611 = vpow2.f32 %v2611_v27 }
 0x5ac   : > { %v2613_v43 = vmul.f32 1.442695, %v2604_v36  ;;  %v2947_v62 = vmul.f32 1.442695, %v2941_v56 }
 0x5ad   : > { %v2927_v6 = vpop.xlane.xlu0 %2926 }
 0x5ae   : > { %v2940_v3 = vsub.f32 %v6851_v5, %v2927_v6  ;;  %5613 = vpow2.f32 %v2613_v43 }
 0x5af   : > { %5615 = vpow2.f32 %v2947_v62 }
 0x5b0   : > { %v2945_v20 = vmul.f32 1.442695, %v2940_v3  ;;  %v6930_v4 = vpop.eup %5605 }
 0x5b1   : > { %v2615_v63 = vsel %vm1008_vm7, %v6930_v4, 0.0 }
 0x5b2   : > { %5617 = vpow2.f32 %v2945_v20 }
 0x5e3   : > { %v6855_v50 = vpop.f32.mrb[8].mxu1 }
 0x5e4   : > { %v5165_v13 = vpop.f32.mrb[9].mxu1 }
 0x5ec   : > { %v2377_v19 = vpop.f32.mrb[10].mxu1 }
 0x5ed   : > { %v5170_v17 = vpop.f32.mrb[11].mxu1  ;;  %v6858_v34 = vadd.f32 %v6803_v16, %v2377_v19  ;;  %v6861_v23 = vadd.f32 %v6800_v49, %v2377_v19  ;;  %v6868_v0 = vadd.f32 %v6807_v7, %v2377_v19  ;;  %v6871_v57 = vadd.f32 %v6810_v47, %v2377_v19  ;;  %v6932_v7 = vpop.eup %5607 }
 0x5ee   : > { %v6878_v30 = vadd.f32 %v6820_v33, %v2377_v19  ;;  %v3184_v49 = vsel %vm1008_vm7, %v6906_v22, -inf  ;;  %v6916_v16 = vadd.f32 %v6840_v8, %v6810_v47  ;;  %v6928_v47 = vadd.f32 %v6840_v8, %v6820_v33  ;;  %v6938_v58 = vpop.eup %5609 }
 0x5ef   : > { %v2411_v61 = vsel %vm1008_vm7, %v6858_v34, -inf  ;;  %v2414_v41 = vsel %vm1008_vm7, %v6861_v23, -inf  ;;  %v2417_v12 = vsel %vm1008_vm7, %v6868_v0, -inf  ;;  %v2420_v52 = vsel %vm1008_vm7, %v6871_v57, -inf  ;;  %v6940_v33 = vpop.eup %5611 }
 0x5f0   : > { %2412 = vmax.xlane.f32.xlu1 %v2411_v61  ;;  %2415 = vmax.xlane.f32.xlu0 %v2414_v41  ;;  %v2423_v2 = vsel %vm1008_vm7, %v6878_v30, -inf  ;;  %v3193_v15 = vsel %vm1008_vm7, %v6916_v16, -inf  ;;  %v3196_v35 = vsel %vm1008_vm7, %v6928_v47, -inf  ;;  %v2621_v8 = vsel %vm1008_vm7, %v6938_v58, 0.0  ;;  %v6946_v45 = vpop.eup %5613 }
 0x5f1   : > { %v2618_v40 = vsel %vm1008_vm7, %v6932_v7, 0.0  ;;  %v6948_v5 = vpop.eup %5615  ;;  %v2627_v42 = vsel %vm1008_vm7, %v6946_v45, 0.0  ;;  %v2624_v13 = vsel %vm1008_vm7, %v6940_v33, 0.0 }
 0x5f2   : > { %v6954_v25 = vpop.eup %5617  ;;  %v2958_v17 = vsel %vm1008_vm7, %v6948_v5, 0.0 }
 0x5f3   : > { %v2955_v19 = vsel %vm1008_vm7, %v6954_v25, 0.0 }
 0x5f4   : > { %2418 = vmax.xlane.f32.xlu1 %v2417_v12  ;;  %2421 = vmax.xlane.f32.xlu0 %v2420_v52 }
 0x5f8   : > { %2424 = vmax.xlane.f32.xlu1 %v2423_v2  ;;  %2932 = vmax.xlane.f32.xlu0 %v2931_v55 }
 0x5fc   : > { %2935 = vmax.xlane.f32.xlu1 %v2934_v60  ;;  %2938 = vmax.xlane.f32.xlu0 %v2937_v46 }
 0x600   : > { %3188 = vmax.xlane.f32.xlu0 %v3187_v44  ;;  %3185 = vmax.xlane.f32.xlu1 %v3184_v49 }
 0x604   : > { %3194 = vmax.xlane.f32.xlu0 %v3193_v15  ;;  %3191 = vmax.xlane.f32.xlu1 %v3190_v21 }
 0x608   : > { %2616 = vadd.xlane.f32.xlu0 %v2615_v63  ;;  %3197 = vmax.xlane.f32.xlu1 %v3196_v35 }
 0x60c   : > { %2622 = vadd.xlane.f32.xlu0 %v2621_v8  ;;  %2619 = vadd.xlane.f32.xlu1 %v2618_v40 }
 0x610   : > { %2628 = vadd.xlane.f32.xlu0 %v2627_v42  ;;  %2625 = vadd.xlane.f32.xlu1 %v2624_v13 }
 0x614   : > { %2956 = vadd.xlane.f32.xlu0 %v2955_v19  ;;  %2959 = vadd.xlane.f32.xlu1 %v2958_v17 }
 0x67d   : > { %v2413_v31 = vpop.xlane.xlu1 %2412  ;;  %v2416_v37 = vpop.xlane.xlu0 %2415 }
 0x67e   : > { %v2427_v60 = vsub.f32 %v6861_v23, %v2416_v37 }
 0x681   : > { %v2419_v61 = vpop.xlane.xlu1 %2418  ;;  %v2422_v41 = vpop.xlane.xlu0 %2421 }
 0x682   : > { %v2429_v44 = vsub.f32 %v6871_v57, %v2422_v41 }
 0x685   : > { %v2425_v26 = vpop.xlane.xlu1 %2424  ;;  %v2933_v12 = vpop.xlane.xlu0 %2932 }
 0x686   : > { %v2942_v52 = vsub.f32 %v6881_v48, %v2933_v12  ;;  %v2426_v48 = vsub.f32 %v6858_v34, %v2413_v31  ;;  %v2433_v34 = vmul.f32 1.442695, %v2427_v60  ;;  %v2430_v62 = vsub.f32 %v6878_v30, %v2425_v26 }
 0x688   : > { %v2949_v53 = vmul.f32 1.442695, %v2942_v52  ;;  %v2431_v56 = vmul.f32 1.442695, %v2426_v48  ;;  %v2439_v63 = vmul.f32 1.442695, %v2430_v62 }
 0x689   : > { %v2936_v54 = vpop.xlane.xlu1 %2935  ;;  %v2939_v29 = vpop.xlane.xlu0 %2938  ;;  %v7406_v48 = vld [vmem:[#allocation12_spill] sm:$0xff] }
 0x68a   : > { %v2943_v39 = vsub.f32 %v6889_v9, %v2936_v54  ;;  %v2944_v51 = vsub.f32 %v6892_v14, %v2939_v29  ;;  %5619 = vpow2.f32 %v2949_v53  ;;  %v2272_v54 = vrot.slane %v6789_v1, %v6152_v59  ;;  %v7402_v29 = vld [vmem:[#allocation13_spill] sm:$0xff] }
 0x68b   : > { %v7407_v59 = vsub.s32 6, %v7406_v48 }
 0x68c   : > { %v2951_v2 = vmul.f32 1.442695, %v2943_v39  ;;  %v2953_v55 = vmul.f32 1.442695, %v2944_v51  ;;  %v2279_v39 = vrot.slane %v6789_v1, %v7402_v29  ;;  %v7403_v51 = vld [vmem:[#allocation16_spill] sm:$0xff] }
 0x68d   : > { %v3189_v10 = vpop.xlane.xlu0 %3188  ;;  %v3186_v24 = vpop.xlane.xlu1 %3185 }
 0x68e   : > { %5621 = vpow2.f32 %v2951_v2  ;;  %v3200_v38 = vsub.f32 %v6902_v18, %v3189_v10  ;;  %v3199_v36 = vsub.f32 %v6906_v22, %v3186_v24  ;;  %v2428_v18 = vsub.f32 %v6868_v0, %v2419_v61  ;;  %v7405_v24 = vld [vmem:[#allocation18_spill] sm:$0xff] }
 0x68f   : > { %5623 = vpow2.f32 %v2953_v55  ;;  %v2437_v0 = vmul.f32 1.442695, %v2429_v44  ;;  %v2286_v2 = vrot.slane %v6789_v1, %v7403_v51  ;;  %v7404_v55 = vld [vmem:[#allocation14_spill] sm:$0xff] }
 0x690   : > { %v3206_v32 = vmul.f32 1.442695, %v3200_v38  ;;  %v3204_v6 = vmul.f32 1.442695, %v3199_v36  ;;  %v2293_v10 = vrot.slane %v6789_v1, %v7404_v55  ;;  %v2300_v38 = vrot.slane %v6789_v1, %v7405_v24  ;;  %v7030_v36 = vld [vmem:[#allocation6] sm:$0xff] }
 0x691   : > { %v3195_v9 = vpop.xlane.xlu0 %3194  ;;  %v3192_v46 = vpop.xlane.xlu1 %3191  ;;  %v388_v1 = vrot.slane %v7030_v36, %v7403_v51 }
 0x692   : > { %5625 = vpow2.f32 %v3206_v32  ;;  %v3202_v14 = vsub.f32 %v6916_v16, %v3195_v9  ;;  %v3201_v27 = vsub.f32 %v6920_v11, %v3192_v46  ;;  %v2435_v16 = vmul.f32 1.442695, %v2428_v18  ;;  %v7408_v9 = vld [vmem:[#allocation21_spill] sm:$0xff] }
 0x693   : > { %5627 = vpow2.f32 %v3204_v6  ;;  %v404_v32 = vrot.slane %v7030_v36, %v7407_v59 }
 0x694   : > { %v3210_v43 = vmul.f32 1.442695, %v3202_v14  ;;  %v3208_v22 = vmul.f32 1.442695, %v3201_v27  ;;  %v6970_v3 = vpop.eup %5619  ;;  %v7409_v27 = vld [vmem:[#allocation19_spill] sm:$0xff] }
 0x695   : > { %v2961_v23 = vsel %vm1008_vm7, %v6970_v3, 0.0  ;;  %v3198_v6 = vpop.xlane.xlu1 %3197  ;;  %v7037_v46 = vadd.f32 %v7408_v9, %v404_v32 }
 0x696   : > { %5629 = vpow2.f32 %v3210_v43  ;;  %2962 = vadd.xlane.f32.xlu0 %v2961_v23  ;;  %v3203_v60 = vsub.f32 %v6928_v47, %v3198_v6  ;;  %v7410_v47 = vld [vmem:[#allocation15_spill] sm:$0xff]  ;;  %v2617_v23 = vpop.xlane.xlu0 %2616 }
 0x697   : > { %5631 = vpow2.f32 %v3208_v22  ;;  %v392_v22 = vrot.slane %v7030_v36, %v7404_v55 }
 0x698   : > { %v6975_v49 = vpop.eup %5621  ;;  %5633 = vpow2.f32 %v2431_v56  ;;  %v3212_v14 = vmul.f32 1.442695, %v3203_v60  ;;  %v7050_v56 = vadd.f32 %v7410_v47, %v388_v1 }
 0x699   : > { %v6977_v11 = vpop.eup %5623  ;;  %5635 = vpow2.f32 %v2433_v34  ;;  %v2964_v20 = vsel %vm1008_vm7, %v6975_v49, 0.0  ;;  %v7411_v34 = vld [vmem:[#allocation17_spill] sm:$0xff] }
 0x69a   : > { %v2967_v57 = vsel %vm1008_vm7, %v6977_v11, 0.0  ;;  %2965 = vadd.xlane.f32.xlu1 %v2964_v20  ;;  %5637 = vpow2.f32 %v2435_v16  ;;  %v7065_v44 = vadd.f32 %v7411_v34, %v392_v22  ;;  %v2623_v16 = vpop.xlane.xlu0 %2622 }
 0x69b   : > { %2968 = vadd.xlane.f32.xlu0 %v2967_v57  ;;  %5639 = vpow2.f32 %v2437_v0  ;;  %v2620_v0 = vpop.xlane.xlu1 %2619 }
 0x69c   : > { %v6984_v15 = vpop.eup %5625  ;;  %5641 = vpow2.f32 %v2439_v63 }
 0x69d   : > { %v6986_v21 = vpop.eup %5627  ;;  %v3217_v35 = vsel %vm1008_vm7, %v6984_v15, 0.0  ;;  %5643 = vpow2.f32 %v3212_v14 }
 0x69e   : > { %v3214_v30 = vsel %vm1008_vm7, %v6986_v21, 0.0  ;;  %v2629_v62 = vpop.xlane.xlu0 %2628  ;;  %5645 = vrcp.f32 %v2620_v0 }
 0x69f   : > { %3218 = vadd.xlane.f32.xlu0 %v3217_v35  ;;  %3215 = vadd.xlane.f32.xlu1 %v3214_v30  ;;  %v2626_v20 = vpop.xlane.xlu1 %2625 }
 0x6a0   : > { %v6992_v8 = vpop.eup %5629 }
 0x6a1   : > { %v6994_v40 = vpop.eup %5631  ;;  %v3223_v42 = vsel %vm1008_vm7, %v6992_v8, 0.0 }
 0x6a2   : > { %v6998_v13 = vpop.eup %5633  ;;  %v3220_v19 = vsel %vm1008_vm7, %v6994_v40, 0.0  ;;  %v2957_v57 = vpop.xlane.xlu0 %2956 }
 0x6a3   : > { %v7002_v17 = vpop.eup %5635  ;;  %3224 = vadd.xlane.f32.xlu0 %v3223_v42  ;;  %3221 = vadd.xlane.f32.xlu1 %v3220_v19  ;;  %v2441_v61 = vsel %vm1008_vm7, %v6998_v13, 0.0  ;;  %v2960_v63 = vpop.xlane.xlu1 %2959 }
 0x6a4   : > { %v7004_v31 = vpop.eup %5637  ;;  %v2444_v37 = vsel %vm1008_vm7, %v7002_v17, 0.0 }
 0x6a5   : > { %v7010_v41 = vpop.eup %5639  ;;  %v2447_v12 = vsel %vm1008_vm7, %v7004_v31, 0.0 }
 0x6a6   : > { %v2450_v26 = vsel %vm1008_vm7, %v7010_v41, 0.0  ;;  %v7016_v52 = vpop.eup %5641 }
 0x6a7   : > { %2445 = vadd.xlane.f32.xlu0 %v2444_v37  ;;  %2442 = vadd.xlane.f32.xlu1 %v2441_v61  ;;  %v2453_v53 = vsel %vm1008_vm7, %v7016_v52, 0.0  ;;  %v7052_v18 = vpop.eup %5643 }
 0x6a8   : > { %v3226_v43 = vsel %vm1008_vm7, %v7052_v18, 0.0 }
 0x6ab   : > { %2451 = vadd.xlane.f32.xlu0 %v2450_v26  ;;  %2448 = vadd.xlane.f32.xlu1 %v2447_v12 }
 0x6af   : > { %2454 = vadd.xlane.f32.xlu1 %v2453_v53 }
 0x6c0   : > { %2274 = vbcast.lane.b32.xlu1 %v2272_v54, 256  ;;  %v5646_v54 = vpop.eup %5645 }
 0x6c1   : > { %2281 = vbcast.lane.b32.xlu0 %v2279_v39, 256  ;;  %v2636_v55 = vmul.f32 %v5646_v54, %v6932_v7 }
 0x6c5   : > { %2288 = vbcast.lane.b32.xlu0 %v2286_v2, 256 }
 0x6c9   : > { %2295 = vbcast.lane.b32.xlu0 %v2293_v10, 256 }
 0x6cd   : > { %2302 = vbcast.lane.b32.xlu0 %v2300_v38, 256 }
 0x6d1   : > { %2690 = vrot.lane.b32.xlu0 %v7037_v46, %s5888_s30 }
 0x6d5   : > { %3029 = vrot.lane.b32.xlu0 %v7037_v46, %s5889_s18 }
 0x6d9   : > { %3288 = vrot.lane.b32.xlu0 %v7037_v46, %s5887_s29 }
 0x6dd   : > { %3444 = vrot.lane.b32.xlu0 %v7409_v27, %s5889_s18 }
 0x6e1   : > { %3532 = vrot.lane.b32.xlu0 %v7050_v56, %s5888_s30 }
 0x6e4   : > { %3227 = vadd.xlane.f32.xlu1 %v3226_v43 }
 0x6e5   : > { %3929 = vrot.lane.b32.xlu0 %v7050_v56, %s5887_s29 }
 0x6e9   : > { %4091 = vrot.lane.b32.xlu0 %v7409_v27, %s5887_s29 }
 0x6ed   : > { %4179 = vrot.lane.b32.xlu0 %v7065_v44, %s5888_s30 }
 0x6f1   : > { %4414 = vrot.lane.b32.xlu0 %v7065_v44, %s5889_s18 }
 0x6f5   : > { %3767 = vrot.lane.b32.xlu1 %v7050_v56, %s5889_s18 }
 0x6f9   : > { %4576 = vrot.lane.b32.xlu1 %v7065_v44, %s5887_s29 }
 0x723   : > { %v2963_v35 = vpop.xlane.xlu0 %2962 }
 0x727   : > { %v2966_v30 = vpop.xlane.xlu1 %2965 }
 0x728   : > { %v2969_v42 = vpop.xlane.xlu0 %2968 }
 0x72c   : > { %v3219_v19 = vpop.xlane.xlu0 %3218  ;;  %v3216_v37 = vpop.xlane.xlu1 %3215 }
 0x72d   : > { %5647 = vrcp.f32 %v3219_v19 }
 0x72e   : > { %5649 = vrcp.f32 %v2623_v16 }
 0x730   : > { %v3225_v61 = vpop.xlane.xlu0 %3224  ;;  %v3222_v26 = vpop.xlane.xlu1 %3221 }
 0x731   : > { %5651 = vrcp.f32 %v3222_v26 }
 0x734   : > { %v2446_v12 = vpop.xlane.xlu0 %2445  ;;  %v2443_v53 = vpop.xlane.xlu1 %2442 }
 0x735   : > { %5653 = vrcp.f32 %v2446_v12 }
 0x736   : > { %5655 = vrcp.f32 %v2960_v63 }
 0x737   : > { %v5648_v29 = vpop.eup %5647  ;;  %5657 = vrcp.f32 %v2963_v35 }
 0x738   : > { %v2452_v39 = vpop.xlane.xlu0 %2451  ;;  %v2449_v51 = vpop.xlane.xlu1 %2448  ;;  %5659 = vrcp.f32 %v2617_v23  ;;  %v3235_v2 = vmul.f32 %v5648_v29, %v6984_v15 }
 0x739   : > { %5661 = vrcp.f32 %v2449_v51  ;;  %v5650_v10 = vpop.eup %5649 }
 0x73a   : > { %5663 = vrcp.f32 %v2629_v62  ;;  %v2637_v14 = vmul.f32 %v5650_v10, %v6938_v58 }
 0x73b   : > { %5665 = vrcp.f32 %v2443_v53  ;;  %v5652_v32 = vpop.eup %5651 }
 0x73c   : > { %v2282_v24 = vpop.permute.xlu0 %2281  ;;  %5667 = vrcp.f32 %v2626_v20  ;;  %v3236_v43 = vmul.f32 %v5652_v32, %v6994_v40  ;;  %v2455_v16 = vpop.xlane.xlu1 %2454 }
 0x73d   : > { %v2641_v38 = vmul.f32 %v2636_v55, %v2282_v24  ;;  %v3240_v59 = vmul.f32 %v3235_v2, %v2282_v24  ;;  %5669 = vrcp.f32 %v2957_v57 }
 0x73e   : > { %5671 = vrcp.f32 %v2966_v30 }
 0x73f   : > { %v5654_v6 = vpop.eup %5653  ;;  %v2652_v60 = vsel %vm1008_vm7, %v2641_v38, 0.0  ;;  %v3251_v9 = vsel %vm1008_vm7, %v3240_v59, 0.0  ;;  %5673 = vrcp.f32 %v2969_v42 }
 0x740   : > { %v2653_v15 = vrot.slane %v2652_v60, 4  ;;  %v2289_v1 = vpop.permute.xlu0 %2288  ;;  %v5656_v7 = vpop.eup %5655  ;;  %5675 = vrcp.f32 %v3216_v37  ;;  %v2462_v27 = vmul.f32 %v5654_v6, %v7002_v17  ;;  %v3252_v34 = vrot.slane %v3251_v9, 4 }
 0x741   : > { %v2642_v47 = vmul.f32 %v2637_v14, %v2289_v1  ;;  %v5658_v22 = vpop.eup %5657  ;;  %5677 = vrcp.f32 %v3225_v61  ;;  %v3241_v0 = vmul.f32 %v3236_v43, %v2289_v1  ;;  %v2976_v58 = vmul.f32 %v5656_v7, %v6948_v5  ;;  %v2275_v55 = vpop.permute.xlu1 %2274 }
 0x742   : > { %v5660_v23 = vpop.eup %5659  ;;  %5679 = vrcp.f32 %v2452_v39  ;;  %v2654_v20 = vadd.f32 %v2653_v15, %v2652_v60  ;;  %v2467_v35 = vmul.f32 %v2462_v27, %v2282_v24  ;;  %v2977_v17 = vmul.f32 %v5658_v22, %v6970_v3 }
 0x743   : > { %v5662_v62 = vpop.eup %5661  ;;  %v2659_v40 = vsel %vm1008_vm7, %v2642_v47, 0.0  ;;  %v3253_v19 = vadd.f32 %v3252_v34, %v3251_v9  ;;  %v2981_v61 = vmul.f32 %v2976_v58, %v2282_v24  ;;  %v3258_v53 = vsel %vm1008_vm7, %v3241_v0, 0.0 }
 0x744   : > { %v7083_v57 = vpop.permute.xlu0 %2295  ;;  %v5664_v63 = vpop.eup %5663  ;;  %v2463_v30 = vmul.f32 %v5662_v62, %v7004_v31  ;;  %v2982_v12 = vmul.f32 %v2977_v17, %v2289_v1  ;;  %v2655_v5 = vrot.slane %v2654_v20, 2  ;;  %v2660_v29 = vrot.slane %v2659_v40, 4 }
 0x745   : > { %v5666_v42 = vpop.eup %5665  ;;  %v2478_v3 = vsel %vm1008_vm7, %v2467_v35, 0.0  ;;  %v2635_v2 = vmul.f32 %v5660_v23, %v6930_v4  ;;  %v3254_v38 = vrot.slane %v3253_v19, 2  ;;  %v3259_v24 = vrot.slane %v3258_v53, 4 }
 0x746   : > { %v5668_v37 = vpop.eup %5667  ;;  %v2468_v26 = vmul.f32 %v2463_v30, %v2289_v1  ;;  %v2461_v31 = vmul.f32 %v5666_v42, %v6998_v13  ;;  %v7096_v32 = vmul.f32 %v5664_v63, %v6946_v45  ;;  %v2992_v60 = vsel %vm1008_vm7, %v2981_v61, 0.0 }
 0x747   : > { %v5670_v54 = vpop.eup %5669  ;;  %v2638_v59 = vmul.f32 %v5668_v37, %v6940_v33  ;;  %v2999_v14 = vsel %vm1008_vm7, %v2982_v12, 0.0  ;;  %v2479_v4 = vrot.slane %v2478_v3, 4  ;;  %v2656_v1 = vadd.f32 %v2655_v5, %v2654_v20 }
 0x748   : > { %v7089_v39 = vpop.permute.xlu0 %2302  ;;  %v5672_v51 = vpop.eup %5671  ;;  %v2485_v9 = vsel %vm1008_vm7, %v2468_v26, 0.0  ;;  %v2975_v13 = vmul.f32 %v5670_v54, %v6954_v25  ;;  %v2661_v7 = vadd.f32 %v2660_v29, %v2659_v40  ;;  %v2640_v27 = vmul.f32 %v2635_v2, %v2275_v55 }
 0x749   : > { %v5674_v10 = vpop.eup %5673  ;;  %5681 = vrcp.f32 %v2455_v16  ;;  %v2466_v33 = vmul.f32 %v2461_v31, %v2275_v55  ;;  %v2978_v45 = vmul.f32 %v5672_v51, %v6975_v49  ;;  %v3255_v34 = vadd.f32 %v3254_v38, %v3253_v19 }
 0x74a   : > { %v5676_v6 = vpop.eup %5675  ;;  %v7104_v43 = vmul.f32 %v5674_v10, %v6977_v11  ;;  %v2486_v23 = vrot.slane %v2485_v9, 4  ;;  %v3260_v0 = vadd.f32 %v3259_v24, %v3258_v53  ;;  %v2645_v25 = vsel %vm1008_vm7, %v2640_v27, 0.0 }
 0x74b   : > { %v5678_v15 = vpop.eup %5677  ;;  %v2993_v62 = vrot.slane %v2992_v60, 4  ;;  %v3000_v20 = vrot.slane %v2999_v14, 4  ;;  %v3234_v58 = vmul.f32 %v5676_v6, %v6986_v21  ;;  %v2480_v63 = vadd.f32 %v2479_v4, %v2478_v3 }
 0x74c   : > { %v2691_v47 = vpop.permute.xlu0 %2690  ;;  %v5680_v22 = vpop.eup %5679  ;;  %v3237_v16 = vmul.f32 %v5678_v15, %v6992_v8  ;;  %v2657_v49 = vrot.slane %v2656_v1, 1  ;;  %v2662_v35 = vrot.slane %v2661_v7, 2  ;;  %v2646_v11 = vrot.slane %v2645_v25, 4 }
 0x74d   : > { %5177 = vmatpush3.msra.mxu1 %v2691_v47  ;;  %v2471_v17 = vsel %vm1008_vm7, %v2466_v33, 0.0  ;;  %v3239_v30 = vmul.f32 %v3234_v58, %v2275_v55  ;;  %v2464_v40 = vmul.f32 %v5680_v22, %v7010_v41  ;;  %v2643_v42 = vmul.f32 %v2638_v59, %v7083_v57 }
 0x74e   : > { %5181 = vmatprep.subr.mxu1 %v7401_v28  ;;  %v3256_v19 = vrot.slane %v3255_v34, 1  ;;  %v2487_v37 = vadd.f32 %v2486_v23, %v2485_v9  ;;  %v3261_v61 = vrot.slane %v3260_v0, 2  ;;  %v2647_v26 = vadd.f32 %v2646_v11, %v2645_v25 }
 0x74f   : > { %v7113_v12 = vadd.f32 %v2993_v62, %v2992_v60  ;;  %v3244_v21 = vsel %vm1008_vm7, %v3239_v30, 0.0  ;;  %v2469_v8 = vmul.f32 %v2464_v40, %v7083_v57  ;;  %v2666_v53 = vsel %vm1008_vm7, %v2643_v42, 0.0 }
 0x750   : > { %v2481_v54 = vrot.slane %v2480_v63, 2  ;;  %v2663_v5 = vadd.f32 %v2662_v35, %v2661_v7  ;;  %v2472_v29 = vrot.slane %v2471_v17, 4  ;;  %v2980_v51 = vmul.f32 %v2975_v13, %v2275_v55 }
 0x751   : > { %v7118_v3 = vadd.f32 %v3000_v20, %v2999_v14  ;;  %v2648_v41 = vrot.slane %v2647_v26, 2  ;;  %v3245_v31 = vrot.slane %v3244_v21, 4  ;;  %v2667_v2 = vrot.slane %v2666_v53, 4 }
 0x752   : > { %v7120_v10 = vadd.f32 %v2657_v49, %v2656_v1  ;;  %v7122_v38 = vadd.f32 %v3256_v19, %v3255_v34  ;;  %v2488_v24 = vrot.slane %v2487_v37, 2  ;;  %v3262_v59 = vadd.f32 %v3261_v61, %v3260_v0 }
 0x753   : > { %v5682_v6 = vpop.eup %5681  ;;  %v3246_v60 = vadd.f32 %v3245_v31, %v3244_v21  ;;  %v2492_v9 = vsel %vm1008_vm7, %v2469_v8, 0.0  ;;  %v2668_v15 = vadd.f32 %v2667_v2, %v2666_v53  ;;  %v3242_v4 = vmul.f32 %v3237_v16, %v7083_v57 }
 0x754   : > { %v7126_v7 = vadd.f32 %v2481_v54, %v2480_v63  ;;  %v2664_v55 = vrot.slane %v2663_v5, 1  ;;  %v2473_v14 = vadd.f32 %v2472_v29, %v2471_v17  ;;  %v2985_v13 = vsel %vm1008_vm7, %v2980_v51, 0.0 }
 0x755   : > { %v2649_v27 = vadd.f32 %v2648_v41, %v2647_v26  ;;  %v3247_v1 = vrot.slane %v3246_v60, 2  ;;  %v2983_v47 = vmul.f32 %v2978_v45, %v7083_v57  ;;  %v3265_v33 = vsel %vm1008_vm7, %v3242_v4, 0.0 }
 0x756   : > { %v3263_v22 = vrot.slane %v3262_v59, 1  ;;  %v2493_v34 = vrot.slane %v2492_v9, 4  ;;  %v2669_v23 = vrot.slane %v2668_v15, 2  ;;  %v3266_v0 = vrot.slane %v3265_v33, 4 }
 0x757   : > { %v7131_v25 = vadd.f32 %v2488_v24, %v2487_v37  ;;  %v2986_v62 = vrot.slane %v2985_v13, 4  ;;  %v3248_v20 = vadd.f32 %v3247_v1, %v3246_v60  ;;  %v2465_v58 = vmul.f32 %v5682_v6, %v7016_v52 }
 0x758   : > { %v2474_v16 = vrot.slane %v2473_v14, 2  ;;  %v3267_v63 = vadd.f32 %v3266_v0, %v3265_v33  ;;  %v2644_v49 = vmul.f32 %v7096_v32, %v7089_v39  ;;  %v2984_v57 = vmul.f32 %v7104_v43, %v7089_v39 }
 0x759   : > { %v2650_v45 = vrot.slane %v2649_v27, 1  ;;  %v3249_v35 = vrot.slane %v3248_v20, 1  ;;  %v3006_v11 = vsel %vm1008_vm7, %v2983_v47, 0.0  ;;  %v2470_v17 = vmul.f32 %v2465_v58, %v7089_v39 }
 0x75a   : > { %v2494_v30 = vadd.f32 %v2493_v34, %v2492_v9  ;;  %v2670_v40 = vadd.f32 %v2669_v23, %v2668_v15  ;;  %v3268_v42 = vrot.slane %v3267_v63, 2  ;;  %v2673_v19 = vsel %vm1008_vm7, %v2644_v49, 0.0 }
 0x75b   : > { %v3264_v52 = vadd.f32 %v3263_v22, %v3262_v59  ;;  %v2987_v37 = vadd.f32 %v2986_v62, %v2985_v13  ;;  %v2499_v61 = vsel %vm1008_vm7, %v2470_v17, 0.0  ;;  %v2674_v26 = vrot.slane %v2673_v19, 4 }
 0x75c   : > { %v2475_v32 = vadd.f32 %v2474_v16, %v2473_v14  ;;  %v3269_v21 = vadd.f32 %v3268_v42, %v3267_v63  ;;  %v2500_v8 = vrot.slane %v2499_v61, 4  ;;  %v3013_v43 = vsel %vm1008_vm7, %v2984_v57, 0.0 }
 0x75d   : > { %v2651_v53 = vadd.f32 %v2650_v45, %v2649_v27  ;;  %v3250_v54 = vadd.f32 %v3249_v35, %v3248_v20  ;;  %v3007_v29 = vrot.slane %v3006_v11, 4  ;;  %v2675_v51 = vadd.f32 %v2674_v26, %v2673_v19 }
 0x75e   : > { %v2495_v41 = vrot.slane %v2494_v30, 2  ;;  %v2671_v31 = vrot.slane %v2670_v40, 1  ;;  %v3270_v2 = vrot.slane %v3269_v21, 1  ;;  %v2501_v24 = vadd.f32 %v2500_v8, %v2499_v61 }
 0x75f   : > { %v2483_v6 = vrot.slane %v7126_v7, 1  ;;  %v2665_v59 = vadd.f32 %v2664_v55, %v2663_v5  ;;  %v2676_v60 = vrot.slane %v2675_v51, 2  ;;  %v3014_v9 = vrot.slane %v3013_v43, 4 }
 0x760   : > { %v2490_v15 = vrot.slane %v7131_v25, 1  ;;  %v2476_v4 = vrot.slane %v2475_v32, 1  ;;  %v2988_v14 = vrot.slane %v2987_v37, 2  ;;  %v2502_v13 = vrot.slane %v2501_v24, 2 }
 0x761   : > { %v3008_v1 = vadd.f32 %v3007_v29, %v3006_v11  ;;  %v2677_v47 = vadd.f32 %v2676_v60, %v2675_v51  ;;  %v3271_v27 = vadd.f32 %v3270_v2, %v3269_v21  ;;  %v3284_v33 = vsel %vm1363_vm8, %v7122_v38, %v3250_v54 }
 0x762   : > { %v2496_v22 = vadd.f32 %v2495_v41, %v2494_v30  ;;  %v2672_v34 = vadd.f32 %v2671_v31, %v2670_v40  ;;  %v2685_v23 = vsel %vm1363_vm8, %v7120_v10, %v2651_v53  ;;  %v3285_v5 = vsel %vm1365_vm9, %v3264_v52, %v3284_v33  ;;  %v3030_v41 = vpop.permute.xlu0 %3029 }
 0x763   : > { %v2503_v55 = vadd.f32 %v2502_v13, %v2501_v24  ;;  %v3015_v0 = vadd.f32 %v3014_v9, %v3013_v43  ;;  %v2678_v62 = vrot.slane %v2677_v47, 1  ;;  %v7151_v20 = vsel %vm1367_vm10, %v3271_v27, %v3285_v5 }
 0x764   : > { %v2995_v58 = vrot.slane %v7113_v12, 2  ;;  %v3002_v16 = vrot.slane %v7118_v3, 2  ;;  %v2484_v63 = vadd.f32 %v2483_v6, %v7126_v7  ;;  %v2989_v38 = vadd.f32 %v2988_v14, %v2987_v37 }
 0x765   : > { %v2679_v49 = vadd.f32 %v2678_v62, %v2677_v47  ;;  %v2686_v57 = vsel %vm1365_vm9, %v2665_v59, %v2685_v23  ;;  %v2477_v45 = vadd.f32 %v2476_v4, %v2475_v32  ;;  %v2497_v10 = vrot.slane %v2496_v22, 1 }
 0x766   : > { %v3009_v35 = vrot.slane %v3008_v1, 2  ;;  %v2687_v11 = vsel %vm1367_vm10, %v2672_v34, %v2686_v57  ;;  %v2491_v17 = vadd.f32 %v2490_v15, %v7131_v25  ;;  %v3016_v30 = vrot.slane %v3015_v0, 2  ;;  %v3289_v4 = vpop.permute.xlu0 %3288  ;;  %v3365_v57 = vld [vmem:[%s7357_s6] sm:$0xff] }
 0x767   : > { %v2688_v40 = vsel %vm1369_vm11, %v2679_v49, %v2687_v11  ;;  %v2504_v42 = vrot.slane %v2503_v55, 1  ;;  %v2996_v19 = vadd.f32 %v2995_v58, %v7113_v12  ;;  %v3003_v7 = vadd.f32 %v3002_v16, %v7118_v3 }
 0x768   : > { %5179 = vmatmul.mubr.msk.f32.vlgmr.msra.gmra.mrb[12].mxu1 %vm1008_vm7, %v2688_v40  ;;  %v2990_v52 = vrot.slane %v2989_v38, 1  ;;  %v3010_v37 = vadd.f32 %v3009_v35, %v3008_v1  ;;  %v2498_v25 = vadd.f32 %v2497_v10, %v2496_v22  ;;  %v2770_v61 = vsel %vm1363_vm8, %v2484_v63, %v2477_v45 }
 0x769   : > { %5182 = vmatpush3.msra.mxu1 %v7037_v46  ;;  %5183 = vmatprep.mubr.msk.f32.mxu1 %vm5886_vm1, %v7401_v28  ;;  %v3017_v26 = vadd.f32 %v3016_v30, %v3015_v0  ;;  %v2505_v32 = vadd.f32 %v2504_v42, %v2503_v55  ;;  %v2771_v12 = vsel %vm1365_vm9, %v2491_v17, %v2770_v61  ;;  %v2997_v21 = vrot.slane %v2996_v19, 1 }
 0x76a   : > { %5191 = vmatprep.subr.mxu1 %v7401_v28  ;;  %v3004_v8 = vrot.slane %v3003_v7, 1  ;;  %v2991_v3 = vadd.f32 %v2990_v52, %v2989_v38  ;;  %v3011_v53 = vrot.slane %v3010_v37, 1  ;;  %v2772_v46 = vsel %vm1367_vm10, %v2498_v25, %v2771_v12  ;;  %v3445_v22 = vpop.permute.xlu0 %3444 }
 0x76b   : > { %v2773_v54 = vsel %vm1369_vm11, %v2505_v32, %v2772_v46  ;;  %v3018_v29 = vrot.slane %v3017_v26, 1  ;;  %v2998_v51 = vadd.f32 %v2997_v21, %v2996_v19 }
 0x76c   : > { %v3005_v31 = vadd.f32 %v3004_v8, %v3003_v7  ;;  %v3012_v2 = vadd.f32 %v3011_v53, %v3010_v37 }
 0x76d   : > { %v3025_v24 = vsel %vm1363_vm8, %v2998_v51, %v2991_v3  ;;  %v3019_v6 = vadd.f32 %v3018_v29, %v3017_v26 }
 0x76e   : > { %v3026_v59 = vsel %vm1365_vm9, %v3005_v31, %v3025_v24  ;;  %v3533_v55 = vpop.permute.xlu0 %3532 }
 0x76f   : > { %v3027_v60 = vsel %vm1367_vm10, %v3012_v2, %v3026_v59 }
 0x770   : > { %5184 = vmatmul.mubr.msk.f32.vlgmr.msra.gmra.mrb[12].mxu1 %vm1008_vm7, %v2773_v54  ;;  %v3028_v9 = vsel %vm1369_vm11, %v3019_v6, %v3027_v60 }
 0x771   : > { %v3228_v43 = vpop.xlane.xlu1 %3227  ;;  %5192 = vmatpush3.msra.mxu1 %v3030_v41  ;;  %5193 = vmatprep.mubr.msk.f32.mxu1 %vm5886_vm1, %v7401_v28 }
 0x772   : > { %5683 = vrcp.f32 %v3228_v43  ;;  %5201 = vmatprep.subr.mxu1 %v7401_v28 }
 0x775   : > { %v3768_v0 = vpop.permute.xlu1 %3767 }
 0x778   : > { %5194 = vmatmul.mubr.msk.f32.vlgmr.msra.gmra.mrb[12].mxu1 %vm1008_vm7, %v3028_v9 }
 0x779   : > { %5202 = vmatpush3.msra.mxu1 %v3289_v4  ;;  %5203 = vmatprep.mubr.msk.f32.mxu1 %vm5886_vm1, %v7401_v28  ;;  %v4577_v16 = vpop.permute.xlu1 %4576 }
 0x77a   : > { %5216 = vmatprep.subr.mxu1 %v7401_v28 }
 0x77c   : > { %v5684_v15 = vpop.eup %5683 }
 0x77d   : > { %v3238_v14 = vmul.f32 %v5684_v15, %v7052_v18 }
 0x77f   : > { %v3243_v13 = vmul.f32 %v3238_v14, %v7089_v39  ;;  %v3930_v39 = vpop.permute.xlu0 %3929 }
 0x781   : > { %v3272_v1 = vsel %vm1008_vm7, %v3243_v13, 0.0 }
 0x782   : > { %v3273_v47 = vrot.slane %v3272_v1, 4 }
 0x783   : > { %v4092_v62 = vpop.permute.xlu0 %4091 }
 0x784   : > { %v3274_v27 = vadd.f32 %v3273_v47, %v3272_v1 }
 0x786   : > { %v3275_v33 = vrot.slane %v3274_v27, 2 }
 0x788   : > { %v3276_v34 = vadd.f32 %v3275_v33, %v3274_v27  ;;  %v407_v27 = vsub.s32 7, %v7406_v48 }
 0x78a   : > { %v3277_v23 = vrot.slane %v3276_v34, 1  ;;  %v408_v33 = vrot.slane %v7030_v36, %v407_v27 }
 0x78c   : > { %v3278_v5 = vadd.f32 %v3277_v23, %v3276_v34 }
 0x78e   : > { %v3287_v18 = vsel %vm1369_vm11, %v3278_v5, %v7151_v20  ;;  %v4180_v20 = vpop.permute.xlu0 %4179 }
 0x78f   : > { %5204 = vmatmul.mubr.msk.f32.vlgmr.msra.gmra.mrb[12].mxu1 %vm1008_vm7, %v3287_v18 }
 0x790   : > { %5217 = vmatpush3.xpose.msk.msra.mxu1 %vm422_vm0, %v3445_v22  ;;  %5218 = vmatprep.mubr.msk.f32.mxu1 %vm5886_vm1, %v7401_v28 }
 0x791   : > { %5231 = vmatprep.subr.mxu1 %v7401_v28 }
 0x792   : > { %v4415_v58 = vpop.permute.xlu0 %4414 }
 0x793   : > { %5219 = vmatmul.mubr.msk.f32.vlgmr.msra.gmra.mrb[14].mxu1 %vm422_vm0, %v3533_v55 }
 0x794   : > { %5232 = vmatpush3.xpose.msk.msra.mxu1 %vm422_vm0, %v3445_v22  ;;  %5233 = vmatprep.mubr.msk.f32.mxu1 %vm5886_vm1, %v7401_v28 }
 0x795   : > { %5241 = vmatprep.subr.mxu1 %v7401_v28 }
 0x797   : > { %5234 = vmatmul.mubr.msk.f32.vlgmr.msra.gmra.mrb[16].mxu1 %vm422_vm0, %v3768_v0 }
 0x798   : > { %5242 = vmatpush3.xpose.msk.msra.mxu1 %vm422_vm0, %v3445_v22  ;;  %5243 = vmatprep.mubr.msk.f32.mxu1 %vm5886_vm1, %v7401_v28 }
 0x799   : > { %5251 = vmatprep.subr.mxu1 %v7401_v28 }
 0x79b   : > { %5244 = vmatmul.mubr.msk.f32.vlgmr.msra.gmra.mrb[18].mxu1 %vm422_vm0, %v3930_v39 }
 0x79c   : > { %5252 = vmatpush3.xpose.msk.msra.mxu1 %vm422_vm0, %v4092_v62  ;;  %5253 = vmatprep.mubr.msk.f32.mxu1 %vm5886_vm1, %v7401_v28 }
 0x79d   : > { %5256 = vmatprep.subr.mxu1 %v7401_v28 }
 0x79f   : > { %5254 = vmatmul.mubr.msk.f32.vlgmr.msra.gmra.mrb[20].mxu1 %vm422_vm0, %v7065_v44  ;;  %v7412_v44 = vmov 0.0|0.0  }
 0x7a0   : > { %5257 = vmatpush3.xpose.msk.msra.mxu1 %vm422_vm0, %v4092_v62  ;;  %5258 = vmatprep.mubr.msk.f32.mxu1 %vm5886_vm1, %v7401_v28 }
 0x7a1   : > { %5271 = vmatprep.subr.mxu1 %v7401_v28 }
 0x7a3   : > { %5259 = vmatmul.mubr.msk.f32.vlgmr.msra.gmra.mrb[22].mxu1 %vm422_vm0, %v4180_v20 }
 0x7a4   : > { %5272 = vmatpush3.xpose.msk.msra.mxu1 %vm422_vm0, %v4092_v62  ;;  %5273 = vmatprep.mubr.msk.f32.mxu1 %vm5886_vm1, %v7401_v28 }
 0x7a5   : > { %5281 = vmatprep.subr.mxu1 %v7401_v28 }
 0x7a7   : > { %5274 = vmatmul.mubr.msk.f32.vlgmr.msra.gmra.mrb[24].mxu1 %vm422_vm0, %v4415_v58 }
 0x7a8   : > { %5282 = vmatpush3.xpose.msk.msra.mxu1 %vm422_vm0, %v4092_v62  ;;  %5283 = vmatprep.mubr.msk.f32.mxu1 %vm5886_vm1, %v7401_v28 }
 0x7a9   : > { %5364 = vmatprep.subr.bf16.mxu1 %v7412_v44 }
 0x7ab   : > { %5284 = vmatmul.mubr.msk.f32.vlgmr.msra.gmra.mrb[26].mxu1 %vm422_vm0, %v4577_v16 }
 0x7ac   : > { %5323 = vmatprep.mubr.msk.f32.mxu1 %vm5886_vm1, %v7401_v28 }
 0x862   : > { %v3359_v63 = vpop.f32.mrb[12].mxu1 }
 0x863   : > { %v3364_v38 = vmul.f32 0.25, %v3359_v63  ;;  %v5205_v49 = vpop.f32.mrb[13].mxu1 }
 0x865   : > { %5207 = vmatpush3.msk.msra.mxu0 %vm3370_vm2, %v3364_v38 }
 0x866   : > { %v3602_v45 = vpop.f32.mrb[14].mxu1  ;;  %5209 = vmatmul.mubr.msk.f32.vlgmr.msra.gmra.mrb[18].mxu0 %vm3366_vm3, %v3365_v57  ;;  %5211 = vmatprep.subr.mxu0 %v7401_v28 }
 0x867   : > { %v5220_v10 = vpop.f32.mrb[15].mxu1  ;;  %v3606_v35 = vsel %vm1008_vm7, %v3602_v45, -inf  ;;  %5213 = vmatprep.mubr.msk.f32.mxu0 %vm5886_vm1, %v7401_v28 }
 0x868   : > { %3607 = vmax.xlane.f32.xlu0 %v3606_v35 }
 0x86a   : > { %v3837_v11 = vpop.f32.mrb[16].mxu1 }
 0x86b   : > { %v5235_v17 = vpop.f32.mrb[17].mxu1  ;;  %v3841_v30 = vsel %vm1008_vm7, %v3837_v11, -inf }
 0x86c   : > { %5212 = vmatpush3.xpose.msk.msra.mxu0 %vm422_vm0, %v3445_v22  ;;  %3842 = vmax.xlane.f32.xlu0 %v3841_v30  ;;  %v7413_v22 = vld [vmem:[#allocation22_spill] sm:$0xff]  ;;  %v4957_v30 = vld [vmem:[#allocation6 + $0x8] ss:$0 sm:$0xff] }
 0x86d   : > { %5221 = vmatprep.subr.mxu0 %v7401_v28  ;;  %v708_v34 = vadd.f32 %v7413_v22, %v408_v33  ;;  %v4755_v33 = vld [vmem:[#allocation7] sm:$0xff]  ;;  %v4756_v22 = vld [vmem:[#allocation7 + $0x8] sm:$0xff] }
 0x86e   : > { %v3999_v40 = vpop.f32.mrb[18].mxu1 }
 0x86f   : > { %5214 = vmatmul.mubr.msk.f32.vlgmr.msra.gmra.mrb[20].mxu0 %vm422_vm0, %v7050_v56  ;;  %v5245_v42 = vpop.f32.mrb[19].mxu1  ;;  %v4003_v19 = vsel %vm1008_vm7, %v3999_v40, -inf }
 0x870   : > { %4004 = vmax.xlane.f32.xlu0 %v4003_v19  ;;  %5223 = vmatprep.mubr.msk.f32.mxu0 %vm5886_vm1, %v7401_v28 }
 0x872   : > { %v4164_v7 = vpop.f32.mrb[20].mxu1 }
 0x873   : > { %v5255_v52 = vpop.f32.mrb[21].mxu1  ;;  %v4168_v37 = vsel %vm1008_vm7, %v4164_v7, -inf }
 0x874   : > { %4169 = vmax.xlane.f32.xlu0 %v4168_v37 }
 0x876   : > { %v4249_v25 = vpop.f32.mrb[22].mxu1 }
 0x877   : > { %v5260_v61 = vpop.f32.mrb[23].mxu1  ;;  %v4253_v15 = vsel %vm1008_vm7, %v4249_v25, -inf }
 0x87a   : > { %v4484_v26 = vpop.f32.mrb[24].mxu1 }
 0x87b   : > { %v5275_v32 = vpop.f32.mrb[25].mxu1  ;;  %v4488_v4 = vsel %vm1008_vm7, %v4484_v26, -inf }
 0x87e   : > { %v7243_v12 = vpop.f32.mrb[26].mxu1 }
 0x87f   : > { %v5285_v21 = vpop.f32.mrb[27].mxu1  ;;  %v4650_v56 = vsel %vm1008_vm7, %v7243_v12, -inf }
 0x880   : > { %4651 = vmax.xlane.f32.xlu0 %v4650_v56 }
 0x8f5   : > { %v3608_v8 = vpop.xlane.xlu0 %3607 }
 0x8f6   : > { %v3609_v43 = vsub.f32 %v3602_v45, %v3608_v8 }
 0x8f8   : > { %v3610_v24 = vmul.f32 1.442695, %v3609_v43 }
 0x8f9   : > { %v3843_v3 = vpop.xlane.xlu0 %3842 }
 0x8fa   : > { %v3844_v53 = vsub.f32 %v3837_v11, %v3843_v3 }
 0x8fc   : > { %v3845_v6 = vmul.f32 1.442695, %v3844_v53 }
 0x8fd   : > { %v4005_v46 = vpop.xlane.xlu0 %4004 }
 0x8fe   : > { %v4006_v54 = vsub.f32 %v3999_v40, %v4005_v46  ;;  %v7414_v40 = vld [vmem:[#allocation20_spill] sm:$0xff] }
 0x8ff   : > { %v777_v42 = vadd.f32 %v4957_v30, %v7414_v40 }
 0x900   : > { %v4007_v29 = vmul.f32 1.442695, %v4006_v54 }
 0x901   : > { %v4170_v23 = vpop.xlane.xlu0 %4169 }
 0x902   : > { %5685 = vpow2.f32 %v4007_v29  ;;  %v4171_v55 = vsub.f32 %v4164_v7, %v4170_v23  ;;  %v5365_v23 = vpack.c.bf16 %v4756_v22, %v4755_v33 }
 0x903   : > { %5687 = vpow2.f32 %v3610_v24 }
 0x904   : > { %5689 = vpow2.f32 %v3845_v6  ;;  %v4172_v0 = vmul.f32 1.442695, %v4171_v55  ;;  %5366 = vmatpush3.bf16.msra.mxu1 %v5365_v23 }
 0x905   : > { %5367 = vmatprep.subr.bf16.mxu1 %v7412_v44 }
 0x90c   : > { %v7247_v51 = vpop.eup %5685 }
 0x90d   : > { %v4009_v41 = vsel %vm1008_vm7, %v7247_v51, 0.0  ;;  %v5688_v14 = vpop.eup %5687 }
 0x90e   : > { %4010 = vadd.xlane.f32.xlu0 %v4009_v41  ;;  %v3612_v13 = vsel %vm1008_vm7, %v5688_v14, 0.0  ;;  %v7255_v1 = vpop.eup %5689 }
 0x90f   : > { %v3847_v47 = vsel %vm1008_vm7, %v7255_v1, 0.0 }
 0x939   : > { %v3440_v31 = vpop.f32.mrb[18].mxu0 }
 0x93a   : > { %v5210_v2 = vpop.f32.mrb[19].mxu0 }
 0x942   : > { %v3517_v59 = vpop.f32.mrb[20].mxu0 }
 0x943   : > { %v5215_v60 = vpop.f32.mrb[21].mxu0  ;;  %v3521_v9 = vsel %vm1008_vm7, %v3517_v59, -inf }
 0x944   : > { %3522 = vmax.xlane.f32.xlu1 %v3521_v9 }
 0x948   : > { %4254 = vmax.xlane.f32.xlu1 %v4253_v15 }
 0x94c   : > { %4489 = vmax.xlane.f32.xlu1 %v4488_v4 }
 0x950   : > { %3613 = vadd.xlane.f32.xlu1 %v3612_v13 }
 0x954   : > { %3848 = vadd.xlane.f32.xlu1 %v3847_v47 }
 0x965   : > { %3618 = vrot.lane.b32.xlu1 %v708_v34, %s5888_s30 }
 0x9d1   : > { %v3523_v5 = vpop.xlane.xlu1 %3522 }
 0x9d2   : > { %v3524_v19 = vsub.f32 %v3517_v59, %v3523_v5  ;;  %v4758_v5 = vld [vmem:[#allocation7 + $0x18] sm:$0xff] }
 0x9d4   : > { %v3525_v7 = vmul.f32 1.442695, %v3524_v19 }
 0x9d5   : > { %v4255_v18 = vpop.xlane.xlu1 %4254 }
 0x9d6   : > { %v4256_v39 = vsub.f32 %v4249_v25, %v4255_v18  ;;  %v4652_v25 = vpop.xlane.xlu0 %4651  ;;  %v4759_v18 = vld [vmem:[#allocation7 + $0x20] sm:$0xff] }
 0x9d7   : > { %v4653_v61 = vsub.f32 %v7243_v12, %v4652_v25 }
 0x9d8   : > { %v4257_v62 = vmul.f32 1.442695, %v4256_v39  ;;  %v4760_v39 = vld [vmem:[#allocation7 + $0x28] sm:$0xff] }
 0x9d9   : > { %v4490_v20 = vpop.xlane.xlu1 %4489 }
 0x9da   : > { %5691 = vpow2.f32 %v4257_v62  ;;  %v4491_v58 = vsub.f32 %v4484_v26, %v4490_v20  ;;  %v4654_v26 = vmul.f32 1.442695, %v4653_v61  ;;  %v4011_v56 = vpop.xlane.xlu0 %4010  ;;  %v4762_v62 = vld [vmem:[#allocation7 + $0x38] sm:$0xff] }
 0x9db   : > { %5693 = vpow2.f32 %v4172_v0  ;;  %v5371_v0 = vpack.c.bf16 %v4760_v39, %v4759_v18 }
 0x9dc   : > { %v4492_v16 = vmul.f32 1.442695, %v4491_v58 }
 0x9dd   : > { %v3614_v63 = vpop.xlane.xlu1 %3613 }
 0x9de   : > { %5695 = vpow2.f32 %v4492_v16  ;;  %v4763_v16 = vld [vmem:[#allocation7 + $0x40] sm:$0xff] }
 0x9df   : > { %5697 = vrcp.f32 %v3614_v63  ;;  %v4764_v63 = vld [vmem:[#allocation7 + $0x48] sm:$0xff] }
 0x9e0   : > { %5699 = vpow2.f32 %v3525_v7 }
 0x9e1   : > { %v3849_v36 = vpop.xlane.xlu1 %3848  ;;  %5701 = vpow2.f32 %v4654_v26 }
 0x9e4   : > { %v7263_v48 = vpop.eup %5691 }
 0x9e5   : > { %v3619_v38 = vpop.permute.xlu1 %3618  ;;  %v4259_v49 = vsel %vm1008_vm7, %v7263_v48, 0.0  ;;  %v7267_v57 = vpop.eup %5693 }
 0x9e6   : > { %4260 = vadd.xlane.f32.xlu0 %v4259_v49  ;;  %5222 = vmatpush3.msra.mxu0 %v3619_v38  ;;  %v4174_v35 = vsel %vm1008_vm7, %v7267_v57, 0.0  ;;  %v4765_v38 = vld [vmem:[#allocation7 + $0x50] sm:$0xff]  ;;  %v4766_v49 = vld [vmem:[#allocation7 + $0x58] sm:$0xff] }
 0x9e7   : > { %5226 = vmatprep.subr.mxu0 %v7401_v28 }
 0x9e8   : > { %v7270_v45 = vpop.eup %5695 }
 0x9e9   : > { %v5698_v10 = vpop.eup %5697  ;;  %v4494_v11 = vsel %vm1008_vm7, %v7270_v45, 0.0 }
 0x9ea   : > { %v3616_v17 = vmul.f32 %v5698_v10, %v5688_v14  ;;  %4175 = vadd.xlane.f32.xlu0 %v4174_v35  ;;  %4495 = vadd.xlane.f32.xlu1 %v4494_v11  ;;  %v5700_v52 = vpop.eup %5699  ;;  %v4768_v10 = vld [vmem:[#allocation7 + $0x68] sm:$0xff]  ;;  %v4769_v11 = vld [vmem:[#allocation7 + $0x70] sm:$0xff] }
 0x9eb   : > { %v3527_v37 = vsel %vm1008_vm7, %v5700_v52, 0.0  ;;  %v5702_v32 = vpop.eup %5701 }
 0x9ec   : > { %5224 = vmatmul.mubr.msk.f32.vlgmr.msra.gmra.mrb[22].mxu0 %vm1008_vm7, %v3616_v17  ;;  %v4656_v21 = vsel %vm1008_vm7, %v5702_v32, 0.0  ;;  %v4770_v17 = vld [vmem:[#allocation7 + $0x78] sm:$0xff] }
 0x9ed   : > { %5227 = vmatpush3.msra.mxu0 %v708_v34  ;;  %5228 = vmatprep.mubr.msk.f32.mxu0 %vm5886_vm1, %v7401_v28  ;;  %v5386_v30 = vpack.c.bf16 %v4770_v17, %v4769_v11 }
 0x9ee   : > { %5236 = vmatprep.subr.mxu0 %v7401_v28 }
 0x9fb   : > { %4265 = vrot.lane.b32.xlu1 %v777_v42, %s5888_s30 }
 0x9ff   : > { %4661 = vrot.lane.b32.xlu1 %v777_v42, %s5887_s29 }
 0xa00   : > { %3852 = vrot.lane.b32.xlu0 %v708_v34, %s5889_s18 }
 0xa03   : > { %4739 = vrot.lane.b32.xlu1 %v3440_v31, %s5887_s29 }
 0xa1f   : > { %3528 = vadd.xlane.f32.xlu0 %v3527_v37 }
 0xa35   : > { %4014 = vrot.lane.b32.xlu0 %v708_v34, %s5887_s29  ;;  %v4757_v34 = vld [vmem:[#allocation7 + $0x10] sm:$0xff] }
 0xa36   : > { %v5368_v55 = vpack.c.bf16 %v4758_v5, %v4757_v34 }
 0xa38   : > { %5369 = vmatpush3.bf16.msra.mxu1 %v5368_v55 }
 0xa39   : > { %5370 = vmatprep.subr.bf16.mxu1 %v7412_v44 }
 0xa3c   : > { %5372 = vmatpush3.bf16.msra.mxu1 %v5371_v0 }
 0xa3d   : > { %5373 = vmatprep.subr.bf16.mxu1 %v7412_v44 }
 0xa54   : > { %4657 = vadd.xlane.f32.xlu0 %v4656_v21 }
 0xa6a   : > { %4499 = vrot.lane.b32.xlu0 %v777_v42, %s5889_s18 }
 0xa73   : > { %v4261_v8 = vpop.xlane.xlu0 %4260 }
 0xa77   : > { %v4176_v43 = vpop.xlane.xlu0 %4175  ;;  %v4496_v31 = vpop.xlane.xlu1 %4495 }
 0xa7b   : > { %v3853_v3 = vpop.permute.xlu0 %3852  ;;  %v4266_v59 = vpop.permute.xlu1 %4265 }
 0xaac   : > { %v3529_v53 = vpop.xlane.xlu0 %3528 }
 0xaad   : > { %5703 = vrcp.f32 %v3529_v53 }
 0xaae   : > { %5705 = vrcp.f32 %v3849_v36 }
 0xaaf   : > { %5707 = vrcp.f32 %v4011_v56 }
 0xab0   : > { %5709 = vrcp.f32 %v4261_v8  ;;  %v4015_v41 = vpop.permute.xlu0 %4014 }
 0xab1   : > { %5711 = vrcp.f32 %v4176_v43 }
 0xab2   : > { %5713 = vrcp.f32 %v4496_v31 }
 0xab7   : > { %v5704_v46 = vpop.eup %5703 }
 0xab8   : > { %v3531_v54 = vmul.f32 %v5704_v46, %v5700_v52  ;;  %v5706_v12 = vpop.eup %5705 }
 0xab9   : > { %v3851_v29 = vmul.f32 %v5706_v12, %v7255_v1  ;;  %v5708_v2 = vpop.eup %5707  ;;  %v4662_v1 = vpop.permute.xlu1 %4661 }
 0xaba   : > { %5229 = vmatmul.mubr.msk.f32.vlgmr.msra.gmra.mrb[22].mxu0 %vm1008_vm7, %v3531_v54  ;;  %v4013_v24 = vmul.f32 %v5708_v2, %v7247_v51  ;;  %v5710_v6 = vpop.eup %5709 }
 0xabb   : > { %5237 = vmatpush3.msra.mxu0 %v3853_v3  ;;  %5238 = vmatprep.mubr.msk.f32.mxu0 %vm5886_vm1, %v7401_v28  ;;  %v4263_v60 = vmul.f32 %v5710_v6, %v7263_v48  ;;  %v5712_v51 = vpop.eup %5711  ;;  %v5377_v48 = vpack.c.bf16 %v4764_v63, %v4763_v16 }
 0xabc   : > { %5246 = vmatprep.subr.mxu0 %v7401_v28  ;;  %v4178_v9 = vmul.f32 %v5712_v51, %v7267_v57  ;;  %v5714_v4 = vpop.eup %5713  ;;  %v5380_v57 = vpack.c.bf16 %v4766_v49, %v4765_v38 }
 0xabd   : > { %v4498_v14 = vmul.f32 %v5714_v4, %v7270_v45  ;;  %v4767_v45 = vld [vmem:[#allocation7 + $0x60] sm:$0xff]  ;;  %v4740_v19 = vpop.permute.xlu1 %4739 }
 0xabe   : > { %v5383_v35 = vpack.c.bf16 %v4768_v10, %v4767_v45  ;;  %v4750_v52 = vsel %vm422_vm0, %v6855_v50, %v4740_v19 }
 0xac2   : > { %5239 = vmatmul.mubr.msk.f32.vlgmr.msra.gmra.mrb[22].mxu0 %vm1008_vm7, %v3851_v29 }
 0xac3   : > { %5247 = vmatpush3.msra.mxu0 %v4015_v41  ;;  %5248 = vmatprep.mubr.msk.f32.mxu0 %vm5886_vm1, %v7401_v28 }
 0xac4   : > { %5261 = vmatprep.subr.mxu0 %v7401_v28 }
 0xaca   : > { %5249 = vmatmul.mubr.msk.f32.vlgmr.msra.gmra.mrb[22].mxu0 %vm1008_vm7, %v4013_v24 }
 0xacb   : > { %5262 = vmatpush3.msra.mxu0 %v4266_v59  ;;  %5263 = vmatprep.mubr.msk.f32.mxu0 %vm5886_vm1, %v7401_v28 }
 0xacc   : > { %5266 = vmatprep.subr.mxu0 %v7401_v28 }
 0xace   : > { %5264 = vmatmul.mubr.msk.f32.vlgmr.msra.gmra.mrb[24].mxu0 %vm1008_vm7, %v4263_v60 }
 0xacf   : > { %5267 = vmatpush3.msra.mxu0 %v777_v42  ;;  %5268 = vmatprep.mubr.msk.f32.mxu0 %vm5886_vm1, %v7401_v28 }
 0xad0   : > { %5276 = vmatprep.subr.mxu0 %v7401_v28 }
 0xad6   : > { %5269 = vmatmul.mubr.msk.f32.vlgmr.msra.gmra.mrb[24].mxu0 %vm1008_vm7, %v4178_v9 }
 0xad7   : > { %5278 = vmatprep.mubr.msk.f32.mxu0 %vm5886_vm1, %v7401_v28 }
 0xae1   : > { %v4658_v15 = vpop.xlane.xlu0 %4657 }
 0xae2   : > { %5715 = vrcp.f32 %v4658_v15 }
 0xae5   : > { %v4500_v13 = vpop.permute.xlu0 %4499 }
 0xae6   : > { %5277 = vmatpush3.msra.mxu0 %v4500_v13 }
 0xae7   : > { %5279 = vmatmul.mubr.msk.f32.vlgmr.msra.gmra.mrb[24].mxu0 %vm1008_vm7, %v4498_v14  ;;  %5286 = vmatprep.subr.mxu0 %v7401_v28 }
 0xae8   : > { %5287 = vmatpush3.msra.mxu0 %v4662_v1  ;;  %5288 = vmatprep.mubr.msk.f32.mxu0 %vm5886_vm1, %v7401_v28  ;;  %v4761_v28 = vld [vmem:[#allocation7 + $0x30] sm:$0xff]  ;;  %vm4751_vm1 = vcmask 523264  }
 0xae9   : > { %v5374_v20 = vpack.c.bf16 %v4762_v62, %v4761_v28 }
 0xaeb   : > { %5375 = vmatpush3.bf16.msra.mxu1 %v5374_v20 }
 0xaec   : > { %v5716_v47 = vpop.eup %5715  ;;  %5376 = vmatprep.subr.bf16.mxu1 %v7412_v44 }
 0xaed   : > { %v4660_v27 = vmul.f32 %v5716_v47, %v5702_v32 }
 0xaef   : > { %5289 = vmatmul.mubr.msk.f32.vlgmr.msra.gmra.mrb[24].mxu0 %vm1008_vm7, %v4660_v27  ;;  %5378 = vmatpush3.bf16.msra.mxu1 %v5377_v48 }
 0xaf0   : > { %5379 = vmatprep.subr.bf16.mxu1 %v7412_v44 }
 0xaf3   : > { %5381 = vmatpush3.bf16.msra.mxu1 %v5380_v57 }
 0xaf4   : > { %5382 = vmatprep.subr.bf16.mxu1 %v7412_v44 }
 0xaf7   : > { %5384 = vmatpush3.bf16.msra.mxu1 %v5383_v35 }
 0xaf8   : > { %5385 = vmatprep.subr.bf16.mxu1 %v7412_v44  ;;  %v5017_v44 = vld [vmem:[%s7355_s4] ss:$0 sm:$0xff] }
 0xafb   : > { %5387 = vmatpush3.bf16.msra.mxu1 %v5386_v30 }
 0xb9d   : > { %v4086_v58 = vpop.f32.mrb[22].mxu0 }
 0xb9e   : > { %4743 = vrot.lane.b32.xlu1 %v4086_v58, %s5889_s18  ;;  %v5250_v36 = vpop.f32.mrb[23].mxu0 }
 0xbc2   : > { %v4733_v40 = vpop.f32.mrb[24].mxu0 }
 0xbc3   : > { %4747 = vrot.lane.b32.xlu1 %v4733_v40, %s5888_s30  ;;  %v5290_v42 = vpop.f32.mrb[25].mxu0 }
 0xc10   : > { %v4744_v7 = vpop.permute.xlu1 %4743 }
 0xc11   : > { %v4752_v37 = vsel %vm4751_vm1, %v4750_v52, %v4744_v7 }
 0xc35   : > { %v4748_v25 = vpop.permute.xlu1 %4747 }
 0xc36   : > { %v4754_v61 = vsel %vm4753_vm4, %v4752_v37, %v4748_v25 }
 0xc37   : > { %5324 = vmatmul.mubr.f32.vlgmr.msra.gmra.mrb[28].mxu1 %v4754_v61 }
 0xd0a   : > { %v4844_v26 = vpop.f32.mrb[28].mxu1 }
 0xd0b   : > { %v4845_v32 = vadd.f32 %v5017_v44, %v4844_v26  ;;  %v5325_v21 = vpop.f32.mrb[29].mxu1 }
 0xd0d   : > { %4848 = vst [vmem:[%s335_s16] sm:$0xff] %v4845_v32 }
 0xd0e PF: > { %p19_p9 = scmp.ge.s32.totalorder %s6053_s23, 4   ;;  %s7415_s24 = smov %s5866_s25 }
 0xd0f   : > { %s7416_s25 = smov %s5870_s26  ;;  %s7417_s26 = smov %s6063_s11 }
 0xd10   : > { %s7418_s27 = smov %s6053_s23  ;;  %21 = sbr.rel (!%p19_p9) target bundleno = 5 (0x5), region = 100 }
 0xd17   :  { %4868 = vsyncpa [#allocation3], 1 }
 0xd18   :  { %4870 = vsyncpa [#allocation3 + $0x1], 1 }
 0xd19   :  { %4871 = vsyncpa [#allocation5], 1 }
 0xd1a   :  { %4872 = vsyncpa [#allocation8], 1 }

</bundles_post_ra>
